<compile_context>
chip_gen: v5e
topology: v5e:2x2
jax: 0.10.0
libtpu: 0.0.40
codegen_flags: <defaults>
</compile_context>

<pallas_src>
import functools

import jax
import jax.numpy as jnp
from jax.experimental import pallas as pl
from jax.experimental.pallas import tpu as pltpu

EPS = 1e-5
C_MID = 64  # hidden channels of the 3x3 conv


def _round_up(x, m):
    return (x + m - 1) // m * m


def sal_head_kernel(x_ref, w1_ref, b1_ref, w2_ref, b2_ref, o_ref, *,
                    tm, guard, tap_offsets):
    # x_ref : (n_in, C)   whole padded+flattened image (constant index_map ->
    #                     fetched from HBM once; ~9x less input traffic than im2col)
    # w1_ref: (9, C, 64)  conv1 weight with BatchNorm folded in (per-tap slices)
    # b1_ref: (1, 64)     folded conv1 + BN bias (f32)
    # w2_ref: (1, 64)     1x1 conv weight as a row (f32)
    # b2_ref: (1, 1)      conv2 bias (f32)
    # o_ref : (tm, 1)     per-pixel saliency for this row tile
    i = pl.program_id(0)
    base = pl.multiple_of(i * tm, 128)

    # One aligned dynamic load of this tile's rows plus a +/- guard halo.
    window = x_ref[pl.ds(base, tm + 2 * guard), :]

    acc = jnp.zeros((tm, C_MID), jnp.float32)
    for t, off in enumerate(tap_offsets):      # static 3x3 taps
        g0 = guard + off                       # static offset in [0, 2*guard]
        tap = window[g0:g0 + tm, :].astype(w1_ref.dtype)
        acc = acc + jnp.dot(tap, w1_ref[t], preferred_element_type=jnp.float32)

    h = jnp.maximum(acc + b1_ref[...], 0.0)    # folded bias + ReLU, f32 epilogue
    # 1x1 conv to one channel: VPU multiply + lane reduction (no N=1 MXU matmul).
    y = jnp.sum(h * w2_ref[...], axis=-1, keepdims=True) + b2_ref[...]
    o_ref[...] = y.astype(o_ref.dtype)


def sal_head_forward(x_nchw, params, *, tm=512, mxu_dtype=jnp.bfloat16):
    """x_nchw: (B, C, H, W) float32 -> (B, 1, H, W) float32."""
    B, C, H, W = x_nchw.shape
    Hp, Wp = H + 2, W + 2
    Mp = B * Hp * Wp                      # all padded-grid positions
    guard = Wp + 1                        # max |tap row offset|

    # Big tiles amortize per-step overhead; clamp so the grid keeps >= 2
    # "parallel" steps (two TensorCores on v7x / megacore on v5e-v6e).
    tm = max(128, min(int(tm), _round_up(-(-Mp // 2), 128)))
    M_rows = _round_up(Mp, tm)
    n_in = M_rows + 2 * guard
    grid = M_rows // tm

    # --- fold BatchNorm (eval) + conv1 bias into the conv1 weight/bias ------
    scale = params["gamma"] * jax.lax.rsqrt(params["var"] + EPS)        # (1,64)
    w1_fold = (params["w1r"] * scale).reshape(9, C, C_MID).astype(mxu_dtype)
    b1_fold = (params["b1"] - params["mean"]) * scale + params["beta"]  # (1,64)
    w2_row = params["w2"].reshape(1, C_MID).astype(jnp.float32)         # (1,64)
    b2 = params["b2"].astype(jnp.float32)                               # (1,1)

    # --- layout glue: NCHW -> padded NHWC -> flat (rows, C) + guard rows ----
    x = jnp.transpose(x_nchw, (0, 2, 3, 1))                    # NHWC
    xp = jnp.pad(x, ((0, 0), (1, 1), (1, 1), (0, 0)))          # zero pad=1
    flat = xp.reshape(Mp, C).astype(jnp.float32)
    flat = jnp.pad(flat, ((guard, M_rows - Mp + guard), (0, 0)))

    # 3x3 taps of output row p live at rows p + (dy-1)*Wp + (dx-1) of `flat`.
    tap_offsets = tuple((dy - 1) * Wp + (dx - 1)
                        for dy in range(3) for dx in range(3))

    kern = functools.partial(sal_head_kernel, tm=tm, guard=guard,
                             tap_offsets=tap_offsets)

    full = lambda shape: pl.BlockSpec(shape, lambda i, _s=None: (0,) * len(shape))

    w_bytes = w1_fold.size * w1_fold.dtype.itemsize + (3 * C_MID + 1) * 4
    cost = pl.CostEstimate(
        flops=2 * M_rows * 9 * C * C_MID + 2 * M_rows * C_MID,
        transcendentals=0,
        bytes_accessed=n_in * C * 4 + w_bytes + M_rows * 4)

    out = pl.pallas_call(
        kern,
        out_shape=jax.ShapeDtypeStruct((M_rows, 1), jnp.float32),
        grid_spec=pltpu.PrefetchScalarGridSpec(
            num_scalar_prefetch=0,
            grid=(grid,),
            in_specs=[
                pl.BlockSpec((n_in, C), lambda i: (0, 0)),      # whole image, 1 fetch
                pl.BlockSpec((9, C, C_MID), lambda i: (0, 0, 0)),
                pl.BlockSpec((1, C_MID), lambda i: (0, 0)),
                pl.BlockSpec((1, C_MID), lambda i: (0, 0)),
                pl.BlockSpec((1, 1), lambda i: (0, 0)),
            ],
            out_specs=pl.BlockSpec((tm, 1), lambda i: (i, 0)),
        ),
        compiler_params=pltpu.CompilerParams(
            dimension_semantics=("parallel",),
            vmem_limit_bytes=32 * 1024 * 1024),
        cost_estimate=cost,
    )(flat, w1_fold, b1_fold, w2_row, b2)

    # Keep only interior (non-padding) pixels, back to NCHW.
    y = out[:Mp, 0].reshape(B, Hp, Wp)[:, 1:H + 1, 1:W + 1]
    return y[:, None, :, :]


def init_params(key, channel):
    """Deterministic synthetic parameters (shapes from Sal_Head.__init__)."""
    ks = jax.random.split(key, 8)
    # conv1: PyTorch weight layout (out=64, in=C, kh=3, kw=3)
    w1 = jax.random.normal(ks[0], (64, channel, 3, 3), jnp.float32) * 0.1
    b1 = jax.random.normal(ks[1], (64,), jnp.float32) * 0.1
    # reorder to (kh, kw, in, out) then flatten -> matches tap/channel order
    w1r = jnp.transpose(w1, (2, 3, 1, 0)).reshape(9 * channel, 64)
    # BatchNorm2d(64), eval statistics
    gamma = 0.5 + jax.random.uniform(ks[2], (64,), jnp.float32)
    beta = jax.random.normal(ks[3], (64,), jnp.float32) * 0.1
    mean = jax.random.normal(ks[4], (64,), jnp.float32) * 0.1
    var = 0.5 + jax.random.uniform(ks[5], (64,), jnp.float32)
    # conv2: (out=1, in=64, 1, 1)
    w2 = jax.random.normal(ks[6], (1, 64, 1, 1), jnp.float32) * 0.1
    b2 = jax.random.normal(ks[7], (1,), jnp.float32) * 0.1
    return {
        "w1r": w1r,
        "b1": b1.reshape(1, 64),
        "gamma": gamma.reshape(1, 64),
        "beta": beta.reshape(1, 64),
        "mean": mean.reshape(1, 64),
        "var": var.reshape(1, 64),
        "w2": jnp.transpose(w2.reshape(1, 64), (1, 0)),  # (64, 1)
        "b2": b2.reshape(1, 1),
    }


def sal_head_reference(x_nchw, params):
    """Pure-JAX reference (same math, XLA conv) for correctness checking."""
    B, C, H, W = x_nchw.shape
    w_hwio = params["w1r"].reshape(3, 3, C, 64)
    y = jax.lax.conv_general_dilated(
        jnp.transpose(x_nchw, (0, 2, 3, 1)), w_hwio,
        window_strides=(1, 1), padding=((1, 1), (1, 1)),
        dimension_numbers=("NHWC", "HWIO", "NHWC"))
    y = y + params["b1"].reshape(1, 1, 1, 64)
    inv_std = jax.lax.rsqrt(params["var"] + EPS)
    y = (y - params["mean"]) * inv_std * params["gamma"] + params["beta"]
    y = jnp.maximum(y, 0.0)
    y = jnp.einsum("bhwc,co->bhwo", y, params["w2"]) + params["b2"].reshape(1, 1, 1, 1)
    return jnp.transpose(y, (0, 3, 1, 2))


if __name__ == "__main__":
    B, C, H, W = 2, 4, 16, 16
    key = jax.random.PRNGKey(0)
    k_x, k_p = jax.random.split(key)
    x = jax.random.normal(k_x, (B, C, H, W), jnp.float32)
    params = init_params(k_p, C)

    y_ref = sal_head_reference(x, params)

    # 1) exactness check with f32 MXU operands (tight tolerance).
    fwd_f32 = jax.jit(functools.partial(sal_head_forward, mxu_dtype=jnp.float32))
    y32 = fwd_f32(x, params)
    jax.block_until_ready(y32)
    assert y32.shape == (B, 1, H, W), y32.shape
    assert jnp.allclose(y32, y_ref, rtol=1e-4, atol=1e-4), "f32 mismatch vs reference"

    # 2) default path: bf16 MXU operands, f32 accumulate/epilogue (loose tolerance).
    fwd = jax.jit(sal_head_forward)
    y = fwd(x, params)
    jax.block_until_ready(y)
    assert y.shape == (B, 1, H, W), y.shape
    assert jnp.allclose(y, y_ref, rtol=1e-1, atol=1e-1), "bf16 mismatch vs reference"

    print("KERNEL_OK")
</pallas_src>

<mosaic_0001>
module attributes {stable_mosaic.version = 11 : i64} {
  func.func @sal_head_kernel(%arg0: i32, %arg1: memref<806x4xf32, #tpu.memory_space<vmem>>, %arg2: memref<9x4x64xf32, #tpu.memory_space<vmem>>, %arg3: memref<1x64xf32, #tpu.memory_space<vmem>>, %arg4: memref<1x64xf32, #tpu.memory_space<vmem>>, %arg5: memref<1x1xf32, #tpu.memory_space<vmem>>, %arg6: memref<384x1xf32, #tpu.memory_space<vmem>>) attributes {dimension_semantics = [#tpu.dimension_semantics<parallel>], iteration_bounds = array<i64: 2>, scalar_prefetch = 0 : i64, scratch_operands = 0 : i64, tpu.core_type = #tpu.core_type<tc>, window_params = [{pipeline_mode = #tpu.pipeline_mode<synchronous>, transform_indices = @transform_0, window_bounds = array<i64: 806, 4>}, {pipeline_mode = #tpu.pipeline_mode<synchronous>, transform_indices = @transform_1, window_bounds = array<i64: 9, 4, 64>}, {pipeline_mode = #tpu.pipeline_mode<synchronous>, transform_indices = @transform_2, window_bounds = array<i64: 1, 64>}, {pipeline_mode = #tpu.pipeline_mode<synchronous>, transform_indices = @transform_3, window_bounds = array<i64: 1, 64>}, {pipeline_mode = #tpu.pipeline_mode<synchronous>, transform_indices = @transform_4, window_bounds = array<i64: 1, 1>}, {transform_indices = @transform_5, window_bounds = array<i64: 384, 1>}]} {
    %c384_i32 = arith.constant 384 : i32
    %0 = arith.muli %arg0, %c384_i32 : i32
    %1 = tpu.assume_multiple %0, 128 : i32
    %2 = arith.index_cast %1 : i32 to index
    %c0 = arith.constant 0 : index
    %3 = vector.load %arg1[%2, %c0] : memref<806x4xf32, #tpu.memory_space<vmem>>, vector<422x4xf32>
    %cst = arith.constant 0.000000e+00 : f32
    %4 = vector.broadcast %cst : f32 to vector<384x64xf32>
    %5 = vector.extract_strided_slice %3 {offsets = [0, 0], sizes = [384, 4], strides = [1, 1]} : vector<422x4xf32> to vector<384x4xf32>
    %c0_0 = arith.constant 0 : index
    %c0_1 = arith.constant 0 : index
    %c0_2 = arith.constant 0 : index
    %6 = vector.load %arg2[%c0_0, %c0_1, %c0_2] : memref<9x4x64xf32, #tpu.memory_space<vmem>>, vector<1x4x64xf32>
    %7 = vector.shape_cast %6 : vector<1x4x64xf32> to vector<4x64xf32>
    %cst_3 = arith.constant dense<0.000000e+00> : vector<384x64xf32>
    %8 = tpu.matmul %5, %7, %cst_3 {dimension_numbers = #tpu.dot_dimension_numbers<[1], [0], [0], [1], [0, 0, 1, 1], [], []>} : vector<384x4xf32>, vector<4x64xf32>, vector<384x64xf32> -> vector<384x64xf32>
    %9 = arith.addf %4, %8 : vector<384x64xf32>
    %10 = vector.extract_strided_slice %3 {offsets = [1, 0], sizes = [384, 4], strides = [1, 1]} : vector<422x4xf32> to vector<384x4xf32>
    %c1 = arith.constant 1 : index
    %c0_4 = arith.constant 0 : index
    %c0_5 = arith.constant 0 : index
    %11 = vector.load %arg2[%c1, %c0_4, %c0_5] : memref<9x4x64xf32, #tpu.memory_space<vmem>>, vector<1x4x64xf32>
    %12 = vector.shape_cast %11 : vector<1x4x64xf32> to vector<4x64xf32>
    %cst_6 = arith.constant dense<0.000000e+00> : vector<384x64xf32>
    %13 = tpu.matmul %10, %12, %cst_6 {dimension_numbers = #tpu.dot_dimension_numbers<[1], [0], [0], [1], [0, 0, 1, 1], [], []>} : vector<384x4xf32>, vector<4x64xf32>, vector<384x64xf32> -> vector<384x64xf32>
    %14 = arith.addf %9, %13 : vector<384x64xf32>
    %15 = vector.extract_strided_slice %3 {offsets = [2, 0], sizes = [384, 4], strides = [1, 1]} : vector<422x4xf32> to vector<384x4xf32>
    %c2 = arith.constant 2 : index
    %c0_7 = arith.constant 0 : index
    %c0_8 = arith.constant 0 : index
    %16 = vector.load %arg2[%c2, %c0_7, %c0_8] : memref<9x4x64xf32, #tpu.memory_space<vmem>>, vector<1x4x64xf32>
    %17 = vector.shape_cast %16 : vector<1x4x64xf32> to vector<4x64xf32>
    %cst_9 = arith.constant dense<0.000000e+00> : vector<384x64xf32>
    %18 = tpu.matmul %15, %17, %cst_9 {dimension_numbers = #tpu.dot_dimension_numbers<[1], [0], [0], [1], [0, 0, 1, 1], [], []>} : vector<384x4xf32>, vector<4x64xf32>, vector<384x64xf32> -> vector<384x64xf32>
    %19 = arith.addf %14, %18 : vector<384x64xf32>
    %20 = vector.extract_strided_slice %3 {offsets = [18, 0], sizes = [384, 4], strides = [1, 1]} : vector<422x4xf32> to vector<384x4xf32>
    %c3 = arith.constant 3 : index
    %c0_10 = arith.constant 0 : index
    %c0_11 = arith.constant 0 : index
    %21 = vector.load %arg2[%c3, %c0_10, %c0_11] : memref<9x4x64xf32, #tpu.memory_space<vmem>>, vector<1x4x64xf32>
    %22 = vector.shape_cast %21 : vector<1x4x64xf32> to vector<4x64xf32>
    %cst_12 = arith.constant dense<0.000000e+00> : vector<384x64xf32>
    %23 = tpu.matmul %20, %22, %cst_12 {dimension_numbers = #tpu.dot_dimension_numbers<[1], [0], [0], [1], [0, 0, 1, 1], [], []>} : vector<384x4xf32>, vector<4x64xf32>, vector<384x64xf32> -> vector<384x64xf32>
    %24 = arith.addf %19, %23 : vector<384x64xf32>
    %25 = vector.extract_strided_slice %3 {offsets = [19, 0], sizes = [384, 4], strides = [1, 1]} : vector<422x4xf32> to vector<384x4xf32>
    %c4 = arith.constant 4 : index
    %c0_13 = arith.constant 0 : index
    %c0_14 = arith.constant 0 : index
    %26 = vector.load %arg2[%c4, %c0_13, %c0_14] : memref<9x4x64xf32, #tpu.memory_space<vmem>>, vector<1x4x64xf32>
    %27 = vector.shape_cast %26 : vector<1x4x64xf32> to vector<4x64xf32>
    %cst_15 = arith.constant dense<0.000000e+00> : vector<384x64xf32>
    %28 = tpu.matmul %25, %27, %cst_15 {dimension_numbers = #tpu.dot_dimension_numbers<[1], [0], [0], [1], [0, 0, 1, 1], [], []>} : vector<384x4xf32>, vector<4x64xf32>, vector<384x64xf32> -> vector<384x64xf32>
    %29 = arith.addf %24, %28 : vector<384x64xf32>
    %30 = vector.extract_strided_slice %3 {offsets = [20, 0], sizes = [384, 4], strides = [1, 1]} : vector<422x4xf32> to vector<384x4xf32>
    %c5 = arith.constant 5 : index
    %c0_16 = arith.constant 0 : index
    %c0_17 = arith.constant 0 : index
    %31 = vector.load %arg2[%c5, %c0_16, %c0_17] : memref<9x4x64xf32, #tpu.memory_space<vmem>>, vector<1x4x64xf32>
    %32 = vector.shape_cast %31 : vector<1x4x64xf32> to vector<4x64xf32>
    %cst_18 = arith.constant dense<0.000000e+00> : vector<384x64xf32>
    %33 = tpu.matmul %30, %32, %cst_18 {dimension_numbers = #tpu.dot_dimension_numbers<[1], [0], [0], [1], [0, 0, 1, 1], [], []>} : vector<384x4xf32>, vector<4x64xf32>, vector<384x64xf32> -> vector<384x64xf32>
    %34 = arith.addf %29, %33 : vector<384x64xf32>
    %35 = vector.extract_strided_slice %3 {offsets = [36, 0], sizes = [384, 4], strides = [1, 1]} : vector<422x4xf32> to vector<384x4xf32>
    %c6 = arith.constant 6 : index
    %c0_19 = arith.constant 0 : index
    %c0_20 = arith.constant 0 : index
    %36 = vector.load %arg2[%c6, %c0_19, %c0_20] : memref<9x4x64xf32, #tpu.memory_space<vmem>>, vector<1x4x64xf32>
    %37 = vector.shape_cast %36 : vector<1x4x64xf32> to vector<4x64xf32>
    %cst_21 = arith.constant dense<0.000000e+00> : vector<384x64xf32>
    %38 = tpu.matmul %35, %37, %cst_21 {dimension_numbers = #tpu.dot_dimension_numbers<[1], [0], [0], [1], [0, 0, 1, 1], [], []>} : vector<384x4xf32>, vector<4x64xf32>, vector<384x64xf32> -> vector<384x64xf32>
    %39 = arith.addf %34, %38 : vector<384x64xf32>
    %40 = vector.extract_strided_slice %3 {offsets = [37, 0], sizes = [384, 4], strides = [1, 1]} : vector<422x4xf32> to vector<384x4xf32>
    %c7 = arith.constant 7 : index
    %c0_22 = arith.constant 0 : index
    %c0_23 = arith.constant 0 : index
    %41 = vector.load %arg2[%c7, %c0_22, %c0_23] : memref<9x4x64xf32, #tpu.memory_space<vmem>>, vector<1x4x64xf32>
    %42 = vector.shape_cast %41 : vector<1x4x64xf32> to vector<4x64xf32>
    %cst_24 = arith.constant dense<0.000000e+00> : vector<384x64xf32>
    %43 = tpu.matmul %40, %42, %cst_24 {dimension_numbers = #tpu.dot_dimension_numbers<[1], [0], [0], [1], [0, 0, 1, 1], [], []>} : vector<384x4xf32>, vector<4x64xf32>, vector<384x64xf32> -> vector<384x64xf32>
    %44 = arith.addf %39, %43 : vector<384x64xf32>
    %45 = vector.extract_strided_slice %3 {offsets = [38, 0], sizes = [384, 4], strides = [1, 1]} : vector<422x4xf32> to vector<384x4xf32>
    %c8 = arith.constant 8 : index
    %c0_25 = arith.constant 0 : index
    %c0_26 = arith.constant 0 : index
    %46 = vector.load %arg2[%c8, %c0_25, %c0_26] : memref<9x4x64xf32, #tpu.memory_space<vmem>>, vector<1x4x64xf32>
    %47 = vector.shape_cast %46 : vector<1x4x64xf32> to vector<4x64xf32>
    %cst_27 = arith.constant dense<0.000000e+00> : vector<384x64xf32>
    %48 = tpu.matmul %45, %47, %cst_27 {dimension_numbers = #tpu.dot_dimension_numbers<[1], [0], [0], [1], [0, 0, 1, 1], [], []>} : vector<384x4xf32>, vector<4x64xf32>, vector<384x64xf32> -> vector<384x64xf32>
    %49 = arith.addf %44, %48 : vector<384x64xf32>
    %c0_28 = arith.constant 0 : index
    %c0_29 = arith.constant 0 : index
    %50 = vector.load %arg3[%c0_28, %c0_29] : memref<1x64xf32, #tpu.memory_space<vmem>>, vector<1x64xf32>
    %51 = vector.broadcast %50 : vector<1x64xf32> to vector<384x64xf32>
    %52 = arith.addf %49, %51 : vector<384x64xf32>
    %cst_30 = arith.constant 0.000000e+00 : f32
    %53 = vector.broadcast %cst_30 : f32 to vector<384x64xf32>
    %54 = arith.maximumf %52, %53 : vector<384x64xf32>
    %c0_31 = arith.constant 0 : index
    %c0_32 = arith.constant 0 : index
    %55 = vector.load %arg4[%c0_31, %c0_32] : memref<1x64xf32, #tpu.memory_space<vmem>>, vector<1x64xf32>
    %56 = vector.broadcast %55 : vector<1x64xf32> to vector<384x64xf32>
    %57 = arith.mulf %54, %56 : vector<384x64xf32>
    %cst_33 = arith.constant dense<0.000000e+00> : vector<384xf32>
    %58 = vector.multi_reduction <add>, %57, %cst_33 [1] : vector<384x64xf32> to vector<384xf32>
    %59 = vector.shape_cast %58 : vector<384xf32> to vector<384x1xf32>
    %c0_34 = arith.constant 0 : index
    %c0_35 = arith.constant 0 : index
    %60 = vector.load %arg5[%c0_34, %c0_35] : memref<1x1xf32, #tpu.memory_space<vmem>>, vector<1x1xf32>
    %61 = vector.broadcast %60 : vector<1x1xf32> to vector<384x1xf32>
    %62 = arith.addf %59, %61 : vector<384x1xf32>
    %c0_36 = arith.constant 0 : index
    %c0_37 = arith.constant 0 : index
    %63 = vector.load %arg6[%c0_36, %c0_37] : memref<384x1xf32, #tpu.memory_space<vmem>>, vector<384x1xf32>
    tpu.vector_store %arg6[%c0_36, %c0_37], %62 {strides = array<i32>} : memref<384x1xf32, #tpu.memory_space<vmem>>, vector<384x1xf32>,
    return
  }
  func.func @transform_0(%arg0: i32) -> (i32, i32) {
    %c0_i32 = arith.constant 0 : i32
    %c0_i32_0 = arith.constant 0 : i32
    %c0_i32_1 = arith.constant 0 : i32
    return %c0_i32, %c0_i32_0 : i32, i32
  }
  func.func @transform_1(%arg0: i32) -> (i32, i32, i32) {
    %c0_i32 = arith.constant 0 : i32
    %c0_i32_0 = arith.constant 0 : i32
    %c0_i32_1 = arith.constant 0 : i32
    %c0_i32_2 = arith.constant 0 : i32
    return %c0_i32, %c0_i32_0, %c0_i32_1 : i32, i32, i32
  }
  func.func @transform_2(%arg0: i32) -> (i32, i32) {
    %c0_i32 = arith.constant 0 : i32
    %c0_i32_0 = arith.constant 0 : i32
    %c0_i32_1 = arith.constant 0 : i32
    return %c0_i32, %c0_i32_0 : i32, i32
  }
  func.func @transform_3(%arg0: i32) -> (i32, i32) {
    %c0_i32 = arith.constant 0 : i32
    %c0_i32_0 = arith.constant 0 : i32
    %c0_i32_1 = arith.constant 0 : i32
    return %c0_i32, %c0_i32_0 : i32, i32
  }
  func.func @transform_4(%arg0: i32) -> (i32, i32) {
    %c0_i32 = arith.constant 0 : i32
    %c0_i32_0 = arith.constant 0 : i32
    %c0_i32_1 = arith.constant 0 : i32
    return %c0_i32, %c0_i32_0 : i32, i32
  }
  func.func @transform_5(%arg0: i32) -> (i32, i32) {
    %c0_i32 = arith.constant 0 : i32
    %c0_i32_0 = arith.constant 0 : i32
    return %arg0, %c0_i32 : i32, i32
  }
}

</mosaic_0001>

<bundles_post_ra>
// kernel: squeeze.1
= control target key start
LH: loop header
LB: loop body
LE: loop exit
PB: predicated region body
PF: predicated region fallthrough
CT: control target
= control target key end

     0   :  { %s386_s10 = smov 114   ;;  %s387_s11 = smov 118   ;;  %vm213_vm0 = vcmask 965632   ;;  %vm227_vm1 = vcmask 982016   ;;  %vm255_vm2 = vcmask 1014784   ;;  %vm241_vm3 = vcmask 998400   ;;  %s708_s0 = inlined_call_operand.vmem [shape: f32[648], index: 0, kind: input, shape index: {}]   ;;  %s709_s1 = inlined_call_operand.vmem [shape: f32[2,18,18], index: 1, kind: output, shape index: {}]  }
   0x1   :  { %v282_v0 = vld [vmem:[%s708_s0 + $0x2] sm:$0x1]   ;;  %v278_v1 = vld [vmem:[%s708_s0 + $0x4] sm:$0x1]   ;;  %v33_v2 = vld [vmem:[%s708_s0] sm:$0x1]  }
   0x2   :  { %21 = vrot.lane.b32.xlu1 %v282_v0, %s386_s10  ;;  %7 = vrot.lane.b32.xlu0 %v278_v1, %s387_s11  ;;  %s388_s14 = smov 110   ;;  %v284_v3 = vld [vmem:[%s708_s0 + $0x1] sm:$0x1]   ;;  %v280_v4 = vld [vmem:[%s708_s0 + $0x3] sm:$0x1]   ;;  %s389_s19 = smov 112  }
   0x3   :  { %34 = vrot.lane.b32.xlu2 %v33_v2, %s388_s14  ;;  %s390_s20 = smov 116   ;;  %v287_v5 = vld [vmem:[%s708_s0 + $0x4] sm:$0x1]   ;;  %s391_s23 = smov 100   ;;  %v291_v6 = vld [vmem:[%s708_s0 + $0x2] sm:$0x1]  }
   0x4   :  { %v289_v7 = vld [vmem:[%s708_s0 + $0x3] sm:$0x1]   ;;  %s392_s28 = smov 96   ;;  %s393_s29 = smov 98   ;;  %v293_v8 = vld [vmem:[%s708_s0 + $0x1] sm:$0x1]  }
   0x5   :  { %s394_s3 = smov 94   ;;  %v296_v9 = vld [vmem:[%s708_s0 + $0x4] sm:$0x1]   ;;  %v67_v10 = vld [vmem:[%s708_s0] sm:$0x1]   ;;  %s395_s8 = smov 82  }
   0x6   :  { %s396_s9 = smov 92   ;;  %v298_v11 = vld [vmem:[%s708_s0 + $0x3] sm:$0x1]   ;;  %s397_s12 = smov 80   ;;  %v302_v12 = vld [vmem:[%s708_s0 + $0x1] sm:$0x1]  }
   0x7   :  { %v300_v13 = vld [vmem:[%s708_s0 + $0x2] sm:$0x1]   ;;  %s398_s17 = smov 76   ;;  %s399_s18 = smov 78   ;;  %v101_v14 = vld [vmem:[%s708_s0] sm:$0x1]  }
   0x8   :  { %s400_s21 = smov 74   ;;  %v307_v15 = vld [vmem:[%s708_s0 + $0x3] sm:$0x1]   ;;  %v305_v16 = vld [vmem:[%s708_s0 + $0x4] sm:$0x1]   ;;  %s401_s26 = smov 62  }
   0x9   :  { %s402_s27 = smov 64   ;;  %v309_v17 = vld [vmem:[%s708_s0 + $0x2] sm:$0x1]   ;;  %s403_s30 = smov 60   ;;  %v135_v18 = vld [vmem:[%s708_s0] sm:$0x1]  }
   0xa   :  { %28 = vrot.lane.b32.xlu1 %v284_v3, %s389_s19  ;;  %14 = vrot.lane.b32.xlu0 %v280_v4, %s390_s20  ;;  %v311_v19 = vld [vmem:[%s708_s0 + $0x1] sm:$0x1]   ;;  %s404_s6 = smov 56   ;;  %s405_s7 = smov 58   ;;  %v314_v20 = vld [vmem:[%s708_s0 + $0x4] sm:$0x1]  }
   0xb   :  { %41 = vrot.lane.b32.xlu2 %v287_v5, %s391_s23  ;;  %v332_v21 = vld [vmem:[%s708_s0 + $0x4] sm:$0x1]   ;;  %v333_v22 = vld [vmem:[%s708_s0 + $0x5] sm:$0x1]   ;;  %s406_s14 = smov 46   ;;  %s408_s22 = smov 44  }
   0xc   :  { %v214_v23 = vsel %vm213_vm0, %v333_v22, %v332_v21  ;;  %v316_v24 = vld [vmem:[%s708_s0 + $0x3] sm:$0x1]   ;;  %v337_v26 = vld [vmem:[%s708_s0 + $0x4] sm:$0x1]   ;;  %v344_v27 = vld [vmem:[%s708_s0 + $0x1] sm:$0x1]  }
   0xd   :  { %v336_v25 = vld [vmem:[%s708_s0 + $0x3] sm:$0x1]   ;;  %v345_v28 = vld [vmem:[%s708_s0 + $0x2] sm:$0x1]   ;;  %s409_s2 = smov 8   ;;  %vm268_vm4 = vcmask 1031168  }
   0xe   :  { %v228_v29 = vsel %vm227_vm1, %v337_v26, %v336_v25  ;;  %v340_v30 = vld [vmem:[%s708_s0 + $0x2] sm:$0x1]   ;;  %v341_v31 = vld [vmem:[%s708_s0 + $0x3] sm:$0x1]   ;;  %v256_v32 = vsel %vm255_vm2, %v345_v28, %v344_v27  ;;  %v265_v34 = vld [vmem:[%s708_s0] sm:$0x1]  }
   0xf   :  { %v242_v33 = vsel %vm241_vm3, %v341_v31, %v340_v30  ;;  %v348_v35 = vld [vmem:[%s708_s0 + $0x1] sm:$0x1]   ;;  %v318_v38 = vld [vmem:[%s708_s0 + $0x2] sm:$0x1]   ;;  %s414_s15 = smov 42   ;;  %s416_s23 = smov 26  }
  0x10   :  { %v269_v36 = vsel %vm268_vm4, %v348_v35, %v265_v34  ;;  %v320_v37 = vld [vmem:[%s708_s0 + $0x1] sm:$0x1]   ;;  %v169_v39 = vld [vmem:[%s708_s0] sm:$0x1]   ;;  %v325_v40 = vld [vmem:[%s708_s0 + $0x3] sm:$0x1]  }
  0x11   :  { %v323_v41 = vld [vmem:[%s708_s0 + $0x4] sm:$0x1]   ;;  %s417_s24 = smov 28   ;;  %v327_v42 = vld [vmem:[%s708_s0 + $0x2] sm:$0x1]   ;;  %s420_s4 = smov 22  }
  0x12   :  { %55 = vrot.lane.b32.xlu1 %v291_v6, %s392_s28  ;;  %48 = vrot.lane.b32.xlu0 %v289_v7, %s393_s29  ;;  %v203_v43 = vld [vmem:[%s708_s0] sm:$0x1]   ;;  %v329_v44 = vld [vmem:[%s708_s0 + $0x1] sm:$0x1]   ;;  %vm3_vm5 = vcmask 146432   ;;  %vm231_vm6 = vcmask 64512  }
  0x13   :  { %62 = vrot.lane.b32.xlu2 %v293_v8, %s394_s3  ;;  %s419_s3 = smov 20   ;;  %vm234_vm7 = vcmask 146496   ;;  %vm272_vm8 = vcmask 15360   ;;  %vm275_vm9 = vcmask 146448   ;;  %vm217_vm10 = vcmask 80896  }
  0x14   :  { %vm220_vm11 = vcmask 146512   ;;  %v2_v7 = vld [vmem:[%s708_s0] sm:$0x1]   ;;  %vm259_vm12 = vcmask 31744   ;;  %vm262_vm13 = vcmask 146464   ;;  %vm245_vm14 = vcmask 48128  }
  0x15   :  { %4 = vst.msk [vmem:[%s709_s1] sm:$0x1] %vm3_vm5, %v2_v7   ;;  %vm248_vm15 = vcmask 146480  }
  0x1a   :  { %75 = vrot.lane.b32.xlu1 %v296_v9, %s395_s8  ;;  %68 = vrot.lane.b32.xlu0 %v67_v10, %s396_s9  ;;  %s411_s8 = smov 6   ;;  %s412_s9 = smov 2  }
  0x1b   :  { %82 = vrot.lane.b32.xlu2 %v298_v11, %s397_s12 }
  0x22   :  { %96 = vrot.lane.b32.xlu1 %v302_v12, %s398_s17  ;;  %89 = vrot.lane.b32.xlu0 %v300_v13, %s399_s18  ;;  %s415_s18 = smov 38  }
  0x23   :  { %102 = vrot.lane.b32.xlu2 %v101_v14, %s400_s21  ;;  %s407_s21 = smov 10  }
  0x2a   :  { %116 = vrot.lane.b32.xlu1 %v307_v15, %s401_s26  ;;  %109 = vrot.lane.b32.xlu0 %v305_v16, %s402_s27  ;;  %s418_s27 = smov 24  }
  0x2b   :  { %123 = vrot.lane.b32.xlu2 %v309_v17, %s403_s30 }
  0x32   :  { %136 = vrot.lane.b32.xlu1 %v135_v18, %s404_s6  ;;  %130 = vrot.lane.b32.xlu0 %v311_v19, %s405_s7  ;;  %s410_s7 = smov 4  }
  0x33   :  { %143 = vrot.lane.b32.xlu2 %v314_v20, %s406_s14  ;;  %s413_s14 = smov 40  }
  0x3a   :  { %215 = vrot.lane.b32.xlu1 %v214_v23, %s407_s21  ;;  %150 = vrot.lane.b32.xlu0 %v316_v24, %s408_s22 }
  0x3b   :  { %229 = vrot.lane.b32.xlu2 %v228_v29, %s409_s2 }
  0x42   :  { %257 = vrot.lane.b32.xlu1 %v256_v32, %s410_s7  ;;  %243 = vrot.lane.b32.xlu0 %v242_v33, %s411_s8 }
  0x43   :  { %270 = vrot.lane.b32.xlu2 %v269_v36, %s412_s9 }
  0x4a   :  { %164 = vrot.lane.b32.xlu1 %v320_v37, %s413_s14  ;;  %157 = vrot.lane.b32.xlu0 %v318_v38, %s414_s15 }
  0x4b   :  { %170 = vrot.lane.b32.xlu2 %v169_v39, %s415_s18 }
  0x52   :  { %184 = vrot.lane.b32.xlu1 %v325_v40, %s416_s23  ;;  %177 = vrot.lane.b32.xlu0 %v323_v41, %s417_s24 }
  0x53   :  { %191 = vrot.lane.b32.xlu2 %v327_v42, %s418_s27 }
  0x5a   :  { %204 = vrot.lane.b32.xlu1 %v203_v43, %s419_s3  ;;  %198 = vrot.lane.b32.xlu0 %v329_v44, %s420_s4 }
  0x5d   :  { %v35_v45 = vpop.permute.xlu2 %34  }
  0x5e   :  { %286 = vst.msk [vmem:[%s709_s1 + $0x1] sm:$0x1] %vm3_vm5, %v35_v45  }
  0x65   :  { %v42_v46 = vpop.permute.xlu2 %41  }
  0x66   :  { %288 = vst.msk [vmem:[%s709_s1 + $0x24] sm:$0x1] %vm3_vm5, %v42_v46  }
  0x6d   :  { %v63_v47 = vpop.permute.xlu2 %62  }
  0x6e   :  { %294 = vst.msk [vmem:[%s709_s1 + $0x9] sm:$0x1] %vm3_vm5, %v63_v47  }
  0x74   :  { %v22_v48 = vpop.permute.xlu1 %21   ;;  %v8_v49 = vpop.permute.xlu0 %7  }
  0x75   :  { %283 = vst.msk [vmem:[%s709_s1 + $0xf] sm:$0x1] %vm3_vm5, %v22_v48   ;;  %v83_v50 = vpop.permute.xlu2 %82  }
  0x76   :  { %279 = vst.msk [vmem:[%s709_s1 + $0x23] sm:$0x1] %vm3_vm5, %v8_v49  }
  0x77   :  { %299 = vst.msk [vmem:[%s709_s1 + $0x1e] sm:$0x1] %vm3_vm5, %v83_v50  }
  0x7c   :  { %v29_v51 = vpop.permute.xlu1 %28   ;;  %v15_v52 = vpop.permute.xlu0 %14  }
  0x7d   :  { %285 = vst.msk [vmem:[%s709_s1 + $0x8] sm:$0x1] %vm3_vm5, %v29_v51   ;;  %v103_v53 = vpop.permute.xlu2 %102  }
  0x7e   :  { %281 = vst.msk [vmem:[%s709_s1 + $0x1c] sm:$0x1] %vm3_vm5, %v15_v52  }
  0x7f   :  { %304 = vst.msk [vmem:[%s709_s1 + $0x3] sm:$0x1] %vm3_vm5, %v103_v53  }
  0x84   :  { %v56_v54 = vpop.permute.xlu1 %55   ;;  %v49_v55 = vpop.permute.xlu0 %48  }
  0x85   :  { %292 = vst.msk [vmem:[%s709_s1 + $0x10] sm:$0x1] %vm3_vm5, %v56_v54   ;;  %v124_v56 = vpop.permute.xlu2 %123  }
  0x86   :  { %290 = vst.msk [vmem:[%s709_s1 + $0x1d] sm:$0x1] %vm3_vm5, %v49_v55  }
  0x87   :  { %310 = vst.msk [vmem:[%s709_s1 + $0x18] sm:$0x1] %vm3_vm5, %v124_v56  }
  0x8c   :  { %v76_v57 = vpop.permute.xlu1 %75   ;;  %v69_v58 = vpop.permute.xlu0 %68  }
  0x8d   :  { %297 = vst.msk [vmem:[%s709_s1 + $0x25] sm:$0x1] %vm3_vm5, %v76_v57   ;;  %v144_v59 = vpop.permute.xlu2 %143  }
  0x8e   :  { %295 = vst.msk [vmem:[%s709_s1 + $0x2] sm:$0x1] %vm3_vm5, %v69_v58  }
  0x8f   :  { %315 = vst.msk [vmem:[%s709_s1 + $0x27] sm:$0x1] %vm3_vm5, %v144_v59  }
  0x94   :  { %v97_v60 = vpop.permute.xlu1 %96   ;;  %v90_v61 = vpop.permute.xlu0 %89  }
  0x95   :  { %303 = vst.msk [vmem:[%s709_s1 + $0xa] sm:$0x1] %vm3_vm5, %v97_v60   ;;  %v230_v62 = vpop.permute.xlu2 %229  }
  0x96   :  { %301 = vst.msk [vmem:[%s709_s1 + $0x11] sm:$0x1] %vm3_vm5, %v90_v61  }
  0x97   :  { %338 = vst.msk [vmem:[%s709_s1 + $0x22] sm:$0x1] %vm231_vm6, %v230_v62  }
  0x98   :  { %339 = vst.msk [vmem:[%s709_s1 + $0x22] sm:$0x1] %vm234_vm7, %v230_v62  }
  0x9c   :  { %v117_v63 = vpop.permute.xlu1 %116   ;;  %v110_v0 = vpop.permute.xlu0 %109  }
  0x9d   :  { %308 = vst.msk [vmem:[%s709_s1 + $0x1f] sm:$0x1] %vm3_vm5, %v117_v63   ;;  %v271_v1 = vpop.permute.xlu2 %270  }
  0x9e   :  { %306 = vst.msk [vmem:[%s709_s1 + $0x26] sm:$0x1] %vm3_vm5, %v110_v0  }
  0x9f   :  { %349 = vst.msk [vmem:[%s709_s1 + $0x7] sm:$0x1] %vm272_vm8, %v271_v1  }
  0xa0   :  { %350 = vst.msk [vmem:[%s709_s1 + $0x7] sm:$0x1] %vm275_vm9, %v271_v1  }
  0xa4   :  { %v137_v2 = vpop.permute.xlu1 %136   ;;  %v131_v3 = vpop.permute.xlu0 %130  }
  0xa5   :  { %313 = vst.msk [vmem:[%s709_s1 + $0x4] sm:$0x1] %vm3_vm5, %v137_v2   ;;  %v171_v4 = vpop.permute.xlu2 %170  }
  0xa6   :  { %312 = vst.msk [vmem:[%s709_s1 + $0xb] sm:$0x1] %vm3_vm5, %v131_v3  }
  0xa7   :  { %322 = vst.msk [vmem:[%s709_s1 + $0x5] sm:$0x1] %vm3_vm5, %v171_v4  }
  0xac   :  { %v216_v5 = vpop.permute.xlu1 %215   ;;  %v151_v6 = vpop.permute.xlu0 %150  }
  0xad   :  { %334 = vst.msk [vmem:[%s709_s1 + $0x29] sm:$0x1] %vm217_vm10, %v216_v5   ;;  %v192_v8 = vpop.permute.xlu2 %191  }
  0xae   :  { %335 = vst.msk [vmem:[%s709_s1 + $0x29] sm:$0x1] %vm220_vm11, %v216_v5  }
  0xaf   :  { %317 = vst.msk [vmem:[%s709_s1 + $0x20] sm:$0x1] %vm3_vm5, %v151_v6  }
  0xb0   :  { %328 = vst.msk [vmem:[%s709_s1 + $0x1a] sm:$0x1] %vm3_vm5, %v192_v8  }
  0xb4   :  { %v258_v9 = vpop.permute.xlu1 %257   ;;  %v244_v10 = vpop.permute.xlu0 %243  }
  0xb5   :  { %346 = vst.msk [vmem:[%s709_s1 + $0xe] sm:$0x1] %vm259_vm12, %v258_v9  }
  0xb6   :  { %347 = vst.msk [vmem:[%s709_s1 + $0xe] sm:$0x1] %vm262_vm13, %v258_v9  }
  0xb7   :  { %342 = vst.msk [vmem:[%s709_s1 + $0x1b] sm:$0x1] %vm245_vm14, %v244_v10  }
  0xb8   :  { %343 = vst.msk [vmem:[%s709_s1 + $0x1b] sm:$0x1] %vm248_vm15, %v244_v10  }
  0xbc   :  { %v165_v11 = vpop.permute.xlu1 %164   ;;  %v158_v12 = vpop.permute.xlu0 %157  }
  0xbd   :  { %321 = vst.msk [vmem:[%s709_s1 + $0xc] sm:$0x1] %vm3_vm5, %v165_v11  }
  0xbe   :  { %319 = vst.msk [vmem:[%s709_s1 + $0x19] sm:$0x1] %vm3_vm5, %v158_v12  }
  0xc4   :  { %v185_v13 = vpop.permute.xlu1 %184   ;;  %v178_v14 = vpop.permute.xlu0 %177  }
  0xc5   :  { %326 = vst.msk [vmem:[%s709_s1 + $0x21] sm:$0x1] %vm3_vm5, %v185_v13  }
  0xc6   :  { %324 = vst.msk [vmem:[%s709_s1 + $0x28] sm:$0x1] %vm3_vm5, %v178_v14  }
  0xcc   :  { %v205_v15 = vpop.permute.xlu1 %204   ;;  %v199_v16 = vpop.permute.xlu0 %198  }
  0xcd   :  { %331 = vst.msk [vmem:[%s709_s1 + $0x6] sm:$0x1] %vm3_vm5, %v205_v15  }
  0xce   :  { %330 = vst.msk [vmem:[%s709_s1 + $0xd] sm:$0x1] %vm3_vm5, %v199_v16  }

// kernel: sal_head_forward.1
= control target key start
LH: loop header
LB: loop body
LE: loop exit
PB: predicated region body
PF: predicated region fallthrough
CT: control target
= control target key end

     0   :  { %s4454_s20 = smov 0   ;;  %s6215_s0 = inlined_call_operand.vmem [shape: f32[806,4], index: 0, kind: input, shape index: {}]   ;;  %s6216_s1 = inlined_call_operand.vmem [shape: f32[9,4,64], index: 1, kind: input, shape index: {}]   ;;  %s6217_s2 = inlined_call_operand.vmem [shape: f32[1,64], index: 2, kind: input, shape index: {}]   ;;  %s6218_s3 = inlined_call_operand.vmem [shape: f32[1,64], index: 3, kind: input, shape index: {}]   ;;  %s6219_s4 = inlined_call_operand.<no memory space> [shape: f32[1,1], index: 4, kind: input, shape index: {}]   ;;  %s6220_s5 = inlined_call_operand.vmem [shape: f32[768,1], index: 5, kind: output, shape index: {}]  }
   0x1   :  { %v10_v0 = vstv %s6219_s4 }
   0x2   :  { %11 = vst [vmem:[#allocation2] sm:$0x1] %v10_v0 }
   0x3 LB: > { %s3866_s21 = sadd.s32 4294967295, %s4419_s20   ;;  %p3869_p0 = scmp.ge.s32.totalorder %s4419_s20, 1  ;;  %s4419_s20 = sphi %s4454_s20, %s17_s20  }
   0x4   : > { %p179_p1 = scmp.lt.s32.totalorder %s4419_s20, 3 }
   0x6   : > { %p180_p2 = pnand %p3869_p0, %p179_p1 }
   0x8   : > { %183 = sbr.rel (%p180_p2) target bundleno = 1141 (0x475), region = 40 }
   0xd   : > { %v3871_v1 = vld [vmem:[%s6216_s1 + $0x4] sm:$0xf]  ;;  %vm510_vm0 = vcmask 1043456   ;;  %s208_s4 = smul.u32 384, %s3866_s21  ;;  %v3970_v2 = vld [vmem:[%s6216_s1 + $0x8] sm:$0xf] }
   0xe   : > { %4322 = vmatpush.msk.msra.mxu1 %vm510_vm0, %v3871_v1  ;;  %4323 = vmatpush.msk.msra.mxu2 %vm510_vm0, %v3871_v1  ;;  %v4020_v3 = vld [vmem:[%s6216_s1 + $0xc] sm:$0xf]  ;;  %v263_v4 = vld [vmem:[%s6216_s1] sm:$0xf]  ;;  %v4070_v5 = vld [vmem:[%s6216_s1 + $0x10] sm:$0xf] }
   0xf   : > { %s4481_s7 = scalar_lea.vmem %s6215_s0, %s208_s4  ;;  %4324 = vmatpush.msk.msra.mxu3 %vm510_vm0, %v3871_v1  ;;  %vm315_vm1 = vcmask 1046528   ;;  %vm413_vm2 = vcmask 31744   ;;  %3872 = vmatpush.msk.msra.mxu0 %vm510_vm0, %v3871_v1  ;;  %vm937_vm3 = vcmask 1045504   ;;  %vm1569_vm4 = vcmask 1044480   ;;  %s202_s4 = smul.u32 48, %s3866_s21 }
  0x10   : > { %3971 = vmatpush.msk.msrb.mxu2 %vm510_vm0, %v3970_v2  ;;  %v4489_v6 = vld [vmem:[%s4481_s7 + $0x60] sm:$0xff]  ;;  %v4492_v7 = vld [vmem:[%s4481_s7 + $0x68] sm:$0xff]  ;;  %3921 = vmatpush.msk.msrb.mxu1 %vm510_vm0, %v263_v4  ;;  %v4513_v18 = vld [vmem:[%s4481_s7 + $0x70] sm:$0xff]  ;;  %vm2608_vm5 = vcmask 1042432   ;;  %vm3016_vm6 = vcmask 1041408   ;;  %vm3574_vm7 = vcmask 523264  }
  0x11   : > { %v4495_v8 = vld [vmem:[%s4481_s7 + $0xc0] sm:$0xff]  ;;  %4021 = vmatpush.msk.msrb.mxu3 %vm510_vm0, %v4020_v3  ;;  %v339_v9 = vrot.slane %v4489_v6, 1  ;;  %v341_v10 = vrot.slane %v4492_v7, 1  ;;  %v4502_v11 = vld [vmem:[%s4481_s7 + $0xc8] sm:$0xff]  ;;  %4071 = vmatpush.msk.msrb.mxu0 %vm510_vm0, %v4070_v5  ;;  %v4523_v21 = vld [vmem:[%s4481_s7 + $0xd0] sm:$0xff]  ;;  %v343_v28 = vrot.slane %v4513_v18, 1 }
  0x12   : > { %v363_v12 = vrot.slane %v4495_v8, 1  ;;  %v4506_v13 = vld [vmem:[%s4481_s7 + $0x120] sm:$0xff]  ;;  %v247_v14 = vld [vmem:[%s4481_s7 + $0x128] sm:$0xff]  ;;  %v365_v15 = vrot.slane %v4502_v11, 1  ;;  %v248_v24 = vld [vmem:[%s4481_s7 + $0x130] sm:$0xff]  ;;  %v367_v30 = vrot.slane %v4523_v21, 1 }
  0x13   : > { %v387_v16 = vrot.slane %v4506_v13, 1  ;;  %v389_v17 = vrot.slane %v247_v14, 1  ;;  %v4516_v19 = vld [vmem:[%s4481_s7] sm:$0xff]  ;;  %v342_v20 = vsel %vm315_vm1, %v339_v9, %v341_v10  ;;  %v4526_v22 = vld [vmem:[%s4481_s7 + $0x8] sm:$0xff]  ;;  %v4542_v29 = vld [vmem:[%s4481_s7 + $0x10] sm:$0xff]  ;;  %v391_v32 = vrot.slane %v248_v24, 1 }
  0x14   : > { %v316_v23 = vrot.slane %v4516_v19, 1  ;;  %3885 = vmatmul.msk.f32.vlgmr.msra.gmra.mxu1 %vm413_vm2, %v342_v20  ;;  %v366_v25 = vsel %vm315_vm1, %v363_v12, %v365_v15  ;;  %v317_v27 = vrot.slane %v4526_v22, 1  ;;  %v319_v33 = vrot.slane %v4542_v29, 1  ;;  %v4552_v37 = vld [vmem:[%s4481_s7 + $0x78] sm:$0xff]  ;;  %v4573_v49 = vld [vmem:[%s4481_s7 + $0x80] sm:$0xff]  ;;  %v4594_v61 = vld [vmem:[%s4481_s7 + $0x88] sm:$0xff] }
  0x15   : > { %v390_v26 = vsel %vm315_vm1, %v387_v16, %v389_v17  ;;  %3897 = vmatmul.msk.f32.vlgmr.msra.gmra.mxu2 %vm413_vm2, %v366_v25  ;;  %v344_v34 = vsel %vm315_vm1, %v341_v10, %v343_v28  ;;  %v368_v35 = vsel %vm315_vm1, %v365_v15, %v367_v30  ;;  %v392_v36 = vsel %vm315_vm1, %v389_v17, %v391_v32  ;;  %v4555_v38 = vld [vmem:[%s4481_s7 + $0xd8] sm:$0xff]  ;;  %v4576_v50 = vld [vmem:[%s4481_s7 + $0xe0] sm:$0xff]  ;;  %v4597_v62 = vld [vmem:[%s4481_s7 + $0xe8] sm:$0xff]  ;;  %p203_p3 = scmp.lt.s32.totalorder %s202_s4, 95 }
  0x16   : > { %3909 = vmatmul.msk.f32.vlgmr.msra.gmra.mxu3 %vm413_vm2, %v390_v26  ;;  %v318_v31 = vsel %vm315_vm1, %v316_v23, %v317_v27  ;;  %v249_v39 = vld [vmem:[%s4481_s7 + $0x138] sm:$0xff]  ;;  %v320_v40 = vsel %vm315_vm1, %v317_v27, %v319_v33  ;;  %v345_v41 = vrot.slane %v4552_v37, 1  ;;  %v369_v43 = vrot.slane %v4555_v38, 1  ;;  %v250_v51 = vld [vmem:[%s4481_s7 + $0x140] sm:$0xff]  ;;  %v251_v63 = vld [vmem:[%s4481_s7 + $0x148] sm:$0xff] }
  0x17   : > { %3873 = vmatmul.msk.f32.vlgmr.msra.gmra.mxu0 %vm413_vm2, %v318_v31  ;;  %v4564_v42 = vld [vmem:[%s4481_s7 + $0x18] sm:$0xff]  ;;  %v393_v44 = vrot.slane %v249_v39, 1  ;;  %v347_v53 = vrot.slane %v4573_v49, 1  ;;  %v4585_v54 = vld [vmem:[%s4481_s7 + $0x20] sm:$0xff]  ;;  %v371_v55 = vrot.slane %v4576_v50, 1  ;;  %v395_v56 = vrot.slane %v250_v51, 1 }
  0x18   : > { %v321_v45 = vrot.slane %v4564_v42, 1  ;;  %v346_v46 = vsel %vm315_vm1, %v343_v28, %v345_v41  ;;  %v370_v47 = vsel %vm315_vm1, %v367_v30, %v369_v43  ;;  %v323_v57 = vrot.slane %v4585_v54, 1  ;;  %v4606_v2 = vld [vmem:[%s4481_s7 + $0x28] sm:$0xff]  ;;  %v4615_v17 = vld [vmem:[%s4481_s7 + $0x90] sm:$0xff]  ;;  %v4657_v51 = vld [vmem:[%s4481_s7 + $0xa0] sm:$0xff]  ;;  %s6282_s4 = smov (!%p203_p3, %s202_s4), 95 }
  0x19   : > { %v394_v48 = vsel %vm315_vm1, %v391_v32, %v393_v44  ;;  %v348_v58 = vsel %vm315_vm1, %v345_v41, %v347_v53  ;;  %v372_v59 = vsel %vm315_vm1, %v369_v43, %v371_v55  ;;  %v396_v60 = vsel %vm315_vm1, %v393_v44, %v395_v56  ;;  %v4618_v20 = vld [vmem:[%s4481_s7 + $0xf0] sm:$0xff]  ;;  %v4648_v41 = vld [vmem:[%s4481_s7 + $0x38] sm:$0xff]  ;;  %s3870_s21 = sshll.u32 %s6282_s4, 3 }
  0x1a   : > { %v322_v52 = vsel %vm315_vm1, %v319_v33, %v321_v45  ;;  %v324_v0 = vsel %vm315_vm1, %v321_v45, %v323_v57  ;;  %v349_v1 = vrot.slane %v4594_v61, 1  ;;  %v373_v3 = vrot.slane %v4597_v62, 1  ;;  %v252_v23 = vld [vmem:[%s4481_s7 + $0x150] sm:$0xff]  ;;  %s5805_s26 = scalar_lea.vmem %s6220_s5, %s3870_s21 }
  0x1b   : > { %v397_v4 = vrot.slane %v251_v63, 1  ;;  %v325_v5 = vrot.slane %v4606_v2, 1  ;;  %v351_v25 = vrot.slane %v4615_v17, 1  ;;  %v4627_v26 = vld [vmem:[%s4481_s7 + $0x30] sm:$0xff]  ;;  %v375_v27 = vrot.slane %v4618_v20, 1 }
  0x1c   : > { %3886 = vmatmul.msk.f32.gmra.mxu1 %vm413_vm2, %v344_v34  ;;  %v350_v10 = vsel %vm315_vm1, %v347_v53, %v349_v1  ;;  %v374_v14 = vsel %vm315_vm1, %v371_v55, %v373_v3  ;;  %v399_v28 = vrot.slane %v252_v23, 1  ;;  %v327_v30 = vrot.slane %v4627_v26, 1  ;;  %v4636_v34 = vld [vmem:[%s4481_s7 + $0x98] sm:$0xff]  ;;  %v254_v53 = vld [vmem:[%s4481_s7 + $0x160] sm:$0xff] }
  0x1d   : > { %3898 = vmatmul.msk.f32.gmra.mxu2 %vm413_vm2, %v368_v35  ;;  %v398_v15 = vsel %vm315_vm1, %v395_v56, %v397_v4  ;;  %v326_v24 = vsel %vm315_vm1, %v323_v57, %v325_v5  ;;  %v352_v31 = vsel %vm315_vm1, %v349_v1, %v351_v25  ;;  %v376_v32 = vsel %vm315_vm1, %v373_v3, %v375_v27  ;;  %v4639_v35 = vld [vmem:[%s4481_s7 + $0xf8] sm:$0xff]  ;;  %v4669_v57 = vld [vmem:[%s4481_s7 + $0x40] sm:$0xff]  ;;  %v4678_v3 = vld [vmem:[%s4481_s7 + $0xa8] sm:$0xff] }
  0x1e   : > { %3910 = vmatmul.msk.f32.gmra.mxu3 %vm413_vm2, %v392_v36  ;;  %v400_v33 = vsel %vm315_vm1, %v397_v4, %v399_v28  ;;  %v253_v36 = vld [vmem:[%s4481_s7 + $0x158] sm:$0xff]  ;;  %v328_v39 = vsel %vm315_vm1, %v325_v5, %v327_v30  ;;  %v377_v43 = vrot.slane %v4639_v35, 1  ;;  %v329_v45 = vrot.slane %v4648_v41, 1  ;;  %v4681_v4 = vld [vmem:[%s4481_s7 + $0x108] sm:$0xff] }
  0x1f   : > { %3874 = vmatmul.msk.f32.gmra.mxu0 %vm413_vm2, %v320_v40  ;;  %v353_v40 = vrot.slane %v4636_v34, 1  ;;  %v401_v44 = vrot.slane %v253_v36, 1  ;;  %v355_v56 = vrot.slane %v4657_v51, 1  ;;  %v255_v5 = vld [vmem:[%s4481_s7 + $0x168] sm:$0xff]  ;;  %v381_v23 = vrot.slane %v4681_v4, 1 }
  0x20   : > { %v330_v55 = vsel %vm315_vm1, %v327_v30, %v329_v45  ;;  %v941_v13 = vrot.slane %v4542_v29, 2  ;;  %vm3771_vm8 = vcmask 7168  }
  0x21   : > { %v356_v63 = vsel %vm315_vm1, %v353_v40, %v355_v56 }
  0x24   : > { %3887 = vmatmul.msk.f32.gmra.mxu1 %vm413_vm2, %v346_v46  ;;  %v354_v46 = vsel %vm315_vm1, %v351_v25, %v353_v40  ;;  %v4709_v40 = vld [vmem:[%s4481_s7 + $0x50] sm:$0xff] }
  0x25   : > { %3899 = vmatmul.msk.f32.gmra.mxu2 %vm413_vm2, %v370_v47  ;;  %v378_v47 = vsel %vm315_vm1, %v375_v27, %v377_v43 }
  0x26   : > { %3911 = vmatmul.msk.f32.gmra.mxu3 %vm413_vm2, %v394_v48  ;;  %v402_v48 = vsel %vm315_vm1, %v399_v28, %v401_v44  ;;  %v4697_v28 = vld [vmem:[%s4481_s7 + $0xb0] sm:$0xff] }
  0x27   : > { %3875 = vmatmul.msk.f32.gmra.mxu0 %vm413_vm2, %v322_v52  ;;  %v4660_v52 = vld [vmem:[%s4481_s7 + $0x100] sm:$0xff]  ;;  %v359_v36 = vrot.slane %v4697_v28, 1 }
  0x2c   : > { %3888 = vmatmul.msk.f32.gmra.mxu1 %vm413_vm2, %v348_v58  ;;  %v379_v58 = vrot.slane %v4660_v52, 1 }
  0x2d   : > { %3900 = vmatmul.msk.f32.gmra.mxu2 %vm413_vm2, %v372_v59  ;;  %v403_v59 = vrot.slane %v254_v53, 1 }
  0x2e   : > { %3912 = vmatmul.msk.f32.gmra.mxu3 %vm413_vm2, %v396_v60  ;;  %v331_v60 = vrot.slane %v4669_v57, 1  ;;  %v382_v30 = vsel %vm315_vm1, %v379_v58, %v381_v23 }
  0x2f   : > { %3876 = vmatmul.msk.f32.gmra.mxu0 %vm413_vm2, %v324_v0  ;;  %v380_v0 = vsel %vm315_vm1, %v377_v43, %v379_v58  ;;  %v404_v1 = vsel %vm315_vm1, %v401_v44, %v403_v59  ;;  %v4170_v43 = vld [vmem:[%s6216_s1 + $0x18] sm:$0xf]  ;;  %v4220_v44 = vld [vmem:[%s6216_s1 + $0x1c] sm:$0xf] }
  0x30   : > { %4171 = vmatpush.msk.msra.mxu2 %vm510_vm0, %v4170_v43  ;;  %4221 = vmatpush.msk.msra.mxu3 %vm510_vm0, %v4220_v44  ;;  %v4732_v58 = vld [vmem:[%s4481_s7 + $0xb8] sm:$0xff] }
  0x34   : > { %3889 = vmatmul.msk.f32.gmra.mxu1 %vm413_vm2, %v350_v10  ;;  %v332_v10 = vsel %vm315_vm1, %v329_v45, %v331_v60  ;;  %v4120_v45 = vld [vmem:[%s6216_s1 + $0x14] sm:$0xf] }
  0x35   : > { %3901 = vmatmul.msk.f32.gmra.mxu2 %vm413_vm2, %v374_v14  ;;  %v357_v14 = vrot.slane %v4678_v3, 1  ;;  %4121 = vmatpush.msk.msra.mxu1 %vm510_vm0, %v4120_v45  ;;  %v938_v45 = vrot.slane %v4516_v19, 2 }
  0x36   : > { %3913 = vmatmul.msk.f32.gmra.mxu3 %vm413_vm2, %v398_v15  ;;  %v4690_v15 = vld [vmem:[%s4481_s7 + $0x48] sm:$0xff] }
  0x37   : > { %3877 = vmatmul.msk.f32.gmra.mxu0 %vm413_vm2, %v326_v24  ;;  %v405_v24 = vrot.slane %v255_v5, 1  ;;  %v333_v25 = vrot.slane %v4690_v15, 1  ;;  %v358_v27 = vsel %vm315_vm1, %v355_v56, %v357_v14  ;;  %v360_v53 = vsel %vm315_vm1, %v357_v14, %v359_v36  ;;  %v4270_v5 = vld [vmem:[%s6216_s1 + $0x20] sm:$0xf] }
  0x38   : > { %4271 = vmatpush.msk.msra.mxu0 %vm510_vm0, %v4270_v5  ;;  %v1575_v5 = vrot.slane %v4606_v2, 3 }
  0x3c   : > { %3890 = vmatmul.msk.f32.gmra.mxu1 %vm413_vm2, %v352_v31  ;;  %v406_v31 = vsel %vm315_vm1, %v403_v59, %v405_v24  ;;  %v4735_v59 = vld [vmem:[%s4481_s7 + $0x118] sm:$0xff] }
  0x3d   : > { %3902 = vmatmul.msk.f32.gmra.mxu2 %vm413_vm2, %v376_v32  ;;  %v4702_v32 = vld [vmem:[%s4481_s7 + $0x110] sm:$0xff] }
  0x3e   : > { %3914 = vmatmul.msk.f32.gmra.mxu3 %vm413_vm2, %v400_v33  ;;  %v256_v33 = vld [vmem:[%s4481_s7 + $0x170] sm:$0xff] }
  0x3f   : > { %3878 = vmatmul.msk.f32.gmra.mxu0 %vm413_vm2, %v328_v39  ;;  %v334_v39 = vsel %vm315_vm1, %v331_v60, %v333_v25  ;;  %v257_v60 = vld [vmem:[%s4481_s7 + $0x178] sm:$0xff] }
  0x40   : > { %v409_v14 = vrot.slane %v257_v60, 1 }
  0x44   : > { %3891 = vmatmul.msk.f32.gmra.mxu1 %vm413_vm2, %v354_v46  ;;  %v383_v46 = vrot.slane %v4702_v32, 1 }
  0x45   : > { %3903 = vmatmul.msk.f32.gmra.mxu2 %vm413_vm2, %v378_v47  ;;  %v407_v47 = vrot.slane %v256_v33, 1 }
  0x46   : > { %3915 = vmatmul.msk.f32.gmra.mxu3 %vm413_vm2, %v402_v48  ;;  %v335_v48 = vrot.slane %v4709_v40, 1 }
  0x47   : > { %3879 = vmatmul.msk.f32.gmra.mxu0 %vm413_vm2, %v330_v55  ;;  %v384_v55 = vsel %vm315_vm1, %v381_v23, %v383_v46  ;;  %v408_v56 = vsel %vm315_vm1, %v405_v24, %v407_v47 }
  0x4c   : > { %3892 = vmatmul.msk.f32.gmra.mxu1 %vm413_vm2, %v356_v63  ;;  %v336_v63 = vsel %vm315_vm1, %v333_v25, %v335_v48 }
  0x4d   : > { %3904 = vmatmul.msk.f32.gmra.mxu2 %vm413_vm2, %v380_v0  ;;  %v361_v0 = vrot.slane %v4732_v58, 1 }
  0x4e   : > { %3916 = vmatmul.msk.f32.gmra.mxu3 %vm413_vm2, %v404_v1  ;;  %v4744_v1 = vld [vmem:[%s4481_s7 + $0x58] sm:$0xff] }
  0x4f   : > { %3880 = vmatmul.msk.f32.gmra.mxu0 %vm413_vm2, %v332_v10  ;;  %v385_v10 = vrot.slane %v4735_v59, 1  ;;  %v337_v23 = vrot.slane %v4744_v1, 1  ;;  %v362_v24 = vsel %vm315_vm1, %v359_v36, %v361_v0  ;;  %v364_v36 = vsel %vm315_vm1, %v361_v0, %v363_v12 }
  0x50   : > { %v939_v12 = vrot.slane %v4526_v22, 2  ;;  %v947_v0 = vrot.slane %v4606_v2, 2 }
  0x51   : > { %v386_v25 = vsel %vm315_vm1, %v383_v46, %v385_v10  ;;  %v340_v44 = vsel %vm315_vm1, %v337_v23, %v339_v9  ;;  %v1570_v46 = vrot.slane %v4542_v29, 3 }
  0x52   : > { %v940_v9 = vsel %vm937_vm3, %v938_v45, %v939_v12  ;;  %v942_v60 = vsel %vm937_vm3, %v939_v12, %v941_v13 }
  0x54   : > { %3893 = vmatmul.msk.f32.gmra.mxu1 %vm413_vm2, %v358_v27  ;;  %v410_v27 = vsel %vm315_vm1, %v407_v47, %v409_v14  ;;  %v1571_v47 = vrot.slane %v4564_v42, 3 }
  0x55   : > { %3905 = vmatmul.msk.f32.gmra.mxu2 %vm413_vm2, %v382_v30  ;;  %v258_v30 = vld [vmem:[%s4481_s7 + $0x180] sm:$0xff] }
  0x56   : > { %3917 = vmatmul.msk.f32.gmra.mxu3 %vm413_vm2, %v406_v31  ;;  %v338_v31 = vsel %vm315_vm1, %v335_v48, %v337_v23  ;;  %v411_v33 = vrot.slane %v258_v30, 1  ;;  %v1577_v23 = vrot.slane %v4627_v26, 3 }
  0x57   : > { %3881 = vmatmul.msk.f32.gmra.mxu0 %vm413_vm2, %v334_v39  ;;  %v388_v39 = vsel %vm315_vm1, %v385_v10, %v387_v16  ;;  %v943_v16 = vrot.slane %v4564_v42, 2 }
  0x58   : > { %v412_v43 = vsel %vm315_vm1, %v409_v14, %v411_v33 }
  0x59   : > { %v944_v48 = vsel %vm937_vm3, %v941_v13, %v943_v16 }
  0x5c   : > { %3894 = vmatmul.msk.f32.gmra.mxu1 %vm413_vm2, %v360_v53  ;;  %v1572_v53 = vsel %vm1569_vm4, %v1570_v46, %v1571_v47 }
  0x5d   : > { %3906 = vmatmul.msk.f32.gmra.mxu2 %vm413_vm2, %v384_v55  ;;  %v945_v55 = vrot.slane %v4585_v54, 2 }
  0x5e   : > { %3918 = vmatmul.msk.f32.gmra.mxu3 %vm413_vm2, %v408_v56  ;;  %v1573_v56 = vrot.slane %v4585_v54, 3 }
  0x5f   : > { %3882 = vmatmul.msk.f32.gmra.mxu0 %vm413_vm2, %v336_v63  ;;  %v946_v63 = vsel %vm937_vm3, %v943_v16, %v945_v55  ;;  %v948_v10 = vsel %vm937_vm3, %v945_v55, %v947_v0  ;;  %v955_v16 = vrot.slane %v4690_v15, 2 }
  0x60   : > { %v1576_v14 = vsel %vm1569_vm4, %v1573_v56, %v1575_v5 }
  0x64   : > { %3895 = vmatmul.msk.f32.gmra.mxu1 %vm413_vm2, %v362_v24 }
  0x65   : > { %3907 = vmatmul.msk.f32.gmra.mxu2 %vm413_vm2, %v386_v25  ;;  %v1578_v25 = vsel %vm1569_vm4, %v1575_v5, %v1577_v23 }
  0x66   : > { %3919 = vmatmul.msk.f32.gmra.mxu3 %vm413_vm2, %v410_v27  ;;  %v1579_v27 = vrot.slane %v4648_v41, 3 }
  0x67   : > { %3883 = vmatmul.msk.f32.gmra.mxu0 %vm413_vm2, %v338_v31 }
  0x68   : > { %v1580_v33 = vsel %vm1569_vm4, %v1577_v23, %v1579_v27 }
  0x6c   : > { %3896 = vmatmul.msk.f32.gmra.mxu1 %vm413_vm2, %v364_v36  ;;  %v953_v36 = vrot.slane %v4669_v57, 2 }
  0x6d   : > { %3908 = vmatmul.msk.f32.gmra.mxu2 %vm413_vm2, %v388_v39 }
  0x6e   : > { %3920 = vmatmul.msk.f32.gmra.mxu3 %vm413_vm2, %v412_v43 }
  0x6f   : > { %3884 = vmatmul.msk.f32.gmra.mxu0 %vm413_vm2, %v340_v44  ;;  %v1581_v44 = vrot.slane %v4669_v57, 3 }
  0x71   : > { %v1582_v13 = vsel %vm1569_vm4, %v1579_v27, %v1581_v44 }
  0x74   : > { %3922 = vmatmul.msk.f32.vlgmr.msrb.gmra.mxu1 %vm413_vm2, %v4516_v19  ;;  %v1574_v19 = vsel %vm1569_vm4, %v1571_v47, %v1573_v56  ;;  %v957_v56 = vrot.slane %v4709_v40, 2 }
  0x75   : > { %3972 = vmatmul.msk.f32.vlgmr.msrb.gmra.mxu2 %vm413_vm2, %v940_v9  ;;  %v1583_v9 = vrot.slane %v4690_v15, 3 }
  0x76   : > { %4022 = vmatmul.msk.f32.vlgmr.msrb.gmra.mxu3 %vm413_vm2, %v944_v48 }
  0x77   : > { %4072 = vmatmul.msk.f32.vlgmr.msrb.gmra.mxu0 %vm413_vm2, %v1572_v53  ;;  %v1584_v55 = vsel %vm1569_vm4, %v1581_v44, %v1583_v9  ;;  %v1589_v44 = vrot.slane %v4489_v6, 3 }
  0x7c   : > { %3923 = vmatmul.msk.f32.gmra.mxu1 %vm413_vm2, %v4526_v22  ;;  %v949_v22 = vrot.slane %v4627_v26, 2 }
  0x7d   : > { %3973 = vmatmul.msk.f32.gmra.mxu2 %vm413_vm2, %v942_v60 }
  0x7e   : > { %4023 = vmatmul.msk.f32.gmra.mxu3 %vm413_vm2, %v946_v63  ;;  %v950_v24 = vsel %vm937_vm3, %v947_v0, %v949_v22 }
  0x7f   : > { %4073 = vmatmul.msk.f32.gmra.mxu0 %vm413_vm2, %v1574_v19  ;;  %v1585_v19 = vrot.slane %v4709_v40, 3 }
  0x84   : > { %3924 = vmatmul.msk.f32.gmra.mxu1 %vm413_vm2, %v4542_v29  ;;  %v951_v29 = vrot.slane %v4648_v41, 2 }
  0x85   : > { %3974 = vmatmul.msk.f32.gmra.mxu2 %vm413_vm2, %v944_v48 }
  0x86   : > { %4024 = vmatmul.msk.f32.gmra.mxu3 %vm413_vm2, %v948_v10  ;;  %v952_v31 = vsel %vm937_vm3, %v949_v22, %v951_v29 }
  0x87   : > { %4074 = vmatmul.msk.f32.gmra.mxu0 %vm413_vm2, %v1576_v14  ;;  %v959_v14 = vrot.slane %v4744_v1, 2 }
  0x8c   : > { %3925 = vmatmul.msk.f32.gmra.mxu1 %vm413_vm2, %v4564_v42 }
  0x8d   : > { %3975 = vmatmul.msk.f32.gmra.mxu2 %vm413_vm2, %v946_v63 }
  0x8e   : > { %4025 = vmatmul.msk.f32.gmra.mxu3 %vm413_vm2, %v950_v24 }
  0x8f   : > { %4075 = vmatmul.msk.f32.gmra.mxu0 %vm413_vm2, %v1578_v25 }
  0x91   : > { %v4820_v30 = vpop.f32.mrf.mxu1 }
  0x94   : > { %3926 = vmatmul.msk.f32.gmra.mxu1 %vm413_vm2, %v4585_v54  ;;  %v4825_v42 = vpop.f32.mrf.mxu0  ;;  %v954_v54 = vsel %vm937_vm3, %v951_v29, %v953_v36 }
  0x95   : > { %3976 = vmatmul.msk.f32.gmra.mxu2 %vm413_vm2, %v948_v10  ;;  %v1586_v10 = vsel %vm1569_vm4, %v1583_v9, %v1585_v19  ;;  %v963_v9 = vrot.slane %v4492_v7, 2 }
  0x96   : > { %4026 = vmatmul.msk.f32.gmra.mxu3 %vm413_vm2, %v952_v31 }
  0x97   : > { %4076 = vmatmul.msk.f32.gmra.mxu0 %vm413_vm2, %v1580_v33 }
  0x98   : > { %v4832_v39 = vpop.f32.mrf.mxu2 }
  0x99   : > { %v4834_v43 = vpop.f32.mrf.mxu3  ;;  %v4837_v45 = vpop.f32.mrf.mxu1 }
  0x9a   : > { %6221 = vst [vmem:[#allocation3_spill] sm:$0xff] %v4834_v43 }
  0x9c   : > { %3927 = vmatmul.msk.f32.gmra.mxu1 %vm413_vm2, %v4606_v2  ;;  %v4842_v12 = vpop.f32.mrf.mxu0  ;;  %v956_v2 = vsel %vm937_vm3, %v953_v36, %v955_v16 }
  0x9d   : > { %3977 = vmatmul.msk.f32.gmra.mxu2 %vm413_vm2, %v950_v24  ;;  %v1587_v24 = vrot.slane %v4744_v1, 3 }
  0x9e   : > { %4027 = vmatmul.msk.f32.gmra.mxu3 %vm413_vm2, %v954_v54 }
  0x9f   : > { %4077 = vmatmul.msk.f32.gmra.mxu0 %vm413_vm2, %v1582_v13  ;;  %v1588_v27 = vsel %vm1569_vm4, %v1585_v19, %v1587_v24 }
  0xa0   : > { %v4849_v46 = vpop.f32.mrf.mxu2 }
  0xa1   : > { %v4851_v47 = vpop.f32.mrf.mxu3  ;;  %v4854_v48 = vpop.f32.mrf.mxu1 }
  0xa2   : > { %6222 = vst [vmem:[#allocation4_spill] sm:$0xff] %v4851_v47 }
  0xa4   : > { %3928 = vmatmul.msk.f32.gmra.mxu1 %vm413_vm2, %v4627_v26  ;;  %v4859_v53 = vpop.f32.mrf.mxu0  ;;  %v958_v26 = vsel %vm937_vm3, %v955_v16, %v957_v56  ;;  %v1590_v16 = vsel %vm1569_vm4, %v1587_v24, %v1589_v44 }
  0xa5   : > { %3978 = vmatmul.msk.f32.gmra.mxu2 %vm413_vm2, %v952_v31  ;;  %v961_v31 = vrot.slane %v4489_v6, 2 }
  0xa6   : > { %4028 = vmatmul.msk.f32.gmra.mxu3 %vm413_vm2, %v956_v2 }
  0xa7   : > { %4078 = vmatmul.msk.f32.gmra.mxu0 %vm413_vm2, %v1584_v55 }
  0xa8   : > { %v4866_v60 = vpop.f32.mrf.mxu2 }
  0xa9   : > { %6223 = vst [vmem:[#allocation5_spill] sm:$0xff] %v4866_v60  ;;  %v4868_v63 = vpop.f32.mrf.mxu3  ;;  %v4871_v0 = vpop.f32.mrf.mxu1 }
  0xaa   : > { %6224 = vst [vmem:[#allocation6_spill] sm:$0xff] %v4868_v63 }
  0xac   : > { %3929 = vmatmul.msk.f32.gmra.mxu1 %vm413_vm2, %v4648_v41  ;;  %v4876_v5 = vpop.f32.mrf.mxu0  ;;  %v960_v41 = vsel %vm937_vm3, %v957_v56, %v959_v14  ;;  %v1591_v56 = vrot.slane %v4492_v7, 3 }
  0xad   : > { %3979 = vmatmul.msk.f32.gmra.mxu2 %vm413_vm2, %v954_v54 }
  0xae   : > { %4029 = vmatmul.msk.f32.gmra.mxu3 %vm413_vm2, %v958_v26 }
  0xaf   : > { %4079 = vmatmul.msk.f32.gmra.mxu0 %vm413_vm2, %v1586_v10  ;;  %v1592_v10 = vsel %vm1569_vm4, %v1589_v44, %v1591_v56 }
  0xb0   : > { %v4883_v22 = vpop.f32.mrf.mxu2 }
  0xb1   : > { %6225 = vst [vmem:[#allocation7_spill] sm:$0xff] %v4883_v22  ;;  %v4885_v23 = vpop.f32.mrf.mxu3  ;;  %v4888_v25 = vpop.f32.mrf.mxu1 }
  0xb2   : > { %6226 = vst [vmem:[#allocation8_spill] sm:$0xff] %v4885_v23 }
  0xb4   : > { %3930 = vmatmul.msk.f32.gmra.mxu1 %vm413_vm2, %v4669_v57  ;;  %v4893_v29 = vpop.f32.mrf.mxu0  ;;  %v962_v57 = vsel %vm937_vm3, %v959_v14, %v961_v31  ;;  %v965_v14 = vrot.slane %v4513_v18, 2 }
  0xb5   : > { %3980 = vmatmul.msk.f32.gmra.mxu2 %vm413_vm2, %v956_v2 }
  0xb6   : > { %4030 = vmatmul.msk.f32.gmra.mxu3 %vm413_vm2, %v960_v41 }
  0xb7   : > { %4080 = vmatmul.msk.f32.gmra.mxu0 %vm413_vm2, %v1588_v27 }
  0xb8   : > { %v4900_v33 = vpop.f32.mrf.mxu2 }
  0xb9   : > { %6227 = vst [vmem:[#allocation9_spill] sm:$0xff] %v4900_v33  ;;  %v4902_v36 = vpop.f32.mrf.mxu3  ;;  %v4905_v54 = vpop.f32.mrf.mxu1 }
  0xba   : > { %6228 = vst [vmem:[#allocation10_spill] sm:$0xff] %v4902_v36 }
  0xbc   : > { %3931 = vmatmul.msk.f32.gmra.mxu1 %vm413_vm2, %v4690_v15  ;;  %v4910_v13 = vpop.f32.mrf.mxu0  ;;  %v964_v15 = vsel %vm937_vm3, %v961_v31, %v963_v9  ;;  %v1593_v31 = vrot.slane %v4513_v18, 3 }
  0xbd   : > { %3981 = vmatmul.msk.f32.gmra.mxu2 %vm413_vm2, %v958_v26 }
  0xbe   : > { %4031 = vmatmul.msk.f32.gmra.mxu3 %vm413_vm2, %v962_v57  ;;  %v1594_v44 = vsel %vm1569_vm4, %v1591_v56, %v1593_v31 }
  0xbf   : > { %4081 = vmatmul.msk.f32.gmra.mxu0 %vm413_vm2, %v1590_v16 }
  0xc0   : > { %v4917_v2 = vpop.f32.mrf.mxu2 }
  0xc1   : > { %6229 = vst [vmem:[#allocation11_spill] sm:$0xff] %v4917_v2  ;;  %v4919_v55 = vpop.f32.mrf.mxu3  ;;  %v4922_v19 = vpop.f32.mrf.mxu1 }
  0xc2   : > { %6230 = vst [vmem:[#allocation12_spill] sm:$0xff] %v4919_v55 }
  0xc4   : > { %3932 = vmatmul.msk.f32.gmra.mxu1 %vm413_vm2, %v4709_v40  ;;  %v4927_v26 = vpop.f32.mrf.mxu0  ;;  %v966_v40 = vsel %vm937_vm3, %v963_v9, %v965_v14  ;;  %v1595_v9 = vrot.slane %v4552_v37, 3 }
  0xc5   : > { %3982 = vmatmul.msk.f32.gmra.mxu2 %vm413_vm2, %v960_v41 }
  0xc6   : > { %4032 = vmatmul.msk.f32.gmra.mxu3 %vm413_vm2, %v964_v15  ;;  %v1596_v56 = vsel %vm1569_vm4, %v1593_v31, %v1595_v9 }
  0xc7   : > { %4082 = vmatmul.msk.f32.gmra.mxu0 %vm413_vm2, %v1592_v10  ;;  %v967_v10 = vrot.slane %v4552_v37, 2 }
  0xc8   : > { %v4934_v24 = vpop.f32.mrf.mxu2 }
  0xc9   : > { %6231 = vst [vmem:[#allocation13_spill] sm:$0xff] %v4934_v24  ;;  %v4936_v27 = vpop.f32.mrf.mxu3  ;;  %v4939_v16 = vpop.f32.mrf.mxu1 }
  0xca   : > { %6232 = vst [vmem:[#allocation14_spill] sm:$0xff] %v4936_v27 }
  0xcc   : > { %3933 = vmatmul.msk.f32.gmra.mxu1 %vm413_vm2, %v4744_v1  ;;  %v4944_v41 = vpop.f32.mrf.mxu0  ;;  %v968_v1 = vsel %vm937_vm3, %v965_v14, %v967_v10  ;;  %v1597_v14 = vrot.slane %v4573_v49, 3 }
  0xcd   : > { %3983 = vmatmul.msk.f32.gmra.mxu2 %vm413_vm2, %v962_v57 }
  0xce   : > { %4033 = vmatmul.msk.f32.gmra.mxu3 %vm413_vm2, %v966_v40  ;;  %v1598_v31 = vsel %vm1569_vm4, %v1595_v9, %v1597_v14 }
  0xcf   : > { %4083 = vmatmul.msk.f32.gmra.mxu0 %vm413_vm2, %v1594_v44  ;;  %v969_v44 = vrot.slane %v4573_v49, 2 }
  0xd0   : > { %v4951_v27 = vpop.f32.mrf.mxu2 }
  0xd1   : > { %6233 = vst [vmem:[#allocation15_spill] sm:$0xff] %v4951_v27  ;;  %v4953_v55 = vpop.f32.mrf.mxu3  ;;  %v4956_v36 = vpop.f32.mrf.mxu1 }
  0xd2   : > { %6234 = vst [vmem:[#allocation16_spill] sm:$0xff] %v4953_v55 }
  0xd4   : > { %3934 = vmatmul.msk.f32.gmra.mxu1 %vm413_vm2, %v4489_v6  ;;  %v4961_v57 = vpop.f32.mrf.mxu0  ;;  %v970_v6 = vsel %vm937_vm3, %v967_v10, %v969_v44  ;;  %v1599_v10 = vrot.slane %v4594_v61, 3 }
  0xd5   : > { %3984 = vmatmul.msk.f32.gmra.mxu2 %vm413_vm2, %v964_v15 }
  0xd6   : > { %4034 = vmatmul.msk.f32.gmra.mxu3 %vm413_vm2, %v968_v1  ;;  %v1600_v9 = vsel %vm1569_vm4, %v1597_v14, %v1599_v10 }
  0xd7   : > { %4084 = vmatmul.msk.f32.gmra.mxu0 %vm413_vm2, %v1596_v56  ;;  %v971_v56 = vrot.slane %v4594_v61, 2 }
  0xd8   : > { %v4968_v55 = vpop.f32.mrf.mxu2 }
  0xd9   : > { %6235 = vst [vmem:[#allocation17_spill] sm:$0xff] %v4968_v55  ;;  %v4970_v23 = vpop.f32.mrf.mxu3  ;;  %v4973_v63 = vpop.f32.mrf.mxu1 }
  0xda   : > { %6236 = vst [vmem:[#allocation18_spill] sm:$0xff] %v4970_v23 }
  0xdc   : > { %3935 = vmatmul.msk.f32.gmra.mxu1 %vm413_vm2, %v4492_v7  ;;  %v4978_v15 = vpop.f32.mrf.mxu0  ;;  %v972_v7 = vsel %vm937_vm3, %v969_v44, %v971_v56  ;;  %v1601_v44 = vrot.slane %v4615_v17, 3 }
  0xdd   : > { %3985 = vmatmul.msk.f32.gmra.mxu2 %vm413_vm2, %v966_v40 }
  0xde   : > { %4035 = vmatmul.msk.f32.gmra.mxu3 %vm413_vm2, %v970_v6  ;;  %v1602_v14 = vsel %vm1569_vm4, %v1599_v10, %v1601_v44 }
  0xdf   : > { %4085 = vmatmul.msk.f32.gmra.mxu0 %vm413_vm2, %v1598_v31  ;;  %v973_v31 = vrot.slane %v4615_v17, 2 }
  0xe0   : > { %v4985_v23 = vpop.f32.mrf.mxu2 }
  0xe1   : > { %6237 = vst [vmem:[#allocation19_spill] sm:$0xff] %v4985_v23  ;;  %v4987_v47 = vpop.f32.mrf.mxu3  ;;  %v4990_v43 = vpop.f32.mrf.mxu1 }
  0xe2   : > { %6238 = vst [vmem:[#allocation20_spill] sm:$0xff] %v4987_v47 }
  0xe4   : > { %3936 = vmatmul.msk.f32.gmra.mxu1 %vm413_vm2, %v4513_v18  ;;  %v4995_v40 = vpop.f32.mrf.mxu0  ;;  %v974_v18 = vsel %vm937_vm3, %v971_v56, %v973_v31  ;;  %v1603_v56 = vrot.slane %v4636_v34, 3 }
  0xe5   : > { %3986 = vmatmul.msk.f32.gmra.mxu2 %vm413_vm2, %v968_v1 }
  0xe6   : > { %4036 = vmatmul.msk.f32.gmra.mxu3 %vm413_vm2, %v972_v7 }
  0xe7   : > { %4086 = vmatmul.msk.f32.gmra.mxu0 %vm413_vm2, %v1600_v9  ;;  %v975_v9 = vrot.slane %v4636_v34, 2 }
  0xe8   : > { %v5002_v47 = vpop.f32.mrf.mxu2 }
  0xe9   : > { %6239 = vst [vmem:[#allocation21_spill] sm:$0xff] %v5002_v47  ;;  %v5004_v23 = vpop.f32.mrf.mxu3  ;;  %v5007_v55 = vpop.f32.mrf.mxu1 }
  0xea   : > { %6240 = vst [vmem:[#allocation22_spill] sm:$0xff] %v5004_v23 }
  0xec   : > { %3937 = vmatmul.msk.f32.gmra.mxu1 %vm413_vm2, %v4552_v37  ;;  %v5012_v1 = vpop.f32.mrf.mxu0  ;;  %v976_v37 = vsel %vm937_vm3, %v973_v31, %v975_v9  ;;  %v1605_v31 = vrot.slane %v4657_v51, 3 }
  0xed   : > { %3987 = vmatmul.msk.f32.gmra.mxu2 %vm413_vm2, %v970_v6  ;;  %v1604_v6 = vsel %vm1569_vm4, %v1601_v44, %v1603_v56 }
  0xee   : > { %4037 = vmatmul.msk.f32.gmra.mxu3 %vm413_vm2, %v974_v18  ;;  %v1606_v44 = vsel %vm1569_vm4, %v1603_v56, %v1605_v31 }
  0xef   : > { %4087 = vmatmul.msk.f32.gmra.mxu0 %vm413_vm2, %v1602_v14  ;;  %v977_v14 = vrot.slane %v4657_v51, 2 }
  0xf0   : > { %v5019_v23 = vpop.f32.mrf.mxu2 }
  0xf1   : > { %6241 = vst [vmem:[#allocation23_spill] sm:$0xff] %v5019_v23  ;;  %v5021_v47 = vpop.f32.mrf.mxu3  ;;  %v791_v27 = vpop.f32.mrf.mxu1 }
  0xf2   : > { %6242 = vst [vmem:[#allocation24_spill] sm:$0xff] %v5021_v47  ;;  %v792_v23 = vadd.f32 %v791_v27, %v4825_v42  ;;  %v979_v42 = vrot.slane %v4678_v3, 2 }
  0xf4   : > { %3938 = vmatmul.msk.f32.gmra.mxu1 %vm413_vm2, %v4573_v49  ;;  %v1783_v10 = vpop.f32.mrf.mxu0  ;;  %v978_v49 = vsel %vm937_vm3, %v975_v9, %v977_v14  ;;  %v980_v9 = vsel %vm937_vm3, %v977_v14, %v979_v42 }
  0xf5   : > { %3988 = vmatmul.msk.f32.gmra.mxu2 %vm413_vm2, %v972_v7 }
  0xf6   : > { %4038 = vmatmul.msk.f32.gmra.mxu3 %vm413_vm2, %v976_v37 }
  0xf7   : > { %4088 = vmatmul.msk.f32.gmra.mxu0 %vm413_vm2, %v1604_v6 }
  0xf8   : > { %v1151_v47 = vpop.f32.mrf.mxu2 }
  0xf9   : > { %v1375_v24 = vpop.f32.mrf.mxu3  ;;  %v1295_v2 = vadd.f32 %v1151_v47, %v792_v23  ;;  %v794_v33 = vpop.f32.mrf.mxu1 }
  0xfa   : > { %v795_v47 = vadd.f32 %v794_v33, %v4842_v12  ;;  %v981_v12 = vrot.slane %v4697_v28, 2 }
  0xfb   : > { %v1519_v22 = vadd.f32 %v1375_v24, %v1295_v2  ;;  %v1607_v24 = vrot.slane %v4678_v3, 3 }
  0xfc   : > { %3939 = vmatmul.msk.f32.gmra.mxu1 %vm413_vm2, %v4594_v61  ;;  %v1786_v7 = vpop.f32.mrf.mxu0 }
  0xfd   : > { %v5038_v60 = vadd.f32 %v1783_v10, %v1519_v22  ;;  %3989 = vmatmul.msk.f32.gmra.mxu2 %vm413_vm2, %v974_v18  ;;  %v1608_v56 = vsel %vm1569_vm4, %v1605_v31, %v1607_v24  ;;  %v982_v31 = vsel %vm937_vm3, %v979_v42, %v981_v12 }
  0xfe   : > { %4039 = vmatmul.msk.f32.gmra.mxu3 %vm413_vm2, %v978_v49 }
  0xff   : > { %4089 = vmatmul.msk.f32.gmra.mxu0 %vm413_vm2, %v1606_v44  ;;  %v1609_v44 = vrot.slane %v4697_v28, 3 }
 0x100   : > { %v1154_v23 = vpop.f32.mrf.mxu2 }
 0x101   : > { %v1378_v2 = vpop.f32.mrf.mxu3  ;;  %v1296_v61 = vadd.f32 %v1154_v23, %v795_v47  ;;  %v797_v27 = vpop.f32.mrf.mxu1  ;;  %v1610_v23 = vsel %vm1569_vm4, %v1607_v24, %v1609_v44 }
 0x102   : > { %v798_v33 = vadd.f32 %v797_v27, %v4859_v53  ;;  %v983_v53 = vrot.slane %v4732_v58, 2 }
 0x103   : > { %v1520_v22 = vadd.f32 %v1378_v2, %v1296_v61 }
 0x104   : > { %3940 = vmatmul.msk.f32.gmra.mxu1 %vm413_vm2, %v4615_v17  ;;  %v1789_v18 = vpop.f32.mrf.mxu0  ;;  %v984_v24 = vsel %vm937_vm3, %v981_v12, %v983_v53 }
 0x105   : > { %v5050_v10 = vadd.f32 %v1786_v7, %v1520_v22  ;;  %3990 = vmatmul.msk.f32.gmra.mxu2 %vm413_vm2, %v976_v37  ;;  %v1611_v22 = vrot.slane %v4732_v58, 3 }
 0x106   : > { %4040 = vmatmul.msk.f32.gmra.mxu3 %vm413_vm2, %v980_v9 }
 0x107   : > { %4090 = vmatmul.msk.f32.gmra.mxu0 %vm413_vm2, %v1608_v56 }
 0x108   : > { %v1157_v6 = vpop.f32.mrf.mxu2 }
 0x109   : > { %v1381_v14 = vpop.f32.mrf.mxu3  ;;  %v1297_v17 = vadd.f32 %v1157_v6, %v798_v33  ;;  %v800_v47 = vpop.f32.mrf.mxu1  ;;  %v1612_v33 = vsel %vm1569_vm4, %v1609_v44, %v1611_v22 }
 0x10a   : > { %v801_v61 = vadd.f32 %v800_v47, %v4876_v5  ;;  %v985_v5 = vrot.slane %v4495_v8, 2  ;;  %v1613_v47 = vrot.slane %v4495_v8, 3 }
 0x10b   : > { %v1521_v7 = vadd.f32 %v1381_v14, %v1297_v17 }
 0x10c   : > { %3941 = vmatmul.msk.f32.gmra.mxu1 %vm413_vm2, %v4636_v34  ;;  %v1792_v37 = vpop.f32.mrf.mxu0  ;;  %v986_v44 = vsel %vm937_vm3, %v983_v53, %v985_v5 }
 0x10d   : > { %v5062_v2 = vadd.f32 %v1789_v18, %v1521_v7  ;;  %3991 = vmatmul.msk.f32.gmra.mxu2 %vm413_vm2, %v978_v49 }
 0x10e   : > { %4041 = vmatmul.msk.f32.gmra.mxu3 %vm413_vm2, %v982_v31 }
 0x10f   : > { %4091 = vmatmul.msk.f32.gmra.mxu0 %vm413_vm2, %v1610_v23  ;;  %v1614_v23 = vsel %vm1569_vm4, %v1611_v22, %v1613_v47 }
 0x110   : > { %v1160_v42 = vpop.f32.mrf.mxu2 }
 0x111   : > { %v1384_v27 = vpop.f32.mrf.mxu3  ;;  %v1298_v34 = vadd.f32 %v1160_v42, %v801_v61  ;;  %v803_v56 = vpop.f32.mrf.mxu1 }
 0x112   : > { %v804_v14 = vadd.f32 %v803_v56, %v4893_v29  ;;  %v987_v29 = vrot.slane %v4502_v11, 2 }
 0x113   : > { %v1522_v18 = vadd.f32 %v1384_v27, %v1298_v34  ;;  %v1615_v27 = vrot.slane %v4502_v11, 3 }
 0x114   : > { %3942 = vmatmul.msk.f32.gmra.mxu1 %vm413_vm2, %v4657_v51  ;;  %v1795_v49 = vpop.f32.mrf.mxu0  ;;  %v988_v22 = vsel %vm937_vm3, %v985_v5, %v987_v29 }
 0x115   : > { %v5074_v6 = vadd.f32 %v1792_v37, %v1522_v18  ;;  %3992 = vmatmul.msk.f32.gmra.mxu2 %vm413_vm2, %v980_v9  ;;  %v1616_v18 = vsel %vm1569_vm4, %v1613_v47, %v1615_v27 }
 0x116   : > { %4042 = vmatmul.msk.f32.gmra.mxu3 %vm413_vm2, %v984_v24 }
 0x117   : > { %4092 = vmatmul.msk.f32.gmra.mxu0 %vm413_vm2, %v1612_v33 }
 0x118   : > { %v1163_v12 = vpop.f32.mrf.mxu2 }
 0x119   : > { %v1387_v17 = vpop.f32.mrf.mxu3  ;;  %v1299_v51 = vadd.f32 %v1163_v12, %v804_v14  ;;  %v806_v7 = vpop.f32.mrf.mxu1  ;;  %v1617_v14 = vrot.slane %v4523_v21, 3 }
 0x11a   : > { %v807_v8 = vadd.f32 %v806_v7, %v4910_v13  ;;  %v989_v13 = vrot.slane %v4523_v21, 2  ;;  %v991_v21 = vrot.slane %v4555_v38, 2 }
 0x11b   : > { %v1523_v37 = vadd.f32 %v1387_v17, %v1299_v51  ;;  %v1618_v51 = vsel %vm1569_vm4, %v1615_v27, %v1617_v14 }
 0x11c   : > { %3943 = vmatmul.msk.f32.gmra.mxu1 %vm413_vm2, %v4678_v3  ;;  %v1798_v9 = vpop.f32.mrf.mxu0  ;;  %v990_v17 = vsel %vm937_vm3, %v987_v29, %v989_v13 }
 0x11d   : > { %v5086_v61 = vadd.f32 %v1795_v49, %v1523_v37  ;;  %3993 = vmatmul.msk.f32.gmra.mxu2 %vm413_vm2, %v982_v31 }
 0x11e   : > { %4043 = vmatmul.msk.f32.gmra.mxu3 %vm413_vm2, %v986_v44 }
 0x11f   : > { %4093 = vmatmul.msk.f32.gmra.mxu0 %vm413_vm2, %v1614_v23 }
 0x120   : > { %v1166_v53 = vpop.f32.mrf.mxu2 }
 0x121   : > { %v1390_v42 = vpop.f32.mrf.mxu3  ;;  %v1300_v3 = vadd.f32 %v1166_v53, %v807_v8  ;;  %v809_v34 = vpop.f32.mrf.mxu1  ;;  %v992_v8 = vsel %vm937_vm3, %v989_v13, %v991_v21 }
 0x122   : > { %v810_v11 = vadd.f32 %v809_v34, %v4927_v26 }
 0x123   : > { %v1524_v56 = vadd.f32 %v1390_v42, %v1300_v3  ;;  %v4336_v42 = vld [vmem:[%s4481_s7 + $0xc0] sm:$0xff] }
 0x124   : > { %3944 = vmatmul.msk.f32.gmra.mxu1 %vm413_vm2, %v4697_v28  ;;  %v1801_v31 = vpop.f32.mrf.mxu0 }
 0x125   : > { %v5098_v49 = vadd.f32 %v1798_v9, %v1524_v56  ;;  %3994 = vmatmul.msk.f32.gmra.mxu2 %vm413_vm2, %v984_v24 }
 0x126   : > { %4044 = vmatmul.msk.f32.gmra.mxu3 %vm413_vm2, %v988_v22 }
 0x127   : > { %4094 = vmatmul.msk.f32.gmra.mxu0 %vm413_vm2, %v1616_v18 }
 0x128   : > { %v1169_v33 = vpop.f32.mrf.mxu2 }
 0x129   : > { %v1393_v5 = vpop.f32.mrf.mxu3  ;;  %v1301_v28 = vadd.f32 %v1169_v33, %v810_v11  ;;  %v812_v12 = vpop.f32.mrf.mxu1 }
 0x12a   : > { %v813_v26 = vadd.f32 %v812_v12, %v4944_v41 }
 0x12b   : > { %v1525_v47 = vadd.f32 %v1393_v5, %v1301_v28  ;;  %v4337_v5 = vld [vmem:[%s4481_s7 + $0xc8] sm:$0xff] }
 0x12c   : > { %3945 = vmatmul.msk.f32.gmra.mxu1 %vm413_vm2, %v4732_v58  ;;  %v1804_v24 = vpop.f32.mrf.mxu0  ;;  %v1619_v58 = vrot.slane %v4555_v38, 3  ;;  %v993_v38 = vrot.slane %v4576_v50, 2 }
 0x12d   : > { %v5110_v7 = vadd.f32 %v1801_v31, %v1525_v47  ;;  %3995 = vmatmul.msk.f32.gmra.mxu2 %vm413_vm2, %v986_v44  ;;  %v1621_v31 = vrot.slane %v4576_v50, 3  ;;  %v995_v50 = vrot.slane %v4597_v62, 2 }
 0x12e   : > { %4045 = vmatmul.msk.f32.gmra.mxu3 %vm413_vm2, %v990_v17  ;;  %v1620_v27 = vsel %vm1569_vm4, %v1617_v14, %v1619_v58  ;;  %v994_v11 = vsel %vm937_vm3, %v991_v21, %v993_v38 }
 0x12f   : > { %4095 = vmatmul.msk.f32.gmra.mxu0 %vm413_vm2, %v1618_v51  ;;  %v1622_v14 = vsel %vm1569_vm4, %v1619_v58, %v1621_v31 }
 0x130   : > { %v1172_v37 = vpop.f32.mrf.mxu2 }
 0x131   : > { %v1396_v9 = vpop.f32.mrf.mxu3  ;;  %v1302_v23 = vadd.f32 %v1172_v37, %v813_v26  ;;  %v815_v29 = vpop.f32.mrf.mxu1  ;;  %v996_v26 = vsel %vm937_vm3, %v993_v38, %v995_v50 }
 0x132   : > { %v816_v41 = vadd.f32 %v815_v29, %v4961_v57 }
 0x133   : > { %v1526_v53 = vadd.f32 %v1396_v9, %v1302_v23  ;;  %v4338_v9 = vld [vmem:[%s4481_s7 + $0xd0] sm:$0xff] }
 0x134   : > { %3946 = vmatmul.msk.f32.gmra.mxu1 %vm413_vm2, %v4336_v42  ;;  %v1807_v44 = vpop.f32.mrf.mxu0  ;;  %v1625_v42 = vrot.slane %v4618_v20, 3 }
 0x135   : > { %v5122_v3 = vadd.f32 %v1804_v24, %v1526_v53  ;;  %3996 = vmatmul.msk.f32.gmra.mxu2 %vm413_vm2, %v988_v22  ;;  %v1623_v24 = vrot.slane %v4597_v62, 3  ;;  %v997_v62 = vrot.slane %v4618_v20, 2  ;;  %v999_v20 = vrot.slane %v4639_v35, 2 }
 0x136   : > { %4046 = vmatmul.msk.f32.gmra.mxu3 %vm413_vm2, %v992_v8 }
 0x137   : > { %4096 = vmatmul.msk.f32.gmra.mxu0 %vm413_vm2, %v1620_v27  ;;  %v1624_v58 = vsel %vm1569_vm4, %v1621_v31, %v1623_v24  ;;  %v998_v38 = vsel %vm937_vm3, %v995_v50, %v997_v62 }
 0x138   : > { %v1175_v34 = vpop.f32.mrf.mxu2 }
 0x139   : > { %v1399_v56 = vpop.f32.mrf.mxu3  ;;  %v1303_v18 = vadd.f32 %v1175_v34, %v816_v41  ;;  %v818_v13 = vpop.f32.mrf.mxu1  ;;  %v4339_v34 = vld [vmem:[%s4481_s7 + $0xd8] sm:$0xff] }
 0x13a   : > { %v819_v57 = vadd.f32 %v818_v13, %v4978_v15 }
 0x13b   : > { %v1527_v33 = vadd.f32 %v1399_v56, %v1303_v18  ;;  %v1626_v56 = vsel %vm1569_vm4, %v1623_v24, %v1625_v42 }
 0x13c   : > { %3947 = vmatmul.msk.f32.gmra.mxu1 %vm413_vm2, %v4337_v5  ;;  %v1810_v22 = vpop.f32.mrf.mxu0 }
 0x13d   : > { %v5134_v28 = vadd.f32 %v1807_v44, %v1527_v33  ;;  %3997 = vmatmul.msk.f32.gmra.mxu2 %vm413_vm2, %v990_v17  ;;  %v1627_v33 = vrot.slane %v4639_v35, 3  ;;  %v1001_v35 = vrot.slane %v4660_v52, 2 }
 0x13e   : > { %4047 = vmatmul.msk.f32.gmra.mxu3 %vm413_vm2, %v994_v11 }
 0x13f   : > { %4097 = vmatmul.msk.f32.gmra.mxu0 %vm413_vm2, %v1622_v14  ;;  %v1000_v14 = vsel %vm937_vm3, %v997_v62, %v999_v20  ;;  %v4341_v62 = vld [vmem:[%s4481_s7 + $0xe8] sm:$0xff] }
 0x140   : > { %v1178_v12 = vpop.f32.mrf.mxu2 }
 0x141   : > { %v1402_v47 = vpop.f32.mrf.mxu3  ;;  %v1304_v51 = vadd.f32 %v1178_v12, %v819_v57  ;;  %v821_v21 = vpop.f32.mrf.mxu1  ;;  %v4340_v57 = vld [vmem:[%s4481_s7 + $0xe0] sm:$0xff]  ;;  %v1628_v12 = vsel %vm1569_vm4, %v1625_v42, %v1627_v33 }
 0x142   : > { %v822_v15 = vadd.f32 %v821_v21, %v4995_v40  ;;  %v1629_v21 = vrot.slane %v4660_v52, 3  ;;  %v1003_v52 = vrot.slane %v4681_v4, 2 }
 0x143   : > { %v1528_v37 = vadd.f32 %v1402_v47, %v1304_v51 }
 0x144   : > { %3948 = vmatmul.msk.f32.gmra.mxu1 %vm413_vm2, %v4338_v9  ;;  %v1813_v17 = vpop.f32.mrf.mxu0 }
 0x145   : > { %v5146_v23 = vadd.f32 %v1810_v22, %v1528_v37  ;;  %3998 = vmatmul.msk.f32.gmra.mxu2 %vm413_vm2, %v992_v8 }
 0x146   : > { %4048 = vmatmul.msk.f32.gmra.mxu3 %vm413_vm2, %v996_v26 }
 0x147   : > { %4098 = vmatmul.msk.f32.gmra.mxu0 %vm413_vm2, %v1624_v58 }
 0x148   : > { %v1181_v29 = vpop.f32.mrf.mxu2 }
 0x149   : > { %v1405_v53 = vpop.f32.mrf.mxu3  ;;  %v1305_v44 = vadd.f32 %v1181_v29, %v822_v15  ;;  %v824_v27 = vpop.f32.mrf.mxu1  ;;  %v1630_v15 = vsel %vm1569_vm4, %v1627_v33, %v1629_v21  ;;  %v1633_v33 = vrot.slane %v4702_v32, 3 }
 0x14a   : > { %v825_v40 = vadd.f32 %v824_v27, %v5012_v1 }
 0x14b   : > { %v1529_v41 = vadd.f32 %v1405_v53, %v1305_v44  ;;  %v1631_v44 = vrot.slane %v4681_v4, 3  ;;  %v1005_v4 = vrot.slane %v4702_v32, 2  ;;  %v1007_v32 = vrot.slane %v4735_v59, 2 }
 0x14c   : > { %3949 = vmatmul.msk.f32.gmra.mxu1 %vm413_vm2, %v4339_v34  ;;  %v1816_v8 = vpop.f32.mrf.mxu0  ;;  %v1004_v34 = vsel %vm937_vm3, %v1001_v35, %v1003_v52 }
 0x14d   : > { %v5158_v31 = vadd.f32 %v1813_v17, %v1529_v41  ;;  %3999 = vmatmul.msk.f32.gmra.mxu2 %vm413_vm2, %v994_v11  ;;  %v1002_v17 = vsel %vm937_vm3, %v999_v20, %v1001_v35  ;;  %v1632_v20 = vsel %vm1569_vm4, %v1629_v21, %v1631_v44 }
 0x14e   : > { %4049 = vmatmul.msk.f32.gmra.mxu3 %vm413_vm2, %v998_v38 }
 0x14f   : > { %4099 = vmatmul.msk.f32.gmra.mxu0 %vm413_vm2, %v1626_v56  ;;  %v4342_v56 = vld [vmem:[%s4481_s7 + $0xf0] sm:$0xff] }
 0x150   : > { %v1184_v18 = vpop.f32.mrf.mxu2 }
 0x151   : > { %v1408_v13 = vpop.f32.mrf.mxu3  ;;  %v1306_v5 = vadd.f32 %v1184_v18, %v825_v40  ;;  %v827_v22 = vpop.f32.mrf.mxu1 }
 0x152   : > { %v828_v1 = vadd.f32 %v827_v22, %v4820_v30 }
 0x153   : > { %v1530_v50 = vadd.f32 %v1408_v13, %v1306_v5 }
 0x154   : > { %3950 = vmatmul.msk.f32.gmra.mxu1 %vm413_vm2, %v4340_v57  ;;  %v1819_v11 = vpop.f32.mrf.mxu0 }
 0x155   : > { %v5170_v47 = vadd.f32 %v1816_v8, %v1530_v50  ;;  %4000 = vmatmul.msk.f32.gmra.mxu2 %vm413_vm2, %v996_v26  ;;  %v1006_v50 = vsel %vm937_vm3, %v1003_v52, %v1005_v4 }
 0x156   : > { %4050 = vmatmul.msk.f32.gmra.mxu3 %vm413_vm2, %v1000_v14 }
 0x157   : > { %4100 = vmatmul.msk.f32.gmra.mxu0 %vm413_vm2, %v1628_v12  ;;  %v1634_v12 = vsel %vm1569_vm4, %v1631_v44, %v1633_v33 }
 0x158   : > { %v1187_v24 = vpop.f32.mrf.mxu2 }
 0x159   : > { %v1411_v51 = vpop.f32.mrf.mxu3  ;;  %v1307_v37 = vadd.f32 %v1187_v24, %v828_v1  ;;  %v830_v9 = vpop.f32.mrf.mxu1 }
 0x15a   : > { %v831_v30 = vadd.f32 %v830_v9, %v4837_v45  ;;  %v1008_v9 = vsel %vm937_vm3, %v1005_v4, %v1007_v32 }
 0x15b   : > { %v1531_v58 = vadd.f32 %v1411_v51, %v1307_v37  ;;  %v1635_v51 = vrot.slane %v4735_v59, 3 }
 0x15c   : > { %3951 = vmatmul.msk.f32.gmra.mxu1 %vm413_vm2, %v4341_v62  ;;  %v1822_v26 = vpop.f32.mrf.mxu0  ;;  %v4344_v62 = vld [vmem:[%s4481_s7 + $0x100] sm:$0xff] }
 0x15d   : > { %v5182_v29 = vadd.f32 %v1819_v11, %v1531_v58  ;;  %4001 = vmatmul.msk.f32.gmra.mxu2 %vm413_vm2, %v998_v38  ;;  %v4343_v11 = vld [vmem:[%s4481_s7 + $0xf8] sm:$0xff] }
 0x15e   : > { %4051 = vmatmul.msk.f32.gmra.mxu3 %vm413_vm2, %v1002_v17 }
 0x15f   : > { %4101 = vmatmul.msk.f32.gmra.mxu0 %vm413_vm2, %v1630_v15  ;;  %v5223_v15 = vld [vmem:[%s4481_s7 + $0x120] sm:$0xff] }
 0x160   : > { %v1190_v53 = vpop.f32.mrf.mxu2  ;;  %v1009_v59 = vrot.slane %v5223_v15, 2 }
 0x161   : > { %v1414_v42 = vpop.f32.mrf.mxu3  ;;  %v1308_v27 = vadd.f32 %v1190_v53, %v831_v30  ;;  %v833_v41 = vpop.f32.mrf.mxu1 }
 0x162   : > { %v834_v45 = vadd.f32 %v833_v41, %v4854_v48  ;;  %v1010_v41 = vsel %vm937_vm3, %v1007_v32, %v1009_v59  ;;  %v5253_v32 = vld [vmem:[%s4481_s7 + $0x130] sm:$0xff] }
 0x163   : > { %v1532_v8 = vadd.f32 %v1414_v42, %v1308_v27  ;;  %v1637_v42 = vrot.slane %v5223_v15, 3 }
 0x164   : > { %3952 = vmatmul.msk.f32.gmra.mxu1 %vm413_vm2, %v4342_v56  ;;  %v1825_v38 = vpop.f32.mrf.mxu0 }
 0x165   : > { %v5194_v40 = vadd.f32 %v1822_v26, %v1532_v8  ;;  %4002 = vmatmul.msk.f32.gmra.mxu2 %vm413_vm2, %v1000_v14  ;;  %v1636_v26 = vsel %vm1569_vm4, %v1633_v33, %v1635_v51  ;;  %v4346_v8 = vld [vmem:[%s4481_s7 + $0x108] sm:$0xff] }
 0x166   : > { %4052 = vmatmul.msk.f32.gmra.mxu3 %vm413_vm2, %v1004_v34 }
 0x167   : > { %4102 = vmatmul.msk.f32.gmra.mxu0 %vm413_vm2, %v1632_v20  ;;  %v5238_v20 = vld [vmem:[%s4481_s7 + $0x128] sm:$0xff] }
 0x168   : > { %v1193_v18 = vpop.f32.mrf.mxu2  ;;  %v1011_v4 = vrot.slane %v5238_v20, 2  ;;  %v1639_v33 = vrot.slane %v5238_v20, 3 }
 0x169   : > { %v1417_v13 = vpop.f32.mrf.mxu3  ;;  %v1309_v5 = vadd.f32 %v1193_v18, %v834_v45  ;;  %v836_v22 = vpop.f32.mrf.mxu1 }
 0x16a   : > { %v837_v48 = vadd.f32 %v836_v22, %v4871_v0 }
 0x16b   : > { %v1533_v57 = vadd.f32 %v1417_v13, %v1309_v5 }
 0x16c   : > { %3953 = vmatmul.msk.f32.gmra.mxu1 %vm413_vm2, %v4343_v11  ;;  %v1828_v14 = vpop.f32.mrf.mxu0  ;;  %v4348_v11 = vld [vmem:[%s4481_s7 + $0x110] sm:$0xff] }
 0x16d   : > { %v5206_v35 = vadd.f32 %v1825_v38, %v1533_v57  ;;  %4003 = vmatmul.msk.f32.gmra.mxu2 %vm413_vm2, %v1002_v17  ;;  %v1638_v38 = vsel %vm1569_vm4, %v1635_v51, %v1637_v42  ;;  %v1012_v57 = vsel %vm937_vm3, %v1009_v59, %v1011_v4 }
 0x16e   : > { %4053 = vmatmul.msk.f32.gmra.mxu3 %vm413_vm2, %v1006_v50 }
 0x16f   : > { %4103 = vmatmul.msk.f32.gmra.mxu0 %vm413_vm2, %v1634_v12  ;;  %v1640_v12 = vsel %vm1569_vm4, %v1637_v42, %v1639_v33 }
 0x170   : > { %v1196_v1 = vpop.f32.mrf.mxu2 }
 0x171   : > { %v1420_v24 = vpop.f32.mrf.mxu3  ;;  %v1310_v21 = vadd.f32 %v1196_v1, %v837_v48  ;;  %v839_v37 = vpop.f32.mrf.mxu1  ;;  %v1013_v48 = vrot.slane %v5253_v32, 2 }
 0x172   : > { %v840_v52 = vadd.f32 %v839_v37, %v4888_v25 }
 0x173   : > { %v1534_v58 = vadd.f32 %v1420_v24, %v1310_v21  ;;  %v1641_v21 = vrot.slane %v5253_v32, 3 }
 0x174   : > { %3954 = vmatmul.msk.f32.gmra.mxu1 %vm413_vm2, %v4344_v62  ;;  %v1831_v17 = vpop.f32.mrf.mxu0  ;;  %v1014_v62 = vsel %vm937_vm3, %v1011_v4, %v1013_v48 }
 0x175   : > { %v5218_v0 = vadd.f32 %v1828_v14, %v1534_v58  ;;  %4004 = vmatmul.msk.f32.gmra.mxu2 %vm413_vm2, %v1004_v34  ;;  %v1642_v59 = vsel %vm1569_vm4, %v1639_v33, %v1641_v21 }
 0x176   : > { %4054 = vmatmul.msk.f32.gmra.mxu3 %vm413_vm2, %v1008_v9 }
 0x177   : > { %4104 = vmatmul.msk.f32.gmra.mxu0 %vm413_vm2, %v1636_v26 }
 0x178   : > { %v1199_v30 = vpop.f32.mrf.mxu2 }
 0x179   : > { %v1423_v53 = vpop.f32.mrf.mxu3  ;;  %v1311_v44 = vadd.f32 %v1199_v30, %v840_v52  ;;  %v842_v27 = vpop.f32.mrf.mxu1 }
 0x17a   : > { %v843_v45 = vadd.f32 %v842_v27, %v4905_v54 }
 0x17b   : > { %v1535_v34 = vadd.f32 %v1423_v53, %v1311_v44 }
 0x17c   : > { %3955 = vmatmul.msk.f32.gmra.mxu1 %vm413_vm2, %v4346_v8  ;;  %v1834_v56 = vpop.f32.mrf.mxu0 }
 0x17d   : > { %v5233_v25 = vadd.f32 %v1831_v17, %v1535_v34  ;;  %4005 = vmatmul.msk.f32.gmra.mxu2 %vm413_vm2, %v1006_v50  ;;  %v4350_v17 = vld [vmem:[%s4481_s7 + $0x118] sm:$0xff] }
 0x17e   : > { %4055 = vmatmul.msk.f32.gmra.mxu3 %vm413_vm2, %v1010_v41 }
 0x17f   : > { %4105 = vmatmul.msk.f32.gmra.mxu0 %vm413_vm2, %v1638_v38 }
 0x180   : > { %v1202_v18 = vpop.f32.mrf.mxu2 }
 0x181   : > { %v1426_v13 = vpop.f32.mrf.mxu3  ;;  %v1312_v5 = vadd.f32 %v1202_v18, %v843_v45  ;;  %v845_v22 = vpop.f32.mrf.mxu1 }
 0x182   : > { %v846_v1 = vadd.f32 %v845_v22, %v4922_v19  ;;  %v4351_v19 = vld [vmem:[%s4481_s7 + $0x138] sm:$0xff] }
 0x183   : > { %v1536_v50 = vadd.f32 %v1426_v13, %v1312_v5  ;;  %v1015_v30 = vrot.slane %v4351_v19, 2  ;;  %v1643_v27 = vrot.slane %v4351_v19, 3 }
 0x184   : > { %3956 = vmatmul.msk.f32.gmra.mxu1 %vm413_vm2, %v4348_v11  ;;  %v1837_v14 = vpop.f32.mrf.mxu0 }
 0x185   : > { %v5248_v54 = vadd.f32 %v1834_v56, %v1536_v50  ;;  %4006 = vmatmul.msk.f32.gmra.mxu2 %vm413_vm2, %v1008_v9  ;;  %v1016_v56 = vsel %vm937_vm3, %v1013_v48, %v1015_v30  ;;  %v1644_v4 = vsel %vm1569_vm4, %v1641_v21, %v1643_v27 }
 0x186   : > { %4056 = vmatmul.msk.f32.gmra.mxu3 %vm413_vm2, %v1012_v57 }
 0x187   : > { %4106 = vmatmul.msk.f32.gmra.mxu0 %vm413_vm2, %v1640_v12 }
 0x188   : > { %v1205_v24 = vpop.f32.mrf.mxu2 }
 0x189   : > { %v1429_v51 = vpop.f32.mrf.mxu3  ;;  %v1313_v37 = vadd.f32 %v1205_v24, %v846_v1  ;;  %v848_v58 = vpop.f32.mrf.mxu1 }
 0x18a   : > { %v849_v53 = vadd.f32 %v848_v58, %v4939_v16  ;;  %v4352_v16 = vld [vmem:[%s4481_s7 + $0x140] sm:$0xff] }
 0x18b   : > { %v1537_v9 = vadd.f32 %v1429_v51, %v1313_v37  ;;  %v1017_v18 = vrot.slane %v4352_v16, 2  ;;  %v1645_v22 = vrot.slane %v4352_v16, 3 }
 0x18c   : > { %3957 = vmatmul.msk.f32.gmra.mxu1 %vm413_vm2, %v4350_v17  ;;  %v1840_v26 = vpop.f32.mrf.mxu0 }
 0x18d   : > { %v5263_v52 = vadd.f32 %v1837_v14, %v1537_v9  ;;  %4007 = vmatmul.msk.f32.gmra.mxu2 %vm413_vm2, %v1010_v41  ;;  %v1018_v11 = vsel %vm937_vm3, %v1015_v30, %v1017_v18  ;;  %v1646_v12 = vsel %vm1569_vm4, %v1643_v27, %v1645_v22 }
 0x18e   : > { %4057 = vmatmul.msk.f32.gmra.mxu3 %vm413_vm2, %v1014_v62 }
 0x18f   : > { %4107 = vmatmul.msk.f32.gmra.mxu0 %vm413_vm2, %v1642_v59 }
 0x190   : > { %v1208_v42 = vpop.f32.mrf.mxu2 }
 0x191   : > { %v1432_v44 = vpop.f32.mrf.mxu3  ;;  %v1314_v34 = vadd.f32 %v1208_v42, %v849_v53  ;;  %v851_v8 = vpop.f32.mrf.mxu1 }
 0x192   : > { %v852_v13 = vadd.f32 %v851_v8, %v4956_v36  ;;  %v4353_v36 = vld [vmem:[%s4481_s7 + $0x148] sm:$0xff] }
 0x193   : > { %v1538_v38 = vadd.f32 %v1432_v44, %v1314_v34  ;;  %v1019_v1 = vrot.slane %v4353_v36, 2  ;;  %v1647_v37 = vrot.slane %v4353_v36, 3 }
 0x194   : > { %3958 = vmatmul.msk.f32.gmra.mxu1 %vm413_vm2, %v5223_v15  ;;  %v1843_v41 = vpop.f32.mrf.mxu0 }
 0x195   : > { %v5274_v45 = vadd.f32 %v1840_v26, %v1538_v38  ;;  %4008 = vmatmul.msk.f32.gmra.mxu2 %vm413_vm2, %v1012_v57  ;;  %v1020_v9 = vsel %vm937_vm3, %v1017_v18, %v1019_v1  ;;  %v1648_v26 = vsel %vm1569_vm4, %v1645_v22, %v1647_v37 }
 0x196   : > { %4058 = vmatmul.msk.f32.gmra.mxu3 %vm413_vm2, %v1016_v56 }
 0x197   : > { %4108 = vmatmul.msk.f32.gmra.mxu0 %vm413_vm2, %v1644_v4 }
 0x198   : > { %v1211_v33 = vpop.f32.mrf.mxu2 }
 0x199   : > { %v1435_v5 = vpop.f32.mrf.mxu3  ;;  %v1315_v15 = vadd.f32 %v1211_v33, %v852_v13  ;;  %v854_v50 = vpop.f32.mrf.mxu1 }
 0x19a   : > { %v855_v24 = vadd.f32 %v854_v50, %v4973_v63  ;;  %v4354_v63 = vld [vmem:[%s4481_s7 + $0x150] sm:$0xff] }
 0x19b   : > { %v1539_v14 = vadd.f32 %v1435_v5, %v1315_v15  ;;  %v1021_v30 = vrot.slane %v4354_v63, 2  ;;  %v1649_v27 = vrot.slane %v4354_v63, 3 }
 0x19c   : > { %3959 = vmatmul.msk.f32.gmra.mxu1 %vm413_vm2, %v5238_v20  ;;  %v1846_v57 = vpop.f32.mrf.mxu0 }
 0x19d   : > { %v5285_v48 = vadd.f32 %v1843_v41, %v1539_v14  ;;  %4009 = vmatmul.msk.f32.gmra.mxu2 %vm413_vm2, %v1014_v62  ;;  %v1022_v8 = vsel %vm937_vm3, %v1019_v1, %v1021_v30  ;;  %v1650_v41 = vsel %vm1569_vm4, %v1647_v37, %v1649_v27 }
 0x19e   : > { %4059 = vmatmul.msk.f32.gmra.mxu3 %vm413_vm2, %v1018_v11 }
 0x19f   : > { %4109 = vmatmul.msk.f32.gmra.mxu0 %vm413_vm2, %v1646_v12 }
 0x1a0   : > { %v1214_v51 = vpop.f32.mrf.mxu2 }
 0x1a1   : > { %v1438_v21 = vpop.f32.mrf.mxu3  ;;  %v1316_v20 = vadd.f32 %v1214_v51, %v855_v24  ;;  %v857_v58 = vpop.f32.mrf.mxu1 }
 0x1a2   : > { %v858_v53 = vadd.f32 %v857_v58, %v4990_v43  ;;  %v4355_v43 = vld [vmem:[%s4481_s7 + $0x158] sm:$0xff] }
 0x1a3   : > { %v1540_v17 = vadd.f32 %v1438_v21, %v1316_v20  ;;  %v1023_v18 = vrot.slane %v4355_v43, 2  ;;  %v1651_v22 = vrot.slane %v4355_v43, 3 }
 0x1a4   : > { %3960 = vmatmul.msk.f32.gmra.mxu1 %vm413_vm2, %v5253_v32  ;;  %v1849_v62 = vpop.f32.mrf.mxu0 }
 0x1a5   : > { %v5296_v59 = vadd.f32 %v1846_v57, %v1540_v17  ;;  %4010 = vmatmul.msk.f32.gmra.mxu2 %vm413_vm2, %v1016_v56  ;;  %v1024_v50 = vsel %vm937_vm3, %v1021_v30, %v1023_v18  ;;  %v1652_v57 = vsel %vm1569_vm4, %v1649_v27, %v1651_v22 }
 0x1a6   : > { %4060 = vmatmul.msk.f32.gmra.mxu3 %vm413_vm2, %v1020_v9 }
 0x1a7   : > { %4110 = vmatmul.msk.f32.gmra.mxu0 %vm413_vm2, %v1648_v26 }
 0x1a8   : > { %v1217_v42 = vpop.f32.mrf.mxu2 }
 0x1a9   : > { %v1441_v44 = vpop.f32.mrf.mxu3  ;;  %v1317_v32 = vadd.f32 %v1217_v42, %v858_v53  ;;  %v860_v34 = vpop.f32.mrf.mxu1 }
 0x1aa   : > { %v861_v13 = vadd.f32 %v860_v34, %v5007_v55  ;;  %v4356_v55 = vld [vmem:[%s4481_s7 + $0x160] sm:$0xff] }
 0x1ab   : > { %v1541_v38 = vadd.f32 %v1441_v44, %v1317_v32  ;;  %v1025_v1 = vrot.slane %v4356_v55, 2  ;;  %v1653_v37 = vrot.slane %v4356_v55, 3 }
 0x1ac   : > { %3961 = vmatmul.msk.f32.gmra.mxu1 %vm413_vm2, %v4351_v19  ;;  %v1852_v56 = vpop.f32.mrf.mxu0 }
 0x1ad   : > { %v5306_v4 = vadd.f32 %v1849_v62, %v1541_v38  ;;  %4011 = vmatmul.msk.f32.gmra.mxu2 %vm413_vm2, %v1018_v11  ;;  %v1026_v58 = vsel %vm937_vm3, %v1023_v18, %v1025_v1  ;;  %v1654_v62 = vsel %vm1569_vm4, %v1651_v22, %v1653_v37 }
 0x1ae   : > { %4061 = vmatmul.msk.f32.gmra.mxu3 %vm413_vm2, %v1022_v8 }
 0x1af   : > { %4111 = vmatmul.msk.f32.gmra.mxu0 %vm413_vm2, %v1650_v41 }
 0x1b0   : > { %v1220_v33 = vpop.f32.mrf.mxu2 }
 0x1b1   : > { %v1444_v5 = vpop.f32.mrf.mxu3  ;;  %v1318_v19 = vadd.f32 %v1220_v33, %v861_v13  ;;  %v863_v15 = vpop.f32.mrf.mxu1  ;;  %v6243_v13 = vld [vmem:[#allocation5_spill] sm:$0xff] }
 0x1b2   : > { %v864_v24 = vadd.f32 %v863_v15, %v4832_v39  ;;  %v5331_v39 = vld [vmem:[%s4481_s7 + $0x168] sm:$0xff] }
 0x1b3   : > { %v1542_v14 = vadd.f32 %v1444_v5, %v1318_v19  ;;  %v1027_v30 = vrot.slane %v5331_v39, 2  ;;  %v1655_v44 = vrot.slane %v5331_v39, 3 }
 0x1b4   : > { %3962 = vmatmul.msk.f32.gmra.mxu1 %vm413_vm2, %v4352_v16  ;;  %v1855_v11 = vpop.f32.mrf.mxu0 }
 0x1b5   : > { %v5316_v12 = vadd.f32 %v1852_v56, %v1542_v14  ;;  %4012 = vmatmul.msk.f32.gmra.mxu2 %vm413_vm2, %v1020_v9  ;;  %v1028_v34 = vsel %vm937_vm3, %v1025_v1, %v1027_v30  ;;  %v1656_v56 = vsel %vm1569_vm4, %v1653_v37, %v1655_v44 }
 0x1b6   : > { %4062 = vmatmul.msk.f32.gmra.mxu3 %vm413_vm2, %v1024_v50 }
 0x1b7   : > { %4112 = vmatmul.msk.f32.gmra.mxu0 %vm413_vm2, %v1652_v57 }
 0x1b8   : > { %v1223_v51 = vpop.f32.mrf.mxu2 }
 0x1b9   : > { %v1447_v21 = vpop.f32.mrf.mxu3  ;;  %v1319_v16 = vadd.f32 %v1223_v51, %v864_v24  ;;  %v866_v20 = vpop.f32.mrf.mxu1  ;;  %v4359_v24 = vld [vmem:[%s4481_s7 + $0x178] sm:$0xff] }
 0x1ba   : > { %v867_v53 = vadd.f32 %v866_v20, %v4849_v46  ;;  %v5345_v46 = vld [vmem:[%s4481_s7 + $0x170] sm:$0xff]  ;;  %v1031_v51 = vrot.slane %v4359_v24, 2 }
 0x1bb   : > { %v1543_v17 = vadd.f32 %v1447_v21, %v1319_v16  ;;  %v1029_v18 = vrot.slane %v5345_v46, 2  ;;  %v1657_v22 = vrot.slane %v5345_v46, 3  ;;  %v6244_v21 = vld [vmem:[#allocation7_spill] sm:$0xff] }
 0x1bc   : > { %3963 = vmatmul.msk.f32.gmra.mxu1 %vm413_vm2, %v4353_v36  ;;  %v1858_v9 = vpop.f32.mrf.mxu0 }
 0x1bd   : > { %v5326_v26 = vadd.f32 %v1855_v11, %v1543_v17  ;;  %4013 = vmatmul.msk.f32.gmra.mxu2 %vm413_vm2, %v1022_v8  ;;  %v1030_v14 = vsel %vm937_vm3, %v1027_v30, %v1029_v18  ;;  %v1658_v57 = vsel %vm1569_vm4, %v1655_v44, %v1657_v22  ;;  %v1659_v17 = vrot.slane %v4359_v24, 3 }
 0x1be   : > { %4063 = vmatmul.msk.f32.gmra.mxu3 %vm413_vm2, %v1026_v58 }
 0x1bf   : > { %4113 = vmatmul.msk.f32.gmra.mxu0 %vm413_vm2, %v1654_v62  ;;  %v1032_v62 = vsel %vm937_vm3, %v1029_v18, %v1031_v51 }
 0x1c0   : > { %v1226_v42 = vpop.f32.mrf.mxu2 }
 0x1c1   : > { %v1450_v36 = vpop.f32.mrf.mxu3  ;;  %v1320_v27 = vadd.f32 %v1226_v42, %v867_v53  ;;  %v869_v32 = vpop.f32.mrf.mxu1  ;;  %v1660_v53 = vsel %vm1569_vm4, %v1657_v22, %v1659_v17 }
 0x1c2   : > { %v870_v33 = vadd.f32 %v869_v32, %v6243_v13 }
 0x1c3   : > { %v1544_v8 = vadd.f32 %v1450_v36, %v1320_v27  ;;  %v4360_v36 = vld [vmem:[%s4481_s7 + $0x180] sm:$0xff]  ;;  %v6245_v27 = vld [vmem:[#allocation9_spill] sm:$0xff] }
 0x1c4   : > { %3964 = vmatmul.msk.f32.gmra.mxu1 %vm413_vm2, %v4354_v63  ;;  %v1861_v38 = vpop.f32.mrf.mxu0  ;;  %v1033_v44 = vrot.slane %v4360_v36, 2 }
 0x1c5   : > { %v5340_v41 = vadd.f32 %v1858_v9, %v1544_v8  ;;  %4014 = vmatmul.msk.f32.gmra.mxu2 %vm413_vm2, %v1024_v50 }
 0x1c6   : > { %4064 = vmatmul.msk.f32.gmra.mxu3 %vm413_vm2, %v1028_v34  ;;  %v1034_v13 = vsel %vm937_vm3, %v1031_v51, %v1033_v44 }
 0x1c7   : > { %4114 = vmatmul.msk.f32.gmra.mxu0 %vm413_vm2, %v1656_v56  ;;  %v1661_v56 = vrot.slane %v4360_v36, 3 }
 0x1c8   : > { %v1229_v5 = vpop.f32.mrf.mxu2 }
 0x1c9   : > { %v1453_v63 = vpop.f32.mrf.mxu3  ;;  %v1321_v19 = vadd.f32 %v1229_v5, %v870_v33  ;;  %v872_v15 = vpop.f32.mrf.mxu1  ;;  %v259_v5 = vld [vmem:[%s4481_s7 + $0x188] sm:$0xff] }
 0x1ca   : > { %v873_v37 = vadd.f32 %v872_v15, %v6244_v21  ;;  %v6246_v15 = vld [vmem:[#allocation11_spill] sm:$0xff]  ;;  %v1663_v51 = vrot.slane %v259_v5, 3 }
 0x1cb   : > { %v1545_v50 = vadd.f32 %v1453_v63, %v1321_v19  ;;  %v1662_v63 = vsel %vm1569_vm4, %v1659_v17, %v1661_v56  ;;  %v1347_v19 = vrot.slane %v259_v5, 2 }
 0x1cc   : > { %3965 = vmatmul.msk.f32.gmra.mxu1 %vm413_vm2, %v4355_v43  ;;  %v1864_v11 = vpop.f32.mrf.mxu0  ;;  %v1664_v17 = vsel %vm1569_vm4, %v1661_v56, %v1663_v51 }
 0x1cd   : > { %v5354_v1 = vadd.f32 %v1861_v38, %v1545_v50  ;;  %4015 = vmatmul.msk.f32.gmra.mxu2 %vm413_vm2, %v1026_v58 }
 0x1ce   : > { %4065 = vmatmul.msk.f32.gmra.mxu3 %vm413_vm2, %v1030_v14 }
 0x1cf   : > { %4115 = vmatmul.msk.f32.gmra.mxu0 %vm413_vm2, %v1658_v57 }
 0x1d0   : > { %v1232_v16 = vpop.f32.mrf.mxu2 }
 0x1d1   : > { %v1456_v20 = vpop.f32.mrf.mxu3  ;;  %v1322_v43 = vadd.f32 %v1232_v16, %v873_v37  ;;  %v875_v9 = vpop.f32.mrf.mxu1  ;;  %v1348_v37 = vsel %vm937_vm3, %v1033_v44, %v1347_v19 }
 0x1d2   : > { %v876_v32 = vadd.f32 %v875_v9, %v6245_v27 }
 0x1d3   : > { %v1546_v30 = vadd.f32 %v1456_v20, %v1322_v43  ;;  %v260_v20 = vld [vmem:[%s4481_s7 + $0x190] sm:$0xff] }
 0x1d4   : > { %3966 = vmatmul.msk.f32.gmra.mxu1 %vm413_vm2, %v4356_v55  ;;  %v1867_v58 = vpop.f32.mrf.mxu0  ;;  %v1349_v9 = vrot.slane %v260_v20, 2 }
 0x1d5   : > { %v5364_v42 = vadd.f32 %v1864_v11, %v1546_v30  ;;  %4016 = vmatmul.msk.f32.gmra.mxu2 %vm413_vm2, %v1028_v34  ;;  %v6247_v30 = vld [vmem:[#allocation13_spill] sm:$0xff] }
 0x1d6   : > { %4066 = vmatmul.msk.f32.gmra.mxu3 %vm413_vm2, %v1032_v62 }
 0x1d7   : > { %4116 = vmatmul.msk.f32.gmra.mxu0 %vm413_vm2, %v1660_v53 }
 0x1d8   : > { %v1235_v8 = vpop.f32.mrf.mxu2 }
 0x1d9   : > { %v1459_v38 = vpop.f32.mrf.mxu3  ;;  %v1323_v55 = vadd.f32 %v1235_v8, %v876_v32  ;;  %v878_v18 = vpop.f32.mrf.mxu1  ;;  %v1350_v32 = vsel %vm937_vm3, %v1347_v19, %v1349_v9 }
 0x1da   : > { %v879_v50 = vadd.f32 %v878_v18, %v6246_v15  ;;  %v4364_v15 = vld [vmem:[%s4481_s7 + $0x28] sm:$0xff] }
 0x1db   : > { %v1547_v33 = vadd.f32 %v1459_v38, %v1323_v55  ;;  %v4361_v55 = vld [vmem:[%s4481_s7 + $0x10] sm:$0xff]  ;;  %v1982_v19 = vrot.slane %v4364_v15, 4 }
 0x1dc   : > { %3967 = vmatmul.msk.f32.gmra.mxu1 %vm413_vm2, %v5331_v39  ;;  %v1870_v34 = vpop.f32.mrf.mxu0  ;;  %v1977_v18 = vrot.slane %v4361_v55, 4 }
 0x1dd   : > { %v5376_v22 = vadd.f32 %v1867_v58, %v1547_v33  ;;  %4017 = vmatmul.msk.f32.gmra.mxu2 %vm413_vm2, %v1030_v14  ;;  %v4362_v33 = vld [vmem:[%s4481_s7 + $0x18] sm:$0xff] }
 0x1de   : > { %4067 = vmatmul.msk.f32.gmra.mxu3 %vm413_vm2, %v1034_v13  ;;  %v1978_v5 = vrot.slane %v4362_v33, 4 }
 0x1df   : > { %4117 = vmatmul.msk.f32.gmra.mxu0 %vm413_vm2, %v1662_v63 }
 0x1e0   : > { %v1238_v11 = vpop.f32.mrf.mxu2 }
 0x1e1   : > { %v1462_v57 = vpop.f32.mrf.mxu3  ;;  %v1324_v21 = vadd.f32 %v1238_v11, %v879_v50  ;;  %v881_v39 = vpop.f32.mrf.mxu1  ;;  %v2610_v11 = vrot.slane %v4364_v15, 5 }
 0x1e2   : > { %v882_v58 = vadd.f32 %v881_v39, %v6247_v30  ;;  %v3018_v39 = vrot.slane %v4364_v15, 6 }
 0x1e3   : > { %v1548_v16 = vadd.f32 %v1462_v57, %v1324_v21 }
 0x1e4   : > { %3968 = vmatmul.msk.f32.gmra.mxu1 %vm413_vm2, %v5345_v46  ;;  %v1873_v14 = vpop.f32.mrf.mxu0  ;;  %v1665_v46 = vrot.slane %v260_v20, 3  ;;  %v1979_v20 = vsel %vm510_vm0, %v1977_v18, %v1978_v5 }
 0x1e5   : > { %v5387_v43 = vadd.f32 %v1870_v34, %v1548_v16  ;;  %4018 = vmatmul.msk.f32.gmra.mxu2 %vm413_vm2, %v1032_v62  ;;  %v4363_v34 = vld [vmem:[%s4481_s7 + $0x20] sm:$0xff] }
 0x1e6   : > { %4068 = vmatmul.msk.f32.gmra.mxu3 %vm413_vm2, %v1348_v37  ;;  %v1666_v38 = vsel %vm1569_vm4, %v1663_v51, %v1665_v46  ;;  %v1980_v63 = vrot.slane %v4363_v34, 4  ;;  %v2609_v50 = vrot.slane %v4363_v34, 5 }
 0x1e7   : > { %4118 = vmatmul.msk.f32.gmra.mxu0 %vm413_vm2, %v1664_v17 }
 0x1e8   : > { %v1241_v53 = vpop.f32.mrf.mxu2  ;;  %v2611_v17 = vsel %vm2608_vm5, %v2609_v50, %v2610_v11 }
 0x1e9   : > { %v1465_v36 = vpop.f32.mrf.mxu3  ;;  %v1325_v44 = vadd.f32 %v1241_v53, %v882_v58  ;;  %v884_v27 = vpop.f32.mrf.mxu1 }
 0x1eb   : > { %v1549_v8 = vadd.f32 %v1465_v36, %v1325_v44  ;;  %v4365_v36 = vld [vmem:[%s4481_s7 + $0x30] sm:$0xff] }
 0x1ec   : > { %3969 = vmatmul.msk.f32.gmra.mxu1 %vm413_vm2, %v4359_v24  ;;  %v1876_v62 = vpop.f32.mrf.mxu0  ;;  %v6248_v24 = vld [vmem:[#allocation15_spill] sm:$0xff]  ;;  %v1984_v46 = vrot.slane %v4365_v36, 4  ;;  %v2612_v44 = vrot.slane %v4365_v36, 5  ;;  %v3020_v55 = vrot.slane %v4365_v36, 6 }
 0x1ed   : > { %v5396_v56 = vadd.f32 %v1873_v14, %v1549_v8  ;;  %4019 = vmatmul.msk.f32.gmra.mxu2 %vm413_vm2, %v1034_v13  ;;  %v885_v57 = vadd.f32 %v884_v27, %v6248_v24  ;;  %v3017_v13 = vrot.slane %v4363_v34, 6  ;;  %v1983_v14 = vsel %vm510_vm0, %v1980_v63, %v1982_v19  ;;  %v6249_v27 = vld [vmem:[#allocation17_spill] sm:$0xff] }
 0x1ee   : > { %4069 = vmatmul.msk.f32.gmra.mxu3 %vm413_vm2, %v1350_v32  ;;  %v1985_v34 = vsel %vm510_vm0, %v1982_v19, %v1984_v46  ;;  %v2613_v15 = vsel %vm2608_vm5, %v2610_v11, %v2612_v44 }
 0x1ef   : > { %4119 = vmatmul.msk.f32.gmra.mxu0 %vm413_vm2, %v1666_v38  ;;  %v3019_v58 = vsel %vm3016_vm6, %v3017_v13, %v3018_v39 }
 0x1f0   : > { %v1244_v51 = vpop.f32.mrf.mxu2 }
 0x1f1   : > { %v1468_v21 = vpop.f32.mrf.mxu3  ;;  %v1326_v37 = vadd.f32 %v1244_v51, %v885_v57  ;;  %v887_v16 = vpop.f32.mrf.mxu1  ;;  %v3021_v57 = vsel %vm3016_vm6, %v3018_v39, %v3020_v55 }
 0x1f2   : > { %v888_v32 = vadd.f32 %v887_v16, %v6249_v27 }
 0x1f3   : > { %v1550_v9 = vadd.f32 %v1468_v21, %v1326_v37  ;;  %v4366_v21 = vld [vmem:[%s4481_s7 + $0x38] sm:$0xff] }
 0x1f4   : > { %4122 = vmatmul.msk.f32.vlgmr.msra.gmra.mxu1 %vm413_vm2, %v1979_v20  ;;  %v1879_v30 = vpop.f32.mrf.mxu0  ;;  %v1986_v13 = vrot.slane %v4366_v21, 4  ;;  %v2614_v37 = vrot.slane %v4366_v21, 5  ;;  %v3022_v16 = vrot.slane %v4366_v21, 6 }
 0x1f5   : > { %v5411_v53 = vadd.f32 %v1876_v62, %v1550_v9  ;;  %4172 = vmatmul.msk.f32.vlgmr.msra.gmra.mxu2 %vm413_vm2, %v1983_v14  ;;  %v1981_v62 = vsel %vm510_vm0, %v1978_v5, %v1980_v63  ;;  %v6250_v5 = vld [vmem:[#allocation19_spill] sm:$0xff] }
 0x1f6   : > { %4222 = vmatmul.msk.f32.vlgmr.msra.gmra.mxu3 %vm413_vm2, %v2611_v17  ;;  %v1987_v39 = vsel %vm510_vm0, %v1984_v46, %v1986_v13  ;;  %v2615_v9 = vsel %vm2608_vm5, %v2612_v44, %v2614_v37  ;;  %v3023_v36 = vsel %vm3016_vm6, %v3020_v55, %v3022_v16 }
 0x1f7   : > { %4272 = vmatmul.msk.f32.vlgmr.msra.gmra.mxu0 %vm413_vm2, %v3019_v58 }
 0x1f8   : > { %v1247_v8 = vpop.f32.mrf.mxu2 }
 0x1f9   : > { %v1471_v38 = vpop.f32.mrf.mxu3  ;;  %v1327_v18 = vadd.f32 %v1247_v8, %v888_v32  ;;  %v890_v33 = vpop.f32.mrf.mxu1  ;;  %v4367_v32 = vld [vmem:[%s4481_s7 + $0x40] sm:$0xff] }
 0x1fa   : > { %v891_v63 = vadd.f32 %v890_v33, %v6250_v5  ;;  %v1988_v8 = vrot.slane %v4367_v32, 4 }
 0x1fb   : > { %v1551_v50 = vadd.f32 %v1471_v38, %v1327_v18  ;;  %v2616_v38 = vrot.slane %v4367_v32, 5  ;;  %v6251_v18 = vld [vmem:[#allocation21_spill] sm:$0xff] }
 0x1fc   : > { %4123 = vmatmul.msk.f32.gmra.mxu1 %vm413_vm2, %v1981_v62  ;;  %v1882_v24 = vpop.f32.mrf.mxu0  ;;  %v1989_v55 = vsel %vm510_vm0, %v1986_v13, %v1988_v8 }
 0x1fd   : > { %v5423_v51 = vadd.f32 %v1879_v30, %v1551_v50  ;;  %4173 = vmatmul.msk.f32.gmra.mxu2 %vm413_vm2, %v1985_v34  ;;  %v2617_v50 = vsel %vm2608_vm5, %v2614_v37, %v2616_v38 }
 0x1fe   : > { %4223 = vmatmul.msk.f32.gmra.mxu3 %vm413_vm2, %v2613_v15 }
 0x1ff   : > { %4273 = vmatmul.msk.f32.gmra.mxu0 %vm413_vm2, %v3021_v57 }
 0x200   : > { %v1250_v19 = vpop.f32.mrf.mxu2 }
 0x201   : > { %v1474_v11 = vpop.f32.mrf.mxu3  ;;  %v1328_v20 = vadd.f32 %v1250_v19, %v891_v63  ;;  %v893_v17 = vpop.f32.mrf.mxu1  ;;  %v4368_v63 = vld [vmem:[%s4481_s7 + $0x48] sm:$0xff] }
 0x202   : > { %v894_v33 = vadd.f32 %v893_v17, %v6251_v18  ;;  %v1990_v19 = vrot.slane %v4368_v63, 4 }
 0x203   : > { %v1552_v30 = vadd.f32 %v1474_v11, %v1328_v20  ;;  %v2618_v11 = vrot.slane %v4368_v63, 5  ;;  %v6252_v20 = vld [vmem:[#allocation23_spill] sm:$0xff] }
 0x204   : > { %4124 = vmatmul.msk.f32.gmra.mxu1 %vm413_vm2, %v1983_v14  ;;  %v1885_v58 = vpop.f32.mrf.mxu0  ;;  %v3024_v14 = vrot.slane %v4367_v32, 6 }
 0x205   : > { %v5434_v27 = vadd.f32 %v1882_v24, %v1552_v30  ;;  %4174 = vmatmul.msk.f32.gmra.mxu2 %vm413_vm2, %v1987_v39 }
 0x206   : > { %4224 = vmatmul.msk.f32.gmra.mxu3 %vm413_vm2, %v2615_v9  ;;  %v3025_v21 = vsel %vm3016_vm6, %v3022_v16, %v3024_v14  ;;  %v1991_v16 = vsel %vm510_vm0, %v1988_v8, %v1990_v19 }
 0x207   : > { %4274 = vmatmul.msk.f32.gmra.mxu0 %vm413_vm2, %v3023_v36 }
 0x208   : > { %v1253_v46 = vpop.f32.mrf.mxu2 }
 0x209   : > { %v1477_v44 = vpop.f32.mrf.mxu3  ;;  %v1329_v62 = vadd.f32 %v1253_v46, %v894_v33  ;;  %v896_v15 = vpop.f32.mrf.mxu1  ;;  %v4369_v46 = vld [vmem:[%s4481_s7 + $0x50] sm:$0xff] }
 0x20a   : > { %v897_v17 = vadd.f32 %v896_v15, %v6252_v20  ;;  %v6253_v15 = vld [vmem:[#allocation3_spill] sm:$0xff] }
 0x20b   : > { %v1553_v24 = vadd.f32 %v1477_v44, %v1329_v62  ;;  %v1992_v44 = vrot.slane %v4369_v46, 4  ;;  %v2620_v62 = vrot.slane %v4369_v46, 5 }
 0x20c   : > { %4125 = vmatmul.msk.f32.gmra.mxu1 %vm413_vm2, %v1985_v34  ;;  %v1888_v57 = vpop.f32.mrf.mxu0  ;;  %v3026_v34 = vrot.slane %v4368_v63, 6 }
 0x20d   : > { %v5445_v5 = vadd.f32 %v1885_v58, %v1553_v24  ;;  %4175 = vmatmul.msk.f32.gmra.mxu2 %vm413_vm2, %v1989_v55  ;;  %v2619_v58 = vsel %vm2608_vm5, %v2616_v38, %v2618_v11 }
 0x20e   : > { %4225 = vmatmul.msk.f32.gmra.mxu3 %vm413_vm2, %v2617_v50  ;;  %v3027_v18 = vsel %vm3016_vm6, %v3024_v14, %v3026_v34  ;;  %v1993_v14 = vsel %vm510_vm0, %v1990_v19, %v1992_v44 }
 0x20f   : > { %4275 = vmatmul.msk.f32.gmra.mxu0 %vm413_vm2, %v3025_v21 }
 0x210   : > { %v1256_v13 = vpop.f32.mrf.mxu2 }
 0x211   : > { %v1480_v37 = vpop.f32.mrf.mxu3  ;;  %v1330_v9 = vadd.f32 %v1256_v13, %v897_v17  ;;  %v899_v30 = vpop.f32.mrf.mxu1 }
 0x212   : > { %v900_v50 = vadd.f32 %v899_v30, %v6253_v15 }
 0x213   : > { %v1554_v36 = vadd.f32 %v1480_v37, %v1330_v9  ;;  %v4370_v37 = vld [vmem:[%s4481_s7 + $0x58] sm:$0xff] }
 0x214   : > { %4126 = vmatmul.msk.f32.gmra.mxu1 %vm413_vm2, %v1987_v39  ;;  %v1891_v32 = vpop.f32.mrf.mxu0  ;;  %v3028_v39 = vrot.slane %v4369_v46, 6  ;;  %v1994_v9 = vrot.slane %v4370_v37, 4  ;;  %v2622_v30 = vrot.slane %v4370_v37, 5 }
 0x215   : > { %v5456_v33 = vadd.f32 %v1888_v57, %v1554_v36  ;;  %4176 = vmatmul.msk.f32.gmra.mxu2 %vm413_vm2, %v1991_v16  ;;  %v2621_v57 = vsel %vm2608_vm5, %v2618_v11, %v2620_v62 }
 0x216   : > { %4226 = vmatmul.msk.f32.gmra.mxu3 %vm413_vm2, %v2619_v58  ;;  %v3029_v17 = vsel %vm3016_vm6, %v3026_v34, %v3028_v39  ;;  %v6254_v58 = vld [vmem:[#allocation4_spill] sm:$0xff]  ;;  %v1995_v34 = vsel %vm510_vm0, %v1992_v44, %v1994_v9 }
 0x217   : > { %4276 = vmatmul.msk.f32.gmra.mxu0 %vm413_vm2, %v3027_v18 }
 0x218   : > { %v1259_v8 = vpop.f32.mrf.mxu2 }
 0x219   : > { %v1483_v38 = vpop.f32.mrf.mxu3  ;;  %v1331_v24 = vadd.f32 %v1259_v8, %v900_v50  ;;  %v902_v21 = vpop.f32.mrf.mxu1 }
 0x21a   : > { %v903_v36 = vadd.f32 %v902_v21, %v6254_v58 }
 0x21b   : > { %v1555_v63 = vadd.f32 %v1483_v38, %v1331_v24  ;;  %v4371_v24 = vld [vmem:[%s4481_s7 + $0x60] sm:$0xff] }
 0x21c   : > { %4127 = vmatmul.msk.f32.gmra.mxu1 %vm413_vm2, %v1989_v55  ;;  %v1894_v20 = vpop.f32.mrf.mxu0  ;;  %v3030_v55 = vrot.slane %v4370_v37, 6  ;;  %v1996_v21 = vrot.slane %v4371_v24, 4 }
 0x21d   : > { %v5467_v13 = vadd.f32 %v1891_v32, %v1555_v63  ;;  %4177 = vmatmul.msk.f32.gmra.mxu2 %vm413_vm2, %v1993_v14  ;;  %v2623_v32 = vsel %vm2608_vm5, %v2620_v62, %v2622_v30  ;;  %v6255_v63 = vld [vmem:[#allocation6_spill] sm:$0xff] }
 0x21e   : > { %4227 = vmatmul.msk.f32.gmra.mxu3 %vm413_vm2, %v2621_v57  ;;  %v3031_v8 = vsel %vm3016_vm6, %v3028_v39, %v3030_v55  ;;  %v2624_v57 = vrot.slane %v4371_v24, 5  ;;  %v1997_v39 = vsel %vm510_vm0, %v1994_v9, %v1996_v21 }
 0x21f   : > { %4277 = vmatmul.msk.f32.gmra.mxu0 %vm413_vm2, %v3029_v17 }
 0x220   : > { %v1262_v19 = vpop.f32.mrf.mxu2 }
 0x221   : > { %v1486_v11 = vpop.f32.mrf.mxu3  ;;  %v1332_v18 = vadd.f32 %v1262_v19, %v903_v36  ;;  %v905_v46 = vpop.f32.mrf.mxu1 }
 0x222   : > { %v906_v17 = vadd.f32 %v905_v46, %v6255_v63  ;;  %v4372_v46 = vld [vmem:[%s4481_s7 + $0x68] sm:$0xff] }
 0x223   : > { %v1556_v15 = vadd.f32 %v1486_v11, %v1332_v18 }
 0x224   : > { %4128 = vmatmul.msk.f32.gmra.mxu1 %vm413_vm2, %v1991_v16  ;;  %v1897_v50 = vpop.f32.mrf.mxu0  ;;  %v3032_v16 = vrot.slane %v4371_v24, 6 }
 0x225   : > { %v5478_v38 = vadd.f32 %v1894_v20, %v1556_v15  ;;  %4178 = vmatmul.msk.f32.gmra.mxu2 %vm413_vm2, %v1995_v34  ;;  %v2625_v20 = vsel %vm2608_vm5, %v2622_v30, %v2624_v57  ;;  %v2626_v15 = vrot.slane %v4372_v46, 5 }
 0x226   : > { %4228 = vmatmul.msk.f32.gmra.mxu3 %vm413_vm2, %v2623_v32  ;;  %v3033_v11 = vsel %vm3016_vm6, %v3030_v55, %v3032_v16  ;;  %v1998_v32 = vrot.slane %v4372_v46, 4 }
 0x227   : > { %4278 = vmatmul.msk.f32.gmra.mxu0 %vm413_vm2, %v3031_v8  ;;  %v6256_v8 = vld [vmem:[#allocation8_spill] sm:$0xff] }
 0x228   : > { %v1265_v44 = vpop.f32.mrf.mxu2  ;;  %v1999_v55 = vsel %vm510_vm0, %v1996_v21, %v1998_v32 }
 0x229   : > { %v1489_v62 = vpop.f32.mrf.mxu3  ;;  %v1333_v37 = vadd.f32 %v1265_v44, %v906_v17  ;;  %v908_v58 = vpop.f32.mrf.mxu1 }
 0x22a   : > { %v909_v24 = vadd.f32 %v908_v58, %v6256_v8  ;;  %v4373_v58 = vld [vmem:[%s4481_s7 + $0x70] sm:$0xff] }
 0x22b   : > { %v1557_v36 = vadd.f32 %v1489_v62, %v1333_v37 }
 0x22c   : > { %4129 = vmatmul.msk.f32.gmra.mxu1 %vm413_vm2, %v1993_v14  ;;  %v1900_v19 = vpop.f32.mrf.mxu0  ;;  %v3034_v14 = vrot.slane %v4372_v46, 6  ;;  %v6257_v46 = vld [vmem:[#allocation10_spill] sm:$0xff] }
 0x22d   : > { %v5489_v18 = vadd.f32 %v1897_v50, %v1557_v36  ;;  %4179 = vmatmul.msk.f32.gmra.mxu2 %vm413_vm2, %v1997_v39  ;;  %v2627_v50 = vsel %vm2608_vm5, %v2624_v57, %v2626_v15  ;;  %v2000_v36 = vrot.slane %v4373_v58, 4 }
 0x22e   : > { %4229 = vmatmul.msk.f32.gmra.mxu3 %vm413_vm2, %v2625_v20  ;;  %v3035_v37 = vsel %vm3016_vm6, %v3032_v16, %v3034_v14 }
 0x22f   : > { %4279 = vmatmul.msk.f32.gmra.mxu0 %vm413_vm2, %v3033_v11  ;;  %v2628_v11 = vrot.slane %v4373_v58, 5  ;;  %v2001_v16 = vsel %vm510_vm0, %v1998_v32, %v2000_v36 }
 0x230   : > { %v1268_v9 = vpop.f32.mrf.mxu2 }
 0x231   : > { %v1492_v30 = vpop.f32.mrf.mxu3  ;;  %v1334_v63 = vadd.f32 %v1268_v9, %v909_v24  ;;  %v911_v17 = vpop.f32.mrf.mxu1 }
 0x232   : > { %v912_v8 = vadd.f32 %v911_v17, %v6257_v46  ;;  %v4374_v17 = vld [vmem:[%s4481_s7 + $0x78] sm:$0xff]  ;;  %v6259_v46 = vld [vmem:[#allocation12_spill] sm:$0xff] }
 0x233   : > { %v1558_v44 = vadd.f32 %v1492_v30, %v1334_v63 }
 0x234   : > { %4130 = vmatmul.msk.f32.gmra.mxu1 %vm413_vm2, %v1995_v34  ;;  %v1903_v62 = vpop.f32.mrf.mxu0  ;;  %v3036_v34 = vrot.slane %v4373_v58, 6  ;;  %v2630_v58 = vrot.slane %v4374_v17, 5 }
 0x235   : > { %v5500_v20 = vadd.f32 %v1900_v19, %v1558_v44  ;;  %4180 = vmatmul.msk.f32.gmra.mxu2 %vm413_vm2, %v1999_v55  ;;  %v2629_v19 = vsel %vm2608_vm5, %v2626_v15, %v2628_v11 }
 0x236   : > { %4230 = vmatmul.msk.f32.gmra.mxu3 %vm413_vm2, %v2627_v50  ;;  %v3037_v50 = vsel %vm3016_vm6, %v3034_v14, %v3036_v34 }
 0x237   : > { %4280 = vmatmul.msk.f32.gmra.mxu0 %vm413_vm2, %v3035_v37  ;;  %v2002_v37 = vrot.slane %v4374_v17, 4 }
 0x238   : > { %v1271_v21 = vpop.f32.mrf.mxu2 }
 0x239   : > { %v1495_v57 = vpop.f32.mrf.mxu3  ;;  %v1335_v24 = vadd.f32 %v1271_v21, %v912_v8  ;;  %v914_v9 = vpop.f32.mrf.mxu1  ;;  %v2003_v14 = vsel %vm510_vm0, %v2000_v36, %v2002_v37 }
 0x23a   : > { %v915_v8 = vadd.f32 %v914_v9, %v6259_v46  ;;  %v4375_v9 = vld [vmem:[%s4481_s7 + $0x80] sm:$0xff] }
 0x23b   : > { %v1559_v30 = vadd.f32 %v1495_v57, %v1335_v24  ;;  %v6261_v46 = vld [vmem:[#allocation14_spill] sm:$0xff] }
 0x23c   : > { %4131 = vmatmul.msk.f32.gmra.mxu1 %vm413_vm2, %v1997_v39  ;;  %v1906_v63 = vpop.f32.mrf.mxu0  ;;  %v3038_v39 = vrot.slane %v4374_v17, 6  ;;  %v2632_v17 = vrot.slane %v4375_v9, 5 }
 0x23d   : > { %v5511_v44 = vadd.f32 %v1903_v62, %v1559_v30  ;;  %4181 = vmatmul.msk.f32.gmra.mxu2 %vm413_vm2, %v2001_v16  ;;  %v2631_v62 = vsel %vm2608_vm5, %v2628_v11, %v2630_v58 }
 0x23e   : > { %4231 = vmatmul.msk.f32.gmra.mxu3 %vm413_vm2, %v2629_v19  ;;  %v3039_v30 = vsel %vm3016_vm6, %v3036_v34, %v3038_v39 }
 0x23f   : > { %6258 = vst [vmem:[#allocation5_spill] sm:$0xff] %v5511_v44  ;;  %4281 = vmatmul.msk.f32.gmra.mxu0 %vm413_vm2, %v3037_v50  ;;  %v2004_v50 = vrot.slane %v4375_v9, 4 }
 0x240   : > { %v1274_v32 = vpop.f32.mrf.mxu2 }
 0x241   : > { %v1498_v15 = vpop.f32.mrf.mxu3  ;;  %v1336_v21 = vadd.f32 %v1274_v32, %v915_v8  ;;  %v917_v57 = vpop.f32.mrf.mxu1  ;;  %v2005_v34 = vsel %vm510_vm0, %v2002_v37, %v2004_v50 }
 0x242   : > { %v918_v8 = vadd.f32 %v917_v57, %v6261_v46  ;;  %v4376_v57 = vld [vmem:[%s4481_s7 + $0x88] sm:$0xff] }
 0x243   : > { %v1560_v24 = vadd.f32 %v1498_v15, %v1336_v21  ;;  %v6263_v46 = vld [vmem:[#allocation16_spill] sm:$0xff] }
 0x244   : > { %4132 = vmatmul.msk.f32.gmra.mxu1 %vm413_vm2, %v1999_v55  ;;  %v1909_v19 = vpop.f32.mrf.mxu0  ;;  %v3040_v55 = vrot.slane %v4375_v9, 6  ;;  %v2634_v9 = vrot.slane %v4376_v57, 5 }
 0x245   : > { %v5522_v44 = vadd.f32 %v1906_v63, %v1560_v24  ;;  %4182 = vmatmul.msk.f32.gmra.mxu2 %vm413_vm2, %v2003_v14  ;;  %v2633_v63 = vsel %vm2608_vm5, %v2630_v58, %v2632_v17 }
 0x246   : > { %4232 = vmatmul.msk.f32.gmra.mxu3 %vm413_vm2, %v2631_v62  ;;  %v3041_v24 = vsel %vm3016_vm6, %v3038_v39, %v3040_v55 }
 0x247   : > { %6260 = vst [vmem:[#allocation7_spill] sm:$0xff] %v5522_v44  ;;  %4282 = vmatmul.msk.f32.gmra.mxu0 %vm413_vm2, %v3039_v30  ;;  %v2006_v30 = vrot.slane %v4376_v57, 4 }
 0x248   : > { %v1277_v36 = vpop.f32.mrf.mxu2 }
 0x249   : > { %v1501_v11 = vpop.f32.mrf.mxu3  ;;  %v1337_v32 = vadd.f32 %v1277_v36, %v918_v8  ;;  %v920_v15 = vpop.f32.mrf.mxu1  ;;  %v2007_v39 = vsel %vm510_vm0, %v2004_v50, %v2006_v30 }
 0x24a   : > { %v921_v8 = vadd.f32 %v920_v15, %v6263_v46  ;;  %v4377_v15 = vld [vmem:[%s4481_s7 + $0x90] sm:$0xff]  ;;  %v6265_v46 = vld [vmem:[#allocation18_spill] sm:$0xff] }
 0x24b   : > { %v1561_v21 = vadd.f32 %v1501_v11, %v1337_v32 }
 0x24c   : > { %4133 = vmatmul.msk.f32.gmra.mxu1 %vm413_vm2, %v2001_v16  ;;  %v1912_v62 = vpop.f32.mrf.mxu0  ;;  %v3042_v16 = vrot.slane %v4376_v57, 6  ;;  %v2636_v57 = vrot.slane %v4377_v15, 5 }
 0x24d   : > { %v5533_v44 = vadd.f32 %v1909_v19, %v1561_v21  ;;  %4183 = vmatmul.msk.f32.gmra.mxu2 %vm413_vm2, %v2005_v34  ;;  %v2635_v19 = vsel %vm2608_vm5, %v2632_v17, %v2634_v9 }
 0x24e   : > { %4233 = vmatmul.msk.f32.gmra.mxu3 %vm413_vm2, %v2633_v63  ;;  %v3043_v21 = vsel %vm3016_vm6, %v3040_v55, %v3042_v16 }
 0x24f   : > { %6262 = vst [vmem:[#allocation9_spill] sm:$0xff] %v5533_v44  ;;  %4283 = vmatmul.msk.f32.gmra.mxu0 %vm413_vm2, %v3041_v24  ;;  %v2008_v24 = vrot.slane %v4377_v15, 4 }
 0x250   : > { %v1280_v37 = vpop.f32.mrf.mxu2 }
 0x251   : > { %v1504_v58 = vpop.f32.mrf.mxu3  ;;  %v1338_v36 = vadd.f32 %v1280_v37, %v921_v8  ;;  %v923_v11 = vpop.f32.mrf.mxu1  ;;  %v2009_v55 = vsel %vm510_vm0, %v2006_v30, %v2008_v24 }
 0x252   : > { %v924_v8 = vadd.f32 %v923_v11, %v6265_v46  ;;  %v4378_v11 = vld [vmem:[%s4481_s7 + $0x98] sm:$0xff]  ;;  %v6267_v46 = vld [vmem:[#allocation20_spill] sm:$0xff] }
 0x253   : > { %v1562_v32 = vadd.f32 %v1504_v58, %v1338_v36 }
 0x254   : > { %4134 = vmatmul.msk.f32.gmra.mxu1 %vm413_vm2, %v2003_v14  ;;  %v1915_v63 = vpop.f32.mrf.mxu0  ;;  %v3044_v14 = vrot.slane %v4377_v15, 6  ;;  %v2638_v15 = vrot.slane %v4378_v11, 5 }
 0x255   : > { %v5544_v44 = vadd.f32 %v1912_v62, %v1562_v32  ;;  %4184 = vmatmul.msk.f32.gmra.mxu2 %vm413_vm2, %v2007_v39  ;;  %v2637_v62 = vsel %vm2608_vm5, %v2634_v9, %v2636_v57 }
 0x256   : > { %4234 = vmatmul.msk.f32.gmra.mxu3 %vm413_vm2, %v2635_v19  ;;  %v3045_v32 = vsel %vm3016_vm6, %v3042_v16, %v3044_v14 }
 0x257   : > { %6264 = vst [vmem:[#allocation11_spill] sm:$0xff] %v5544_v44  ;;  %4284 = vmatmul.msk.f32.gmra.mxu0 %vm413_vm2, %v3043_v21  ;;  %v2010_v21 = vrot.slane %v4378_v11, 4 }
 0x258   : > { %v1283_v50 = vpop.f32.mrf.mxu2 }
 0x259   : > { %v1507_v17 = vpop.f32.mrf.mxu3  ;;  %v1339_v37 = vadd.f32 %v1283_v50, %v924_v8  ;;  %v926_v58 = vpop.f32.mrf.mxu1  ;;  %v2011_v16 = vsel %vm510_vm0, %v2008_v24, %v2010_v21 }
 0x25a   : > { %v927_v8 = vadd.f32 %v926_v58, %v6267_v46  ;;  %v4379_v58 = vld [vmem:[%s4481_s7 + $0xa0] sm:$0xff] }
 0x25b   : > { %v1563_v36 = vadd.f32 %v1507_v17, %v1339_v37  ;;  %v6269_v46 = vld [vmem:[#allocation22_spill] sm:$0xff] }
 0x25c   : > { %4135 = vmatmul.msk.f32.gmra.mxu1 %vm413_vm2, %v2005_v34  ;;  %v1918_v19 = vpop.f32.mrf.mxu0  ;;  %v3046_v34 = vrot.slane %v4378_v11, 6  ;;  %v2640_v11 = vrot.slane %v4379_v58, 5 }
 0x25d   : > { %v5555_v44 = vadd.f32 %v1915_v63, %v1563_v36  ;;  %4185 = vmatmul.msk.f32.gmra.mxu2 %vm413_vm2, %v2009_v55  ;;  %v2639_v63 = vsel %vm2608_vm5, %v2636_v57, %v2638_v15 }
 0x25e   : > { %4235 = vmatmul.msk.f32.gmra.mxu3 %vm413_vm2, %v2637_v62  ;;  %v3047_v36 = vsel %vm3016_vm6, %v3044_v14, %v3046_v34 }
 0x25f   : > { %6266 = vst [vmem:[#allocation13_spill] sm:$0xff] %v5555_v44  ;;  %4285 = vmatmul.msk.f32.gmra.mxu0 %vm413_vm2, %v3045_v32  ;;  %v2012_v32 = vrot.slane %v4379_v58, 4 }
 0x260   : > { %v1286_v30 = vpop.f32.mrf.mxu2 }
 0x261   : > { %v1510_v9 = vpop.f32.mrf.mxu3  ;;  %v1340_v50 = vadd.f32 %v1286_v30, %v927_v8  ;;  %v929_v17 = vpop.f32.mrf.mxu1  ;;  %v2013_v14 = vsel %vm510_vm0, %v2010_v21, %v2012_v32 }
 0x262   : > { %v930_v8 = vadd.f32 %v929_v17, %v6269_v46  ;;  %v4380_v17 = vld [vmem:[%s4481_s7 + $0xa8] sm:$0xff] }
 0x263   : > { %v1564_v37 = vadd.f32 %v1510_v9, %v1340_v50  ;;  %v6271_v46 = vld [vmem:[#allocation24_spill] sm:$0xff] }
 0x264   : > { %4136 = vmatmul.msk.f32.gmra.mxu1 %vm413_vm2, %v2007_v39  ;;  %v1921_v62 = vpop.f32.mrf.mxu0  ;;  %v3048_v39 = vrot.slane %v4379_v58, 6  ;;  %v2642_v58 = vrot.slane %v4380_v17, 5 }
 0x265   : > { %v5566_v44 = vadd.f32 %v1918_v19, %v1564_v37  ;;  %4186 = vmatmul.msk.f32.gmra.mxu2 %vm413_vm2, %v2011_v16  ;;  %v2641_v19 = vsel %vm2608_vm5, %v2638_v15, %v2640_v11 }
 0x266   : > { %4236 = vmatmul.msk.f32.gmra.mxu3 %vm413_vm2, %v2639_v63  ;;  %v3049_v37 = vsel %vm3016_vm6, %v3046_v34, %v3048_v39 }
 0x267   : > { %6268 = vst [vmem:[#allocation15_spill] sm:$0xff] %v5566_v44  ;;  %4286 = vmatmul.msk.f32.gmra.mxu0 %vm413_vm2, %v3047_v36  ;;  %v2014_v36 = vrot.slane %v4380_v17, 4 }
 0x268   : > { %v1289_v24 = vpop.f32.mrf.mxu2 }
 0x269   : > { %v1513_v57 = vpop.f32.mrf.mxu3  ;;  %v1341_v30 = vadd.f32 %v1289_v24, %v930_v8  ;;  %v932_v9 = vpop.f32.mrf.mxu1  ;;  %v2015_v34 = vsel %vm510_vm0, %v2012_v32, %v2014_v36 }
 0x26a   : > { %v933_v8 = vadd.f32 %v932_v9, %v6271_v46  ;;  %v4381_v9 = vld [vmem:[%s4481_s7 + $0xb0] sm:$0xff] }
 0x26b   : > { %v1565_v50 = vadd.f32 %v1513_v57, %v1341_v30 }
 0x26c   : > { %4137 = vmatmul.msk.f32.gmra.mxu1 %vm413_vm2, %v2009_v55  ;;  %v1924_v63 = vpop.f32.mrf.mxu0  ;;  %v3050_v55 = vrot.slane %v4380_v17, 6  ;;  %v2644_v17 = vrot.slane %v4381_v9, 5 }
 0x26d   : > { %v5577_v44 = vadd.f32 %v1921_v62, %v1565_v50  ;;  %4187 = vmatmul.msk.f32.gmra.mxu2 %vm413_vm2, %v2013_v14  ;;  %v2643_v62 = vsel %vm2608_vm5, %v2640_v11, %v2642_v58 }
 0x26e   : > { %4237 = vmatmul.msk.f32.gmra.mxu3 %vm413_vm2, %v2641_v19  ;;  %v3051_v50 = vsel %vm3016_vm6, %v3048_v39, %v3050_v55 }
 0x26f   : > { %6270 = vst [vmem:[#allocation17_spill] sm:$0xff] %v5577_v44  ;;  %4287 = vmatmul.msk.f32.gmra.mxu0 %vm413_vm2, %v3049_v37  ;;  %v2016_v37 = vrot.slane %v4381_v9, 4 }
 0x270   : > { %v1292_v21 = vpop.f32.mrf.mxu2 }
 0x271   : > { %v1516_v15 = vpop.f32.mrf.mxu3  ;;  %v1342_v24 = vadd.f32 %v1292_v21, %v933_v8  ;;  %v2190_v57 = vpop.f32.mrf.mxu1  ;;  %v2017_v39 = vsel %vm510_vm0, %v2014_v36, %v2016_v37 }
 0x272   : > { %v2334_v46 = vadd.f32 %v2190_v57, %v5038_v60 }
 0x273   : > { %v1566_v30 = vadd.f32 %v1516_v15, %v1342_v24  ;;  %v5600_v24 = vld [vmem:[%s6217_s2] ss:$0 sm:$0xff] }
 0x274   : > { %4138 = vmatmul.msk.f32.gmra.mxu1 %vm413_vm2, %v2011_v16  ;;  %v3230_v19 = vpop.f32.mrf.mxu0  ;;  %v3052_v16 = vrot.slane %v4381_v9, 6 }
 0x275   : > { %v5588_v44 = vadd.f32 %v1924_v63, %v1566_v30  ;;  %4188 = vmatmul.msk.f32.gmra.mxu2 %vm413_vm2, %v2015_v34  ;;  %v2645_v63 = vsel %vm2608_vm5, %v2642_v58, %v2644_v17  ;;  %v4382_v30 = vld [vmem:[%s4481_s7 + $0xb8] sm:$0xff] }
 0x276   : > { %4238 = vmatmul.msk.f32.gmra.mxu3 %vm413_vm2, %v2643_v62  ;;  %v3053_v57 = vsel %vm3016_vm6, %v3050_v55, %v3052_v16  ;;  %v2018_v36 = vrot.slane %v4382_v30, 4 }
 0x277   : > { %6272 = vst [vmem:[#allocation19_spill] sm:$0xff] %v5588_v44  ;;  %4288 = vmatmul.msk.f32.gmra.mxu0 %vm413_vm2, %v3051_v50  ;;  %v2646_v50 = vrot.slane %v4382_v30, 5 }
 0x278   : > { %v2414_v32 = vpop.f32.mrf.mxu2 }
 0x279   : > { %v2822_v11 = vpop.f32.mrf.mxu3  ;;  %v2558_v8 = vadd.f32 %v2414_v32, %v2334_v46  ;;  %v2193_v21 = vpop.f32.mrf.mxu1  ;;  %v5612_v46 = vld [vmem:[%s6218_s3] ss:$0 sm:$0xff] }
 0x27a   : > { %v2335_v58 = vadd.f32 %v2193_v21, %v5050_v10  ;;  %v2647_v10 = vsel %vm2608_vm5, %v2644_v17, %v2646_v50 }
 0x27b   : > { %v2966_v15 = vadd.f32 %v2822_v11, %v2558_v8 }
 0x27c   : > { %4139 = vmatmul.msk.f32.gmra.mxu1 %vm413_vm2, %v2013_v14  ;;  %v3233_v60 = vpop.f32.mrf.mxu0 }
 0x27d   : > { %v3374_v62 = vadd.f32 %v3230_v19, %v2966_v15  ;;  %4189 = vmatmul.msk.f32.gmra.mxu2 %vm413_vm2, %v2017_v39  ;;  %v3054_v19 = vrot.slane %v4382_v30, 6 }
 0x27e   : > { %4239 = vmatmul.msk.f32.gmra.mxu3 %vm413_vm2, %v2645_v63  ;;  %v2019_v63 = vsel %vm510_vm0, %v2016_v37, %v2018_v36  ;;  %v4383_v37 = vld [vmem:[%s4481_s7 + $0xc0] sm:$0xff] }
 0x27f   : > { %v3426_v9 = vadd.f32 %v5600_v24, %v3374_v62  ;;  %4289 = vmatmul.msk.f32.gmra.mxu0 %vm413_vm2, %v3053_v57  ;;  %v3055_v57 = vsel %vm3016_vm6, %v3052_v16, %v3054_v19  ;;  %v3056_v16 = vrot.slane %v4383_v37, 6 }
 0x280   : > { %v2417_v14 = vpop.f32.mrf.mxu2 }
 0x281   : > { %v2825_v55 = vpop.f32.mrf.mxu3  ;;  %v2559_v32 = vadd.f32 %v2417_v14, %v2335_v58  ;;  %v2196_v11 = vpop.f32.mrf.mxu1  ;;  %v3474_v8 = vmax.f32 %v3426_v9, 0.0  ;;  %v2020_v58 = vrot.slane %v4383_v37, 4  ;;  %v2648_v9 = vrot.slane %v4383_v37, 5  ;;  %v4384_v37 = vld [vmem:[%s4481_s7 + $0xc8] sm:$0xff] }
 0x282   : > { %v2336_v17 = vadd.f32 %v2196_v11, %v5062_v2 }
 0x283   : > { %v2967_v21 = vadd.f32 %v2825_v55, %v2559_v32  ;;  %v3526_v15 = vmul.f32 %v5612_v46, %v3474_v8 }
 0x284   : > { %4140 = vmatmul.msk.f32.gmra.mxu1 %vm413_vm2, %v2015_v34  ;;  %v3236_v62 = vpop.f32.mrf.mxu0 }
 0x285   : > { %v3375_v44 = vadd.f32 %v3233_v60, %v2967_v21  ;;  %4190 = vmatmul.msk.f32.gmra.mxu2 %vm413_vm2, %v2019_v63  ;;  %v3575_v30 = vsel %vm3574_vm7, %v3526_v15, 0.0  ;;  %v2021_v21 = vsel %vm510_vm0, %v2018_v36, %v2020_v58  ;;  %v2022_v36 = vrot.slane %v4384_v37, 4 }
 0x286   : > { %4240 = vmatmul.msk.f32.gmra.mxu3 %vm413_vm2, %v2647_v10  ;;  %3576 = vadd.xlane.f32.xlu0 %v3575_v30  ;;  %v2649_v10 = vsel %vm2608_vm5, %v2646_v50, %v2648_v9 }
 0x287   : > { %v3427_v14 = vadd.f32 %v5600_v24, %v3375_v44  ;;  %4290 = vmatmul.msk.f32.gmra.mxu0 %vm413_vm2, %v3055_v57  ;;  %v3057_v44 = vsel %vm3016_vm6, %v3054_v19, %v3056_v16  ;;  %v3058_v19 = vrot.slane %v4384_v37, 6 }
 0x288   : > { %v2420_v34 = vpop.f32.mrf.mxu2 }
 0x289   : > { %v2828_v55 = vpop.f32.mrf.mxu3  ;;  %v3475_v60 = vmax.f32 %v3427_v14, 0.0  ;;  %v2560_v32 = vadd.f32 %v2420_v34, %v2336_v17  ;;  %v2199_v8 = vpop.f32.mrf.mxu1  ;;  %v2650_v17 = vrot.slane %v4384_v37, 5 }
 0x28a   : > { %v2337_v50 = vadd.f32 %v2199_v8, %v5074_v6  ;;  %v3059_v8 = vsel %vm3016_vm6, %v3056_v16, %v3058_v19 }
 0x28b   : > { %v2968_v15 = vadd.f32 %v2828_v55, %v2560_v32  ;;  %v3527_v30 = vmul.f32 %v5612_v46, %v3475_v60  ;;  %v2023_v32 = vsel %vm510_vm0, %v2020_v58, %v2022_v36 }
 0x28c   : > { %4141 = vmatmul.msk.f32.gmra.mxu1 %vm413_vm2, %v2017_v39  ;;  %v3239_v2 = vpop.f32.mrf.mxu0 }
 0x28d   : > { %v3376_v11 = vadd.f32 %v3236_v62, %v2968_v15  ;;  %4191 = vmatmul.msk.f32.gmra.mxu2 %vm413_vm2, %v2021_v21  ;;  %v3578_v57 = vsel %vm3574_vm7, %v3527_v30, 0.0 }
 0x28e   : > { %4241 = vmatmul.msk.f32.gmra.mxu3 %vm413_vm2, %v2649_v10  ;;  %3579 = vadd.xlane.f32.xlu0 %v3578_v57  ;;  %v2651_v10 = vsel %vm2608_vm5, %v2648_v9, %v2650_v17  ;;  %v4385_v57 = vld [vmem:[%s4481_s7 + $0xd0] sm:$0xff] }
 0x28f   : > { %v3428_v14 = vadd.f32 %v5600_v24, %v3376_v11  ;;  %4291 = vmatmul.msk.f32.gmra.mxu0 %vm413_vm2, %v3057_v44  ;;  %v2024_v58 = vrot.slane %v4385_v57, 4  ;;  %v2652_v37 = vrot.slane %v4385_v57, 5  ;;  %v3060_v16 = vrot.slane %v4385_v57, 6 }
 0x290   : > { %v2423_v39 = vpop.f32.mrf.mxu2 }
 0x291   : > { %v2831_v34 = vpop.f32.mrf.mxu3  ;;  %v2561_v62 = vadd.f32 %v2423_v39, %v2337_v50  ;;  %v2202_v55 = vpop.f32.mrf.mxu1  ;;  %v3476_v60 = vmax.f32 %v3428_v14, 0.0 }
 0x292   : > { %v2338_v9 = vadd.f32 %v2202_v55, %v5086_v61  ;;  %v3061_v55 = vsel %vm3016_vm6, %v3058_v19, %v3060_v16 }
 0x293   : > { %v2969_v15 = vadd.f32 %v2831_v34, %v2561_v62  ;;  %v3528_v30 = vmul.f32 %v5612_v46, %v3476_v60  ;;  %v2025_v62 = vsel %vm510_vm0, %v2022_v36, %v2024_v58  ;;  %v2653_v60 = vsel %vm2608_vm5, %v2650_v17, %v2652_v37 }
 0x294   : > { %4142 = vmatmul.msk.f32.gmra.mxu1 %vm413_vm2, %v2019_v63  ;;  %v3242_v6 = vpop.f32.mrf.mxu0 }
 0x295   : > { %v3377_v44 = vadd.f32 %v3239_v2, %v2969_v15  ;;  %4192 = vmatmul.msk.f32.gmra.mxu2 %vm413_vm2, %v2023_v32  ;;  %v3581_v11 = vsel %vm3574_vm7, %v3528_v30, 0.0 }
 0x296   : > { %4242 = vmatmul.msk.f32.gmra.mxu3 %vm413_vm2, %v2651_v10  ;;  %3582 = vadd.xlane.f32.xlu1 %v3581_v11 }
 0x297   : > { %v3429_v50 = vadd.f32 %v5600_v24, %v3377_v44  ;;  %4292 = vmatmul.msk.f32.gmra.mxu0 %vm413_vm2, %v3059_v8  ;;  %v4386_v44 = vld [vmem:[%s4481_s7 + $0xd8] sm:$0xff] }
 0x298   : > { %v2426_v63 = vpop.f32.mrf.mxu2  ;;  %v2026_v36 = vrot.slane %v4386_v44, 4  ;;  %v2654_v11 = vrot.slane %v4386_v44, 5  ;;  %v3062_v19 = vrot.slane %v4386_v44, 6 }
 0x299   : > { %v2834_v14 = vpop.f32.mrf.mxu3  ;;  %v3477_v2 = vmax.f32 %v3429_v50, 0.0  ;;  %v2562_v39 = vadd.f32 %v2426_v63, %v2338_v9  ;;  %v2205_v34 = vpop.f32.mrf.mxu1 }
 0x29a   : > { %v2339_v17 = vadd.f32 %v2205_v34, %v5098_v49  ;;  %v3063_v34 = vsel %vm3016_vm6, %v3060_v16, %v3062_v19 }
 0x29b   : > { %v2970_v10 = vadd.f32 %v2834_v14, %v2562_v39  ;;  %v3529_v15 = vmul.f32 %v5612_v46, %v3477_v2  ;;  %v2027_v14 = vsel %vm510_vm0, %v2024_v58, %v2026_v36  ;;  %v2655_v2 = vsel %vm2608_vm5, %v2652_v37, %v2654_v11 }
 0x29c   : > { %4143 = vmatmul.msk.f32.gmra.mxu1 %vm413_vm2, %v2021_v21  ;;  %v3245_v61 = vpop.f32.mrf.mxu0 }
 0x29d   : > { %v3378_v30 = vadd.f32 %v3242_v6, %v2970_v10  ;;  %4193 = vmatmul.msk.f32.gmra.mxu2 %vm413_vm2, %v2025_v62  ;;  %v3584_v8 = vsel %vm3574_vm7, %v3529_v15, 0.0 }
 0x29e   : > { %4243 = vmatmul.msk.f32.gmra.mxu3 %vm413_vm2, %v2653_v60  ;;  %3585 = vadd.xlane.f32.xlu1 %v3584_v8 }
 0x29f   : > { %v3430_v57 = vadd.f32 %v5600_v24, %v3378_v30  ;;  %4293 = vmatmul.msk.f32.gmra.mxu0 %vm413_vm2, %v3061_v55  ;;  %v4387_v55 = vld [vmem:[%s4481_s7 + $0xe0] sm:$0xff] }
 0x2a0   : > { %v2429_v21 = vpop.f32.mrf.mxu2  ;;  %v2028_v58 = vrot.slane %v4387_v55, 4  ;;  %v2656_v30 = vrot.slane %v4387_v55, 5  ;;  %v3064_v16 = vrot.slane %v4387_v55, 6 }
 0x2a1   : > { %v2837_v9 = vpop.f32.mrf.mxu3  ;;  %v2563_v6 = vadd.f32 %v2429_v21, %v2339_v17  ;;  %v2208_v50 = vpop.f32.mrf.mxu1  ;;  %v3478_v63 = vmax.f32 %v3430_v57, 0.0 }
 0x2a2   : > { %v2340_v37 = vadd.f32 %v2208_v50, %v5110_v7  ;;  %v2029_v21 = vsel %vm510_vm0, %v2026_v36, %v2028_v58  ;;  %v3065_v50 = vsel %vm3016_vm6, %v3062_v19, %v3064_v16 }
 0x2a3   : > { %v2971_v39 = vadd.f32 %v2837_v9, %v2563_v6  ;;  %v3530_v60 = vmul.f32 %v5612_v46, %v3478_v63  ;;  %v2657_v9 = vsel %vm2608_vm5, %v2654_v11, %v2656_v30 }
 0x2a4   : > { %4144 = vmatmul.msk.f32.gmra.mxu1 %vm413_vm2, %v2023_v32  ;;  %v3248_v49 = vpop.f32.mrf.mxu0 }
 0x2a5   : > { %v3379_v10 = vadd.f32 %v3245_v61, %v2971_v39  ;;  %4194 = vmatmul.msk.f32.gmra.mxu2 %vm413_vm2, %v2027_v14  ;;  %v3587_v15 = vsel %vm3574_vm7, %v3530_v60, 0.0  ;;  %v4388_v60 = vld [vmem:[%s4481_s7 + $0xe8] sm:$0xff] }
 0x2a6   : > { %4244 = vmatmul.msk.f32.gmra.mxu3 %vm413_vm2, %v2655_v2  ;;  %3588 = vadd.xlane.f32.xlu2 %v3587_v15  ;;  %v2030_v36 = vrot.slane %v4388_v60, 4  ;;  %v3066_v19 = vrot.slane %v4388_v60, 6 }
 0x2a7   : > { %v3431_v8 = vadd.f32 %v5600_v24, %v3379_v10  ;;  %4294 = vmatmul.msk.f32.gmra.mxu0 %vm413_vm2, %v3063_v34  ;;  %v2658_v34 = vrot.slane %v4388_v60, 5 }
 0x2a8   : > { %v2432_v32 = vpop.f32.mrf.mxu2 }
 0x2a9   : > { %v2840_v44 = vpop.f32.mrf.mxu3  ;;  %v3479_v61 = vmax.f32 %v3431_v8, 0.0  ;;  %v2564_v17 = vadd.f32 %v2432_v32, %v2340_v37  ;;  %v2211_v57 = vpop.f32.mrf.mxu1  ;;  %v2031_v8 = vsel %vm510_vm0, %v2028_v58, %v2030_v36  ;;  %v2659_v32 = vsel %vm2608_vm5, %v2656_v30, %v2658_v34 }
 0x2aa   : > { %v2341_v11 = vadd.f32 %v2211_v57, %v5122_v3 }
 0x2ab   : > { %v2972_v6 = vadd.f32 %v2840_v44, %v2564_v17  ;;  %v3531_v63 = vmul.f32 %v5612_v46, %v3479_v61  ;;  %v3067_v17 = vsel %vm3016_vm6, %v3064_v16, %v3066_v19 }
 0x2ac   : > { %4145 = vmatmul.msk.f32.gmra.mxu1 %vm413_vm2, %v2025_v62  ;;  %v3251_v7 = vpop.f32.mrf.mxu0 }
 0x2ad   : > { %v3380_v2 = vadd.f32 %v3248_v49, %v2972_v6  ;;  %4195 = vmatmul.msk.f32.gmra.mxu2 %vm413_vm2, %v2029_v21  ;;  %v3590_v39 = vsel %vm3574_vm7, %v3531_v63, 0.0  ;;  %v4389_v6 = vld [vmem:[%s4481_s7 + $0xf0] sm:$0xff] }
 0x2ae   : > { %4245 = vmatmul.msk.f32.gmra.mxu3 %vm413_vm2, %v2657_v9  ;;  %3591 = vadd.xlane.f32.xlu2 %v3590_v39  ;;  %v2032_v58 = vrot.slane %v4389_v6, 4  ;;  %v2660_v63 = vrot.slane %v4389_v6, 5  ;;  %v3068_v16 = vrot.slane %v4389_v6, 6 }
 0x2af   : > { %v3432_v10 = vadd.f32 %v5600_v24, %v3380_v2  ;;  %4295 = vmatmul.msk.f32.gmra.mxu0 %vm413_vm2, %v3065_v50 }
 0x2b0   : > { %v2435_v62 = vpop.f32.mrf.mxu2 }
 0x2b1   : > { %v2843_v15 = vpop.f32.mrf.mxu3  ;;  %v3480_v49 = vmax.f32 %v3432_v10, 0.0  ;;  %v2565_v55 = vadd.f32 %v2435_v62, %v2341_v11  ;;  %v2214_v37 = vpop.f32.mrf.mxu1  ;;  %v2033_v11 = vsel %vm510_vm0, %v2030_v36, %v2032_v58  ;;  %v2661_v10 = vsel %vm2608_vm5, %v2658_v34, %v2660_v63 }
 0x2b2   : > { %v2342_v30 = vadd.f32 %v2214_v37, %v5134_v28 }
 0x2b3   : > { %v2973_v44 = vadd.f32 %v2843_v15, %v2565_v55  ;;  %v3532_v61 = vmul.f32 %v5612_v46, %v3480_v49  ;;  %v3069_v49 = vsel %vm3016_vm6, %v3066_v19, %v3068_v16 }
 0x2b4   : > { %4146 = vmatmul.msk.f32.gmra.mxu1 %vm413_vm2, %v2027_v14  ;;  %v3254_v3 = vpop.f32.mrf.mxu0 }
 0x2b5   : > { %v3381_v57 = vadd.f32 %v3251_v7, %v2973_v44  ;;  %4196 = vmatmul.msk.f32.gmra.mxu2 %vm413_vm2, %v2031_v8  ;;  %v3593_v9 = vsel %vm3574_vm7, %v3532_v61, 0.0 }
 0x2b6   : > { %4246 = vmatmul.msk.f32.gmra.mxu3 %vm413_vm2, %v2659_v32  ;;  %3594 = vadd.xlane.f32.xlu0 %v3593_v9  ;;  %v4390_v32 = vld [vmem:[%s4481_s7 + $0xf8] sm:$0xff] }
 0x2b7   : > { %v3433_v50 = vadd.f32 %v5600_v24, %v3381_v57  ;;  %4296 = vmatmul.msk.f32.gmra.mxu0 %vm413_vm2, %v3067_v17  ;;  %v2034_v36 = vrot.slane %v4390_v32, 4  ;;  %v2662_v44 = vrot.slane %v4390_v32, 5  ;;  %v3070_v19 = vrot.slane %v4390_v32, 6 }
 0x2b8   : > { %v2438_v14 = vpop.f32.mrf.mxu2 }
 0x2b9   : > { %v2846_v2 = vpop.f32.mrf.mxu3  ;;  %v3481_v7 = vmax.f32 %v3433_v50, 0.0  ;;  %v2566_v39 = vadd.f32 %v2438_v14, %v2342_v30  ;;  %v2217_v60 = vpop.f32.mrf.mxu1  ;;  %v2035_v6 = vsel %vm510_vm0, %v2032_v58, %v2034_v36  ;;  %v2663_v30 = vsel %vm2608_vm5, %v2660_v63, %v2662_v44 }
 0x2ba   : > { %v2343_v34 = vadd.f32 %v2217_v60, %v5146_v23  ;;  %v4391_v60 = vld [vmem:[%s4481_s7 + $0x100] sm:$0xff] }
 0x2bb   : > { %v2974_v62 = vadd.f32 %v2846_v2, %v2566_v39  ;;  %v3533_v15 = vmul.f32 %v5612_v46, %v3481_v7  ;;  %v3071_v2 = vsel %vm3016_vm6, %v3068_v16, %v3070_v19  ;;  %v2036_v58 = vrot.slane %v4391_v60, 4 }
 0x2bc   : > { %4147 = vmatmul.msk.f32.gmra.mxu1 %vm413_vm2, %v2029_v21  ;;  %v3257_v28 = vpop.f32.mrf.mxu0  ;;  %v3072_v16 = vrot.slane %v4391_v60, 6 }
 0x2bd   : > { %v3382_v55 = vadd.f32 %v3254_v3, %v2974_v62  ;;  %4197 = vmatmul.msk.f32.gmra.mxu2 %vm413_vm2, %v2033_v11  ;;  %v3596_v37 = vsel %vm3574_vm7, %v3533_v15, 0.0 }
 0x2be   : > { %4247 = vmatmul.msk.f32.gmra.mxu3 %vm413_vm2, %v2661_v10  ;;  %3597 = vadd.xlane.f32.xlu1 %v3596_v37  ;;  %v2664_v10 = vrot.slane %v4391_v60, 5  ;;  %v2037_v37 = vsel %vm510_vm0, %v2034_v36, %v2036_v58 }
 0x2bf   : > { %v3434_v61 = vadd.f32 %v5600_v24, %v3382_v55  ;;  %4297 = vmatmul.msk.f32.gmra.mxu0 %vm413_vm2, %v3069_v49 }
 0x2c0   : > { %v2441_v21 = vpop.f32.mrf.mxu2  ;;  %v2665_v32 = vsel %vm2608_vm5, %v2662_v44, %v2664_v10 }
 0x2c1   : > { %v2849_v17 = vpop.f32.mrf.mxu3  ;;  %v3482_v3 = vmax.f32 %v3434_v61, 0.0  ;;  %v2567_v57 = vadd.f32 %v2441_v21, %v2343_v34  ;;  %v2220_v9 = vpop.f32.mrf.mxu1  ;;  %v3073_v21 = vsel %vm3016_vm6, %v3070_v19, %v3072_v16 }
 0x2c2   : > { %v2344_v63 = vadd.f32 %v2220_v9, %v5158_v31 }
 0x2c3   : > { %v2975_v50 = vadd.f32 %v2849_v17, %v2567_v57  ;;  %v3534_v14 = vmul.f32 %v5612_v46, %v3482_v3  ;;  %v4392_v57 = vld [vmem:[%s4481_s7 + $0x108] sm:$0xff] }
 0x2c4   : > { %4148 = vmatmul.msk.f32.gmra.mxu1 %vm413_vm2, %v2031_v8  ;;  %v3260_v23 = vpop.f32.mrf.mxu0  ;;  %v2038_v36 = vrot.slane %v4392_v57, 4  ;;  %v2666_v9 = vrot.slane %v4392_v57, 5  ;;  %v3074_v19 = vrot.slane %v4392_v57, 6 }
 0x2c5   : > { %v3383_v7 = vadd.f32 %v3257_v28, %v2975_v50  ;;  %4198 = vmatmul.msk.f32.gmra.mxu2 %vm413_vm2, %v2035_v6  ;;  %v3599_v39 = vsel %vm3574_vm7, %v3534_v14, 0.0 }
 0x2c6   : > { %4248 = vmatmul.msk.f32.gmra.mxu3 %vm413_vm2, %v2663_v30  ;;  %3600 = vadd.xlane.f32.xlu2 %v3599_v39  ;;  %v2667_v39 = vsel %vm2608_vm5, %v2664_v10, %v2666_v9 }
 0x2c7   : > { %v3435_v62 = vadd.f32 %v5600_v24, %v3383_v7  ;;  %4298 = vmatmul.msk.f32.gmra.mxu0 %vm413_vm2, %v3071_v2  ;;  %v2039_v7 = vsel %vm510_vm0, %v2036_v58, %v2038_v36 }
 0x2c8   : > { %v2444_v8 = vpop.f32.mrf.mxu2 }
 0x2c9   : > { %v2852_v15 = vpop.f32.mrf.mxu3  ;;  %v3483_v28 = vmax.f32 %v3435_v62, 0.0  ;;  %v2568_v49 = vadd.f32 %v2444_v8, %v2344_v63  ;;  %v2223_v55 = vpop.f32.mrf.mxu1  ;;  %v3075_v62 = vsel %vm3016_vm6, %v3072_v16, %v3074_v19 }
 0x2ca   : > { %v2345_v44 = vadd.f32 %v2223_v55, %v5170_v47 }
 0x2cb   : > { %v2976_v34 = vadd.f32 %v2852_v15, %v2568_v49  ;;  %v3535_v61 = vmul.f32 %v5612_v46, %v3483_v28  ;;  %v4393_v28 = vld [vmem:[%s4481_s7 + $0x110] sm:$0xff] }
 0x2cc   : > { %4149 = vmatmul.msk.f32.gmra.mxu1 %vm413_vm2, %v2033_v11  ;;  %v3263_v31 = vpop.f32.mrf.mxu0  ;;  %v2040_v58 = vrot.slane %v4393_v28, 4  ;;  %v2668_v49 = vrot.slane %v4393_v28, 5  ;;  %v3076_v16 = vrot.slane %v4393_v28, 6 }
 0x2cd   : > { %v3384_v17 = vadd.f32 %v3260_v23, %v2976_v34  ;;  %4199 = vmatmul.msk.f32.gmra.mxu2 %vm413_vm2, %v2037_v37  ;;  %v3602_v3 = vsel %vm3574_vm7, %v3535_v61, 0.0 }
 0x2ce   : > { %4249 = vmatmul.msk.f32.gmra.mxu3 %vm413_vm2, %v2665_v32  ;;  %3603 = vadd.xlane.f32.xlu0 %v3602_v3 }
 0x2cf   : > { %v3436_v30 = vadd.f32 %v5600_v24, %v3384_v17  ;;  %4299 = vmatmul.msk.f32.gmra.mxu0 %vm413_vm2, %v3073_v21  ;;  %v2041_v21 = vsel %vm510_vm0, %v2038_v36, %v2040_v58  ;;  %v2669_v17 = vsel %vm2608_vm5, %v2666_v9, %v2668_v49 }
 0x2d0   : > { %v2447_v11 = vpop.f32.mrf.mxu2 }
 0x2d1   : > { %v2855_v50 = vpop.f32.mrf.mxu3  ;;  %v3484_v14 = vmax.f32 %v3436_v30, 0.0  ;;  %v2569_v23 = vadd.f32 %v2447_v11, %v2345_v44  ;;  %v2226_v2 = vpop.f32.mrf.mxu1  ;;  %v3077_v44 = vsel %vm3016_vm6, %v3074_v19, %v3076_v16 }
 0x2d2   : > { %v2346_v10 = vadd.f32 %v2226_v2, %v5182_v29 }
 0x2d3   : > { %v2977_v60 = vadd.f32 %v2855_v50, %v2569_v23  ;;  %v3536_v63 = vmul.f32 %v5612_v46, %v3484_v14  ;;  %v4394_v50 = vld [vmem:[%s4481_s7 + $0x118] sm:$0xff] }
 0x2d4   : > { %4150 = vmatmul.msk.f32.gmra.mxu1 %vm413_vm2, %v2035_v6  ;;  %v3266_v47 = vpop.f32.mrf.mxu0  ;;  %v2042_v36 = vrot.slane %v4394_v50, 4  ;;  %v2670_v14 = vrot.slane %v4394_v50, 5  ;;  %v3078_v19 = vrot.slane %v4394_v50, 6 }
 0x2d5   : > { %v3385_v8 = vadd.f32 %v3263_v31, %v2977_v60  ;;  %4200 = vmatmul.msk.f32.gmra.mxu2 %vm413_vm2, %v2039_v7  ;;  %v3605_v15 = vsel %vm3574_vm7, %v3536_v63, 0.0 }
 0x2d6   : > { %4250 = vmatmul.msk.f32.gmra.mxu3 %vm413_vm2, %v2667_v39  ;;  %3606 = vadd.xlane.f32.xlu1 %v3605_v15  ;;  %v3079_v28 = vsel %vm3016_vm6, %v3076_v16, %v3078_v19 }
 0x2d7   : > { %v3437_v55 = vadd.f32 %v5600_v24, %v3385_v8  ;;  %4300 = vmatmul.msk.f32.gmra.mxu0 %vm413_vm2, %v3075_v62  ;;  %v2671_v62 = vsel %vm2608_vm5, %v2668_v49, %v2670_v14 }
 0x2d8   : > { %v2450_v6 = vpop.f32.mrf.mxu2 }
 0x2d9   : > { %v2858_v32 = vpop.f32.mrf.mxu3  ;;  %v3485_v34 = vmax.f32 %v3437_v55, 0.0  ;;  %v2570_v61 = vadd.f32 %v2450_v6, %v2346_v10  ;;  %v2229_v31 = vpop.f32.mrf.mxu1 }
 0x2da   : > { %v2347_v9 = vadd.f32 %v2229_v31, %v5194_v40 }
 0x2db   : > { %v2978_v3 = vadd.f32 %v2858_v32, %v2570_v61  ;;  %v3537_v57 = vmul.f32 %v5612_v46, %v3485_v34 }
 0x2dc   : > { %4151 = vmatmul.msk.f32.gmra.mxu1 %vm413_vm2, %v2037_v37  ;;  %v3269_v29 = vpop.f32.mrf.mxu0 }
 0x2dd   : > { %v3386_v30 = vadd.f32 %v3266_v47, %v2978_v3  ;;  %4201 = vmatmul.msk.f32.gmra.mxu2 %vm413_vm2, %v2041_v21  ;;  %v3608_v11 = vsel %vm3574_vm7, %v3537_v57, 0.0  ;;  %v2043_v47 = vsel %vm510_vm0, %v2040_v58, %v2042_v36  ;;  %v4395_v58 = vld [vmem:[%s4481_s7 + $0x120] sm:$0xff] }
 0x2de   : > { %4251 = vmatmul.msk.f32.gmra.mxu3 %vm413_vm2, %v2669_v17  ;;  %3609 = vadd.xlane.f32.xlu2 %v3608_v11  ;;  %v2044_v6 = vrot.slane %v4395_v58, 4  ;;  %v2672_v49 = vrot.slane %v4395_v58, 5  ;;  %v3080_v61 = vrot.slane %v4395_v58, 6 }
 0x2df   : > { %v3438_v23 = vadd.f32 %v5600_v24, %v3386_v30  ;;  %4301 = vmatmul.msk.f32.gmra.mxu0 %vm413_vm2, %v3077_v44 }
 0x2e0   : > { %v2453_v37 = vpop.f32.mrf.mxu2  ;;  %v2045_v57 = vsel %vm510_vm0, %v2042_v36, %v2044_v6  ;;  %v3081_v11 = vsel %vm3016_vm6, %v3078_v19, %v3080_v61  ;;  %v4396_v36 = vld [vmem:[%s4481_s7 + $0x128] sm:$0xff] }
 0x2e1   : > { %v2861_v2 = vpop.f32.mrf.mxu3  ;;  %v3486_v39 = vmax.f32 %v3438_v23, 0.0  ;;  %v2571_v60 = vadd.f32 %v2453_v37, %v2347_v9  ;;  %v2232_v63 = vpop.f32.mrf.mxu1  ;;  %v2674_v23 = vrot.slane %v4396_v36, 5 }
 0x2e2   : > { %v2348_v32 = vadd.f32 %v2232_v63, %v5206_v35 }
 0x2e3   : > { %v2979_v8 = vadd.f32 %v2861_v2, %v2571_v60  ;;  %v3538_v15 = vmul.f32 %v5612_v46, %v3486_v39  ;;  %v3082_v39 = vrot.slane %v4396_v36, 6 }
 0x2e4   : > { %4152 = vmatmul.msk.f32.gmra.mxu1 %vm413_vm2, %v2039_v7  ;;  %v3272_v40 = vpop.f32.mrf.mxu0 }
 0x2e5   : > { %v3387_v10 = vadd.f32 %v3269_v29, %v2979_v8  ;;  %4202 = vmatmul.msk.f32.gmra.mxu2 %vm413_vm2, %v2043_v47  ;;  %v3611_v55 = vsel %vm3574_vm7, %v3538_v15, 0.0  ;;  %v2673_v29 = vsel %vm2608_vm5, %v2670_v14, %v2672_v49  ;;  %v2046_v14 = vrot.slane %v4396_v36, 4 }
 0x2e6   : > { %4252 = vmatmul.msk.f32.gmra.mxu3 %vm413_vm2, %v2671_v62  ;;  %3612 = vadd.xlane.f32.xlu0 %v3611_v55  ;;  %v2675_v15 = vsel %vm2608_vm5, %v2672_v49, %v2674_v23  ;;  %v4397_v49 = vld [vmem:[%s4481_s7 + $0x130] sm:$0xff] }
 0x2e7   : > { %v3439_v34 = vadd.f32 %v5600_v24, %v3387_v10  ;;  %4302 = vmatmul.msk.f32.gmra.mxu0 %vm413_vm2, %v3079_v28  ;;  %v5786_v8 = vsel %vm510_vm0, %v2044_v6, %v2046_v14  ;;  %v3083_v10 = vsel %vm3016_vm6, %v3080_v61, %v3082_v39  ;;  %v5796_v6 = vld [vmem:[#allocation2] ss:$0 sm:$0xff] }
 0x2e8   : > { %v2456_v7 = vpop.f32.mrf.mxu2 }
 0x2e9   : > { %v2864_v16 = vpop.f32.mrf.mxu3  ;;  %v3487_v31 = vmax.f32 %v3439_v34, 0.0  ;;  %v2572_v17 = vadd.f32 %v2456_v7, %v2348_v32  ;;  %v2235_v3 = vpop.f32.mrf.mxu1  ;;  %v2048_v32 = vrot.slane %v4397_v49, 4  ;;  %v2676_v34 = vrot.slane %v4397_v49, 5 }
 0x2ea   : > { %v2349_v37 = vadd.f32 %v2235_v3, %v5218_v0 }
 0x2eb   : > { %v2980_v44 = vadd.f32 %v2864_v16, %v2572_v17  ;;  %v3539_v35 = vmul.f32 %v5612_v46, %v3487_v31  ;;  %v3084_v31 = vrot.slane %v4397_v49, 6 }
 0x2ec   : > { %4153 = vmatmul.msk.f32.gmra.mxu1 %vm413_vm2, %v2041_v21  ;;  %v3275_v30 = vpop.f32.mrf.mxu0 }
 0x2ed   : > { %v3388_v50 = vadd.f32 %v3272_v40, %v2980_v44  ;;  %4203 = vmatmul.msk.f32.gmra.mxu2 %vm413_vm2, %v2045_v57  ;;  %v3614_v9 = vsel %vm3574_vm7, %v3539_v35, 0.0  ;;  %v2049_v35 = vsel %vm510_vm0, %v2046_v14, %v2048_v32  ;;  %v3085_v36 = vsel %vm3016_vm6, %v3082_v39, %v3084_v31  ;;  %v4398_v14 = vld [vmem:[%s4481_s7 + $0x138] sm:$0xff] }
 0x2ee   : > { %4253 = vmatmul.msk.f32.gmra.mxu3 %vm413_vm2, %v2673_v29  ;;  %3615 = vadd.xlane.f32.xlu1 %v3614_v9 }
 0x2ef   : > { %v3440_v2 = vadd.f32 %v5600_v24, %v3388_v50  ;;  %4303 = vmatmul.msk.f32.gmra.mxu0 %vm413_vm2, %v3081_v11 }
 0x2f0   : > { %v2459_v21 = vpop.f32.mrf.mxu2 }
 0x2f1   : > { %v2867_v19 = vpop.f32.mrf.mxu3  ;;  %v3488_v60 = vmax.f32 %v3440_v2, 0.0  ;;  %v2573_v63 = vadd.f32 %v2459_v21, %v2349_v37  ;;  %v2238_v62 = vpop.f32.mrf.mxu1  ;;  %v2678_v21 = vrot.slane %v4398_v14, 5 }
 0x2f3   : > { %v2981_v40 = vadd.f32 %v2867_v19, %v2573_v63  ;;  %v3540_v0 = vmul.f32 %v5612_v46, %v3488_v60  ;;  %v3086_v63 = vrot.slane %v4398_v14, 6 }
 0x2f4   : > { %4154 = vmatmul.msk.f32.gmra.mxu1 %vm413_vm2, %v2043_v47  ;;  %v3278_v28 = vpop.f32.mrf.mxu0  ;;  %v2350_v47 = vadd.f32 %v2238_v62, %v5233_v25 }
 0x2f5   : > { %v3389_v55 = vadd.f32 %v3275_v30, %v2981_v40  ;;  %4204 = vmatmul.msk.f32.gmra.mxu2 %vm413_vm2, %v5786_v8  ;;  %v3617_v58 = vsel %vm3574_vm7, %v3540_v0, 0.0  ;;  %v2677_v30 = vsel %vm2608_vm5, %v2674_v23, %v2676_v34  ;;  %v2050_v23 = vrot.slane %v4398_v14, 4 }
 0x2f6   : > { %4254 = vmatmul.msk.f32.gmra.mxu3 %vm413_vm2, %v2675_v15  ;;  %3618 = vadd.xlane.f32.xlu2 %v3617_v58 }
 0x2f7   : > { %v3441_v7 = vadd.f32 %v5600_v24, %v3389_v55  ;;  %4304 = vmatmul.msk.f32.gmra.mxu0 %vm413_vm2, %v3083_v10  ;;  %v2051_v10 = vsel %vm510_vm0, %v2048_v32, %v2050_v23  ;;  %v2679_v55 = vsel %vm2608_vm5, %v2676_v34, %v2678_v21  ;;  %v4399_v32 = vld [vmem:[%s4481_s7 + $0x140] sm:$0xff] }
 0x2f8   : > { %v2462_v16 = vpop.f32.mrf.mxu2  ;;  %v2052_v34 = vrot.slane %v4399_v32, 4 }
 0x2f9   : > { %v2870_v61 = vpop.f32.mrf.mxu3  ;;  %v3489_v17 = vmax.f32 %v3441_v7, 0.0  ;;  %v2574_v3 = vadd.f32 %v2462_v16, %v2350_v47  ;;  %v3577_v29 = vpop.xlane.xlu0 %3576  ;;  %v3087_v47 = vsel %vm3016_vm6, %v3084_v31, %v3086_v63 }
 0x2fa   : > { %v2241_v44 = vpop.f32.mrf.mxu1  ;;  %v3723_v25 = vadd.f32 %v5796_v6, %v3577_v29  ;;  %v3088_v29 = vrot.slane %v4399_v32, 6 }
 0x2fb   : > { %v2982_v11 = vadd.f32 %v2870_v61, %v2574_v3  ;;  %v3541_v50 = vmul.f32 %v5612_v46, %v3489_v17  ;;  %v2351_v19 = vadd.f32 %v2241_v44, %v5248_v54  ;;  %v2680_v61 = vrot.slane %v4399_v32, 5 }
 0x2fc   : > { %3772 = vst.msk [vmem:[%s5805_s26] sm:$0xff] %vm3771_vm8, %v3723_v25  ;;  %4155 = vmatmul.msk.f32.gmra.mxu1 %vm413_vm2, %v2045_v57  ;;  %v3281_v9 = vpop.f32.mrf.mxu0  ;;  %v3089_v14 = vsel %vm3016_vm6, %v3086_v63, %v3088_v29 }
 0x2fd   : > { %v3390_v37 = vadd.f32 %v3278_v28, %v2982_v11  ;;  %4205 = vmatmul.msk.f32.gmra.mxu2 %vm413_vm2, %v2049_v35  ;;  %v3620_v2 = vsel %vm3574_vm7, %v3541_v50, 0.0 }
 0x2fe   : > { %4255 = vmatmul.msk.f32.gmra.mxu3 %vm413_vm2, %v2677_v30  ;;  %3621 = vadd.xlane.f32.xlu0 %v3620_v2 }
 0x2ff   : > { %v3442_v60 = vadd.f32 %v5600_v24, %v3390_v37  ;;  %4305 = vmatmul.msk.f32.gmra.mxu0 %vm413_vm2, %v3085_v36  ;;  %v2681_v36 = vsel %vm2608_vm5, %v2678_v21, %v2680_v61 }
 0x300   : > { %v2465_v57 = vpop.f32.mrf.mxu2 }
 0x301   : > { %v2873_v39 = vpop.f32.mrf.mxu3  ;;  %v3490_v62 = vmax.f32 %v3442_v60, 0.0  ;;  %v2575_v15 = vadd.f32 %v2465_v57, %v2351_v19  ;;  %v3580_v40 = vpop.xlane.xlu0 %3579 }
 0x302   : > { %v2244_v0 = vpop.f32.mrf.mxu1  ;;  %v3724_v28 = vadd.f32 %v5796_v6, %v3580_v40 }
 0x303   : > { %v2983_v58 = vadd.f32 %v2873_v39, %v2575_v15  ;;  %v3542_v54 = vmul.f32 %v5612_v46, %v3490_v62  ;;  %v2352_v17 = vadd.f32 %v2244_v0, %v5263_v52 }
 0x304   : > { %3773 = vst.msk [vmem:[%s5805_s26 + $0x8] sm:$0xff] %vm3771_vm8, %v3724_v28  ;;  %4156 = vmatmul.msk.f32.gmra.mxu1 %vm413_vm2, %v5786_v8  ;;  %v3284_v49 = vpop.f32.mrf.mxu0 }
 0x305   : > { %v3391_v7 = vadd.f32 %v3281_v9, %v2983_v58  ;;  %4206 = vmatmul.msk.f32.gmra.mxu2 %vm413_vm2, %v2051_v10  ;;  %v3623_v16 = vsel %vm3574_vm7, %v3542_v54, 0.0  ;;  %v2053_v9 = vsel %vm510_vm0, %v2050_v23, %v2052_v34  ;;  %v4400_v23 = vld [vmem:[%s4481_s7 + $0x148] sm:$0xff] }
 0x306   : > { %4256 = vmatmul.msk.f32.gmra.mxu3 %vm413_vm2, %v2679_v55  ;;  %3624 = vadd.xlane.f32.xlu1 %v3623_v16  ;;  %v2054_v21 = vrot.slane %v4400_v23, 4  ;;  %v2682_v57 = vrot.slane %v4400_v23, 5  ;;  %v3090_v15 = vrot.slane %v4400_v23, 6 }
 0x307   : > { %v3443_v3 = vadd.f32 %v5600_v24, %v3391_v7  ;;  %4306 = vmatmul.msk.f32.gmra.mxu0 %vm413_vm2, %v3087_v47 }
 0x308   : > { %v2468_v8 = vpop.f32.mrf.mxu2  ;;  %v2055_v54 = vsel %vm510_vm0, %v2052_v34, %v2054_v21  ;;  %v3091_v16 = vsel %vm3016_vm6, %v3088_v29, %v3090_v15  ;;  %v4401_v34 = vld [vmem:[%s4481_s7 + $0x150] sm:$0xff] }
 0x309   : > { %v2876_v31 = vpop.f32.mrf.mxu3  ;;  %v3491_v44 = vmax.f32 %v3443_v3, 0.0  ;;  %v2576_v25 = vadd.f32 %v2468_v8, %v2352_v17  ;;  %v3583_v30 = vpop.xlane.xlu1 %3582  ;;  %v2684_v3 = vrot.slane %v4401_v34, 5 }
 0x30a   : > { %v2247_v11 = vpop.f32.mrf.mxu1  ;;  %v3725_v50 = vadd.f32 %v5796_v6, %v3583_v30 }
 0x30b   : > { %v2984_v37 = vadd.f32 %v2876_v31, %v2576_v25  ;;  %v3543_v52 = vmul.f32 %v5612_v46, %v3491_v44  ;;  %v2353_v39 = vadd.f32 %v2247_v11, %v5274_v45  ;;  %v3092_v44 = vrot.slane %v4401_v34, 6 }
 0x30c   : > { %3774 = vst.msk [vmem:[%s5805_s26 + $0x10] sm:$0xff] %vm3771_vm8, %v3725_v50  ;;  %4157 = vmatmul.msk.f32.gmra.mxu1 %vm413_vm2, %v2049_v35  ;;  %v3287_v2 = vpop.f32.mrf.mxu0 }
 0x30d   : > { %v3392_v19 = vadd.f32 %v3284_v49, %v2984_v37  ;;  %4207 = vmatmul.msk.f32.gmra.mxu2 %vm413_vm2, %v2053_v9  ;;  %v3626_v60 = vsel %vm3574_vm7, %v3543_v52, 0.0  ;;  %v2683_v49 = vsel %vm2608_vm5, %v2680_v61, %v2682_v57  ;;  %v2056_v61 = vrot.slane %v4401_v34, 4 }
 0x30e   : > { %4257 = vmatmul.msk.f32.gmra.mxu3 %vm413_vm2, %v2681_v36  ;;  %3627 = vadd.xlane.f32.xlu2 %v3626_v60  ;;  %v2685_v52 = vsel %vm2608_vm5, %v2682_v57, %v2684_v3 }
 0x30f   : > { %v3444_v62 = vadd.f32 %v5600_v24, %v3392_v19  ;;  %4307 = vmatmul.msk.f32.gmra.mxu0 %vm413_vm2, %v3089_v14  ;;  %v2057_v37 = vsel %vm510_vm0, %v2054_v21, %v2056_v61  ;;  %v3093_v19 = vsel %vm3016_vm6, %v3090_v15, %v3092_v44  ;;  %v4402_v21 = vld [vmem:[%s4481_s7 + $0x158] sm:$0xff] }
 0x310   : > { %v2471_v35 = vpop.f32.mrf.mxu2  ;;  %v2058_v57 = vrot.slane %v4402_v21, 4  ;;  %v3094_v15 = vrot.slane %v4402_v21, 6 }
 0x311   : > { %v2879_v63 = vpop.f32.mrf.mxu3  ;;  %v3492_v40 = vmax.f32 %v3444_v62, 0.0  ;;  %v2577_v0 = vadd.f32 %v2471_v35, %v2353_v39  ;;  %v3586_v28 = vpop.xlane.xlu1 %3585  ;;  %v2686_v39 = vrot.slane %v4402_v21, 5 }
 0x312   : > { %v2250_v55 = vpop.f32.mrf.mxu1  ;;  %v3726_v58 = vadd.f32 %v5796_v6, %v3586_v28 }
 0x313   : > { %v2985_v47 = vadd.f32 %v2879_v63, %v2577_v0  ;;  %v3544_v45 = vmul.f32 %v5612_v46, %v3492_v40  ;;  %v2354_v8 = vadd.f32 %v2250_v55, %v5285_v48 }
 0x314   : > { %3775 = vst.msk [vmem:[%s5805_s26 + $0x18] sm:$0xff] %vm3771_vm8, %v3726_v58  ;;  %4158 = vmatmul.msk.f32.gmra.mxu1 %vm413_vm2, %v2051_v10  ;;  %v3290_v7 = vpop.f32.mrf.mxu0 }
 0x315   : > { %v3393_v32 = vadd.f32 %v3287_v2, %v2985_v47  ;;  %4208 = vmatmul.msk.f32.gmra.mxu2 %vm413_vm2, %v2055_v54  ;;  %v3629_v17 = vsel %vm3574_vm7, %v3544_v45, 0.0  ;;  %v2687_v47 = vsel %vm2608_vm5, %v2684_v3, %v2686_v39 }
 0x316   : > { %4258 = vmatmul.msk.f32.gmra.mxu3 %vm413_vm2, %v2683_v49  ;;  %3630 = vadd.xlane.f32.xlu0 %v3629_v17  ;;  %v2059_v49 = vsel %vm510_vm0, %v2056_v61, %v2058_v57  ;;  %v4403_v17 = vld [vmem:[%s4481_s7 + $0x160] sm:$0xff] }
 0x317   : > { %v3445_v31 = vadd.f32 %v5600_v24, %v3393_v32  ;;  %4308 = vmatmul.msk.f32.gmra.mxu0 %vm413_vm2, %v3091_v16  ;;  %v2060_v34 = vrot.slane %v4403_v17, 4  ;;  %v2688_v61 = vrot.slane %v4403_v17, 5 }
 0x318   : > { %v2474_v10 = vpop.f32.mrf.mxu2 }
 0x319   : > { %v2882_v29 = vpop.f32.mrf.mxu3  ;;  %v3493_v25 = vmax.f32 %v3445_v31, 0.0  ;;  %v2578_v30 = vadd.f32 %v2474_v10, %v2354_v8  ;;  %v3589_v11 = vpop.xlane.xlu2 %3588  ;;  %v3096_v10 = vrot.slane %v4403_v17, 6 }
 0x31a   : > { %v2253_v50 = vpop.f32.mrf.mxu1  ;;  %v3727_v36 = vadd.f32 %v5796_v6, %v3589_v11  ;;  %v2061_v11 = vsel %vm510_vm0, %v2058_v57, %v2060_v34 }
 0x31b   : > { %v2986_v2 = vadd.f32 %v2882_v29, %v2578_v30  ;;  %v3545_v48 = vmul.f32 %v5612_v46, %v3493_v25  ;;  %v2355_v62 = vadd.f32 %v2253_v50, %v5296_v59  ;;  %v2689_v50 = vsel %vm2608_vm5, %v2686_v39, %v2688_v61 }
 0x31c   : > { %3776 = vst.msk [vmem:[%s5805_s26 + $0x20] sm:$0xff] %vm3771_vm8, %v3727_v36  ;;  %4159 = vmatmul.msk.f32.gmra.mxu1 %vm413_vm2, %v2053_v9  ;;  %v3293_v14 = vpop.f32.mrf.mxu0 }
 0x31d   : > { %v3394_v60 = vadd.f32 %v3290_v7, %v2986_v2  ;;  %4209 = vmatmul.msk.f32.gmra.mxu2 %vm413_vm2, %v2057_v37  ;;  %v3632_v23 = vsel %vm3574_vm7, %v3545_v48, 0.0  ;;  %v3095_v7 = vsel %vm3016_vm6, %v3092_v44, %v3094_v15 }
 0x31e   : > { %4259 = vmatmul.msk.f32.gmra.mxu3 %vm413_vm2, %v2685_v52  ;;  %3633 = vadd.xlane.f32.xlu1 %v3632_v23  ;;  %v5909_v52 = vld [vmem:[%s6218_s3] ss:$0 sm:$0xff]  ;;  %v4406_v23 = vld [vmem:[%s4481_s7 + $0x168] sm:$0xff] }
 0x31f   : > { %v3446_v35 = vadd.f32 %v5600_v24, %v3394_v60  ;;  %4309 = vmatmul.msk.f32.gmra.mxu0 %vm413_vm2, %v3093_v19  ;;  %v2062_v21 = vrot.slane %v4406_v23, 4  ;;  %v2690_v57 = vrot.slane %v4406_v23, 5 }
 0x320   : > { %v2477_v9 = vpop.f32.mrf.mxu2 }
 0x321   : > { %v2885_v63 = vpop.f32.mrf.mxu3  ;;  %v3494_v40 = vmax.f32 %v3446_v35, 0.0  ;;  %v2579_v0 = vadd.f32 %v2477_v9, %v2355_v62  ;;  %v3592_v28 = vpop.xlane.xlu2 %3591  ;;  %v3098_v9 = vrot.slane %v4406_v23, 6 }
 0x322   : > { %v2256_v55 = vpop.f32.mrf.mxu1  ;;  %v3728_v58 = vadd.f32 %v5796_v6, %v3592_v28 }
 0x323   : > { %v2987_v45 = vadd.f32 %v2885_v63, %v2579_v0  ;;  %v3546_v59 = vmul.f32 %v5612_v46, %v3494_v40  ;;  %v2356_v46 = vadd.f32 %v2256_v55, %v5306_v4  ;;  %v2063_v55 = vsel %vm510_vm0, %v2060_v34, %v2062_v21 }
 0x324   : > { %3777 = vst.msk [vmem:[%s5805_s26 + $0x28] sm:$0xff] %vm3771_vm8, %v3728_v58  ;;  %4160 = vmatmul.msk.f32.gmra.mxu1 %vm413_vm2, %v2055_v54  ;;  %v3296_v24 = vpop.f32.mrf.mxu0  ;;  %v5899_v54 = vld [vmem:[%s6217_s2] ss:$0 sm:$0xff]  ;;  %v2691_v58 = vsel %vm2608_vm5, %v2688_v61, %v2690_v57 }
 0x325   : > { %v3395_v16 = vadd.f32 %v3293_v14, %v2987_v45  ;;  %4210 = vmatmul.msk.f32.gmra.mxu2 %vm413_vm2, %v2059_v49  ;;  %v3635_v32 = vsel %vm3574_vm7, %v3546_v59, 0.0  ;;  %v3097_v14 = vsel %vm3016_vm6, %v3094_v15, %v3096_v10  ;;  %v3099_v59 = vsel %vm3016_vm6, %v3096_v10, %v3098_v9 }
 0x326   : > { %4260 = vmatmul.msk.f32.gmra.mxu3 %vm413_vm2, %v2687_v47  ;;  %3636 = vadd.xlane.f32.xlu2 %v3635_v32 }
 0x327   : > { %v3447_v3 = vadd.f32 %v5899_v54, %v3395_v16  ;;  %4310 = vmatmul.msk.f32.gmra.mxu0 %vm413_vm2, %v3095_v7  ;;  %v4407_v16 = vld [vmem:[%s4481_s7 + $0x170] sm:$0xff] }
 0x328   : > { %v2480_v8 = vpop.f32.mrf.mxu2  ;;  %v2064_v32 = vrot.slane %v4407_v16, 4  ;;  %v2692_v17 = vrot.slane %v4407_v16, 5 }
 0x329   : > { %v2888_v31 = vpop.f32.mrf.mxu3  ;;  %v3495_v29 = vmax.f32 %v3447_v3, 0.0  ;;  %v2580_v44 = vadd.f32 %v2480_v8, %v2356_v46  ;;  %v3595_v25 = vpop.xlane.xlu0 %3594  ;;  %v3100_v3 = vrot.slane %v4407_v16, 6 }
 0x32a   : > { %v2259_v30 = vpop.f32.mrf.mxu1  ;;  %v3729_v4 = vadd.f32 %v5796_v6, %v3595_v25  ;;  %v2065_v25 = vsel %vm510_vm0, %v2062_v21, %v2064_v32 }
 0x32b   : > { %v2988_v36 = vadd.f32 %v2888_v31, %v2580_v44  ;;  %v3547_v2 = vmul.f32 %v5909_v52, %v3495_v29  ;;  %v2357_v39 = vadd.f32 %v2259_v30, %v5316_v12  ;;  %v2693_v30 = vsel %vm2608_vm5, %v2690_v57, %v2692_v17 }
 0x32c   : > { %3778 = vst.msk [vmem:[%s5805_s26 + $0x30] sm:$0xff] %vm3771_vm8, %v3729_v4  ;;  %4161 = vmatmul.msk.f32.gmra.mxu1 %vm413_vm2, %v2057_v37  ;;  %v3299_v48 = vpop.f32.mrf.mxu0 }
 0x32d   : > { %v3396_v19 = vadd.f32 %v3296_v24, %v2988_v36  ;;  %4211 = vmatmul.msk.f32.gmra.mxu2 %vm413_vm2, %v2061_v11  ;;  %v3638_v60 = vsel %vm3574_vm7, %v3547_v2, 0.0  ;;  %v3101_v36 = vsel %vm3016_vm6, %v3098_v9, %v3100_v3 }
 0x32e   : > { %4261 = vmatmul.msk.f32.gmra.mxu3 %vm413_vm2, %v2689_v50  ;;  %3639 = vadd.xlane.f32.xlu0 %v3638_v60 }
 0x32f   : > { %v3448_v62 = vadd.f32 %v5899_v54, %v3396_v19  ;;  %4311 = vmatmul.msk.f32.gmra.mxu0 %vm413_vm2, %v3097_v14  ;;  %v4408_v14 = vld [vmem:[%s4481_s7 + $0x178] sm:$0xff] }
 0x330   : > { %v2483_v37 = vpop.f32.mrf.mxu2  ;;  %v2066_v19 = vrot.slane %v4408_v14, 4  ;;  %v2694_v60 = vrot.slane %v4408_v14, 5 }
 0x331   : > { %v2891_v35 = vpop.f32.mrf.mxu3  ;;  %v3496_v63 = vmax.f32 %v3448_v62, 0.0  ;;  %v2581_v15 = vadd.f32 %v2483_v37, %v2357_v39  ;;  %v3598_v40 = vpop.xlane.xlu1 %3597  ;;  %v3102_v39 = vrot.slane %v4408_v14, 6 }
 0x332   : > { %v2262_v0 = vpop.f32.mrf.mxu1  ;;  %v3730_v28 = vadd.f32 %v5796_v6, %v3598_v40  ;;  %v2695_v40 = vsel %vm2608_vm5, %v2692_v17, %v2694_v60 }
 0x333   : > { %v2989_v47 = vadd.f32 %v2891_v35, %v2581_v15  ;;  %v3548_v12 = vmul.f32 %v5909_v52, %v3496_v63  ;;  %v2358_v34 = vadd.f32 %v2262_v0, %v5326_v26  ;;  %v2067_v15 = vsel %vm510_vm0, %v2064_v32, %v2066_v19 }
 0x334   : > { %3779 = vst.msk [vmem:[%s5805_s26 + $0x38] sm:$0xff] %vm3771_vm8, %v3730_v28  ;;  %4162 = vmatmul.msk.f32.gmra.mxu1 %vm413_vm2, %v2059_v49  ;;  %v3302_v45 = vpop.f32.mrf.mxu0 }
 0x335   : > { %v3397_v24 = vadd.f32 %v3299_v48, %v2989_v47  ;;  %4212 = vmatmul.msk.f32.gmra.mxu2 %vm413_vm2, %v2063_v55  ;;  %v3641_v7 = vsel %vm3574_vm7, %v3548_v12, 0.0 }
 0x336   : > { %4262 = vmatmul.msk.f32.gmra.mxu3 %vm413_vm2, %v2691_v58  ;;  %3642 = vadd.xlane.f32.xlu1 %v3641_v7  ;;  %v3103_v58 = vsel %vm3016_vm6, %v3100_v3, %v3102_v39 }
 0x337   : > { %v3449_v61 = vadd.f32 %v5899_v54, %v3397_v24  ;;  %4312 = vmatmul.msk.f32.gmra.mxu0 %vm413_vm2, %v3099_v59 }
 0x338   : > { %v2486_v49 = vpop.f32.mrf.mxu2 }
 0x339   : > { %v2894_v46 = vpop.f32.mrf.mxu3  ;;  %v3497_v8 = vmax.f32 %v3449_v61, 0.0  ;;  %v2582_v31 = vadd.f32 %v2486_v49, %v2358_v34  ;;  %v3601_v10 = vpop.xlane.xlu2 %3600 }
 0x33a   : > { %v2265_v29 = vpop.f32.mrf.mxu1  ;;  %v3731_v44 = vadd.f32 %v5796_v6, %v3601_v10 }
 0x33b   : > { %v2990_v4 = vadd.f32 %v2894_v46, %v2582_v31  ;;  %v3549_v26 = vmul.f32 %v5909_v52, %v3497_v8  ;;  %v2359_v23 = vadd.f32 %v2265_v29, %v5340_v41 }
 0x33c   : > { %3780 = vst.msk [vmem:[%s5805_s26 + $0x40] sm:$0xff] %vm3771_vm8, %v3731_v44  ;;  %4163 = vmatmul.msk.f32.gmra.mxu1 %vm413_vm2, %v2061_v11  ;;  %v3305_v50 = vpop.f32.mrf.mxu0 }
 0x33d   : > { %v3398_v2 = vadd.f32 %v3302_v45, %v2990_v4  ;;  %4213 = vmatmul.msk.f32.gmra.mxu2 %vm413_vm2, %v2065_v25  ;;  %v3644_v48 = vsel %vm3574_vm7, %v3549_v26, 0.0  ;;  %v4409_v45 = vld [vmem:[%s4481_s7 + $0x180] sm:$0xff]  ;;  %v4410_v26 = vld [vmem:[%s4481_s7 + $0x188] sm:$0xff] }
 0x33e   : > { %4263 = vmatmul.msk.f32.gmra.mxu3 %vm413_vm2, %v2693_v30  ;;  %3645 = vadd.xlane.f32.xlu2 %v3644_v48  ;;  %v2068_v59 = vrot.slane %v4409_v45, 4  ;;  %v2696_v24 = vrot.slane %v4409_v45, 5  ;;  %v3104_v17 = vrot.slane %v4409_v45, 6 }
 0x33f   : > { %v3450_v21 = vadd.f32 %v5899_v54, %v3398_v2  ;;  %4313 = vmatmul.msk.f32.gmra.mxu0 %vm413_vm2, %v3101_v36  ;;  %v2698_v36 = vrot.slane %v4410_v26, 5 }
 0x340   : > { %v2489_v11 = vpop.f32.mrf.mxu2  ;;  %v2069_v8 = vsel %vm510_vm0, %v2066_v19, %v2068_v59  ;;  %v2697_v31 = vsel %vm2608_vm5, %v2694_v60, %v2696_v24  ;;  %v3105_v44 = vsel %vm3016_vm6, %v3102_v39, %v3104_v17  ;;  %v3106_v19 = vrot.slane %v4410_v26, 6 }
 0x341   : > { %v2897_v57 = vpop.f32.mrf.mxu3  ;;  %v3498_v62 = vmax.f32 %v3450_v21, 0.0  ;;  %v2583_v37 = vadd.f32 %v2489_v11, %v2359_v23  ;;  %v3604_v35 = vpop.xlane.xlu0 %3603 }
 0x342   : > { %v2268_v9 = vpop.f32.mrf.mxu1  ;;  %v3732_v63 = vadd.f32 %v5796_v6, %v3604_v35 }
 0x343   : > { %v2991_v0 = vadd.f32 %v2897_v57, %v2583_v37  ;;  %v3550_v41 = vmul.f32 %v5909_v52, %v3498_v62  ;;  %v2360_v7 = vadd.f32 %v2268_v9, %v5354_v1  ;;  %v2699_v62 = vsel %vm2608_vm5, %v2696_v24, %v2698_v36 }
 0x344   : > { %3781 = vst.msk [vmem:[%s5805_s26 + $0x48] sm:$0xff] %vm3771_vm8, %v3732_v63  ;;  %4164 = vmatmul.msk.f32.gmra.mxu1 %vm413_vm2, %v2063_v55  ;;  %v3308_v28 = vpop.f32.mrf.mxu0  ;;  %v3107_v9 = vsel %vm3016_vm6, %v3104_v17, %v3106_v19 }
 0x345   : > { %v3399_v47 = vadd.f32 %v3305_v50, %v2991_v0  ;;  %4214 = vmatmul.msk.f32.gmra.mxu2 %vm413_vm2, %v2067_v15  ;;  %v3647_v12 = vsel %vm3574_vm7, %v3550_v41, 0.0  ;;  %v2070_v50 = vrot.slane %v4410_v26, 4  ;;  %v4411_v0 = vld [vmem:[%s4481_s7 + $0x190] sm:$0xff] }
 0x346   : > { %4264 = vmatmul.msk.f32.gmra.mxu3 %vm413_vm2, %v2695_v40  ;;  %3648 = vadd.xlane.f32.xlu0 %v3647_v12  ;;  %v2072_v41 = vrot.slane %v4411_v0, 4  ;;  %v3108_v45 = vrot.slane %v4411_v0, 6 }
 0x347   : > { %v3451_v16 = vadd.f32 %v5899_v54, %v3399_v47  ;;  %4314 = vmatmul.msk.f32.gmra.mxu0 %vm413_vm2, %v3103_v58  ;;  %v2071_v39 = vsel %vm510_vm0, %v2068_v59, %v2070_v50 }
 0x348   : > { %v2492_v55 = vpop.f32.mrf.mxu2 }
 0x349   : > { %v2900_v32 = vpop.f32.mrf.mxu3  ;;  %v3499_v34 = vmax.f32 %v3451_v16, 0.0  ;;  %v2584_v61 = vadd.f32 %v2492_v55, %v2360_v7  ;;  %v3607_v49 = vpop.xlane.xlu1 %3606 }
 0x34a   : > { %v2271_v46 = vpop.f32.mrf.mxu1  ;;  %v3733_v3 = vadd.f32 %v5796_v6, %v3607_v49 }
 0x34b   : > { %v2992_v10 = vadd.f32 %v2900_v32, %v2584_v61  ;;  %v3551_v1 = vmul.f32 %v5909_v52, %v3499_v34  ;;  %v2361_v2 = vadd.f32 %v2271_v46, %v5364_v42  ;;  %v2073_v32 = vsel %vm510_vm0, %v2070_v50, %v2072_v41  ;;  %v261_v61 = vld [vmem:[%s4481_s7 + $0x198] sm:$0xff] }
 0x34c   : > { %3782 = vst.msk [vmem:[%s5805_s26 + $0x50] sm:$0xff] %vm3771_vm8, %v3733_v3  ;;  %4165 = vmatmul.msk.f32.gmra.mxu1 %vm413_vm2, %v2065_v25  ;;  %v3311_v29 = vpop.f32.mrf.mxu0  ;;  %v3109_v46 = vsel %vm3016_vm6, %v3106_v19, %v3108_v45 }
 0x34d   : > { %v3400_v30 = vadd.f32 %v3308_v28, %v2992_v10  ;;  %4215 = vmatmul.msk.f32.gmra.mxu2 %vm413_vm2, %v2069_v8  ;;  %v3650_v4 = vsel %vm3574_vm7, %v3551_v1, 0.0  ;;  %v2700_v28 = vrot.slane %v4411_v0, 5  ;;  %v2386_v10 = vrot.slane %v261_v61, 4 }
 0x34e   : > { %4265 = vmatmul.msk.f32.gmra.mxu3 %vm413_vm2, %v2697_v31  ;;  %3651 = vadd.xlane.f32.xlu1 %v3650_v4  ;;  %v2702_v1 = vrot.slane %v261_v61, 5  ;;  %v3110_v4 = vrot.slane %v261_v61, 6 }
 0x34f   : > { %v3452_v48 = vadd.f32 %v5899_v54, %v3400_v30  ;;  %4315 = vmatmul.msk.f32.gmra.mxu0 %vm413_vm2, %v3105_v44  ;;  %v2701_v17 = vsel %vm2608_vm5, %v2698_v36, %v2700_v28 }
 0x350   : > { %v2495_v25 = vpop.f32.mrf.mxu2 }
 0x351   : > { %v2903_v14 = vpop.f32.mrf.mxu3  ;;  %v3500_v60 = vmax.f32 %v3452_v48, 0.0  ;;  %v2585_v23 = vadd.f32 %v2495_v25, %v2361_v2  ;;  %v3610_v21 = vpop.xlane.xlu2 %3609  ;;  %v2387_v25 = vsel %vm510_vm0, %v2072_v41, %v2386_v10 }
 0x352   : > { %v2274_v11 = vpop.f32.mrf.mxu1  ;;  %v3734_v57 = vadd.f32 %v5796_v6, %v3610_v21  ;;  %v3111_v21 = vsel %vm3016_vm6, %v3108_v45, %v3110_v4 }
 0x353   : > { %v2993_v37 = vadd.f32 %v2903_v14, %v2585_v23  ;;  %v3552_v42 = vmul.f32 %v5909_v52, %v3500_v60  ;;  %v2362_v58 = vadd.f32 %v2274_v11, %v5376_v22  ;;  %v2703_v14 = vsel %vm2608_vm5, %v2700_v28, %v2702_v1  ;;  %v262_v60 = vld [vmem:[%s4481_s7 + $0x1a0] sm:$0x3f] }
 0x354   : > { %3783 = vst.msk [vmem:[%s5805_s26 + $0x58] sm:$0xff] %vm3771_vm8, %v3734_v57  ;;  %4166 = vmatmul.msk.f32.gmra.mxu1 %vm413_vm2, %v2067_v15  ;;  %v3314_v35 = vpop.f32.mrf.mxu0 }
 0x355   : > { %v3401_v63 = vadd.f32 %v3311_v29, %v2993_v37  ;;  %4216 = vmatmul.msk.f32.gmra.mxu2 %vm413_vm2, %v2071_v39  ;;  %v3653_v40 = vsel %vm3574_vm7, %v3552_v42, 0.0  ;;  %v2704_v37 = vrot.slane %v262_v60, 5 }
 0x356   : > { %4266 = vmatmul.msk.f32.gmra.mxu3 %vm413_vm2, %v2699_v62  ;;  %3654 = vadd.xlane.f32.xlu2 %v3653_v40  ;;  %v2388_v62 = vrot.slane %v262_v60, 4 }
 0x357   : > { %v3453_v15 = vadd.f32 %v5899_v54, %v3401_v63  ;;  %4316 = vmatmul.msk.f32.gmra.mxu0 %vm413_vm2, %v3107_v9  ;;  %v3112_v63 = vrot.slane %v262_v60, 6 }
 0x358   : > { %v2498_v47 = vpop.f32.mrf.mxu2 }
 0x359   : > { %v2906_v12 = vpop.f32.mrf.mxu3  ;;  %v3501_v59 = vmax.f32 %v3453_v15, 0.0  ;;  %v2586_v24 = vadd.f32 %v2498_v47, %v2362_v58  ;;  %v3613_v7 = vpop.xlane.xlu0 %3612  ;;  %v2389_v15 = vsel %vm510_vm0, %v2386_v10, %v2388_v62  ;;  %v2705_v47 = vsel %vm2608_vm5, %v2702_v1, %v2704_v37 }
 0x35a   : > { %v2277_v16 = vpop.f32.mrf.mxu1  ;;  %v3735_v55 = vadd.f32 %v5796_v6, %v3613_v7 }
 0x35b   : > { %v2994_v34 = vadd.f32 %v2906_v12, %v2586_v24  ;;  %v3553_v22 = vmul.f32 %v5909_v52, %v3501_v59  ;;  %v2363_v29 = vadd.f32 %v2277_v16, %v5387_v43  ;;  %v3113_v59 = vsel %vm3016_vm6, %v3110_v4, %v3112_v63 }
 0x35c   : > { %3784 = vst.msk [vmem:[%s5805_s26 + $0x60] sm:$0xff] %vm3771_vm8, %v3735_v55  ;;  %4167 = vmatmul.msk.f32.gmra.mxu1 %vm413_vm2, %v2069_v8  ;;  %v3317_v49 = vpop.f32.mrf.mxu0 }
 0x35d   : > { %v3402_v3 = vadd.f32 %v3314_v35, %v2994_v34  ;;  %4217 = vmatmul.msk.f32.gmra.mxu2 %vm413_vm2, %v2073_v32  ;;  %v3656_v31 = vsel %vm3574_vm7, %v3553_v22, 0.0 }
 0x35e   : > { %4267 = vmatmul.msk.f32.gmra.mxu3 %vm413_vm2, %v2701_v17  ;;  %3657 = vadd.xlane.f32.xlu0 %v3656_v31 }
 0x35f   : > { %v3454_v44 = vadd.f32 %v5899_v54, %v3402_v3  ;;  %4317 = vmatmul.msk.f32.gmra.mxu0 %vm413_vm2, %v3109_v46 }
 0x360   : > { %v2501_v8 = vpop.f32.mrf.mxu2 }
 0x361   : > { %v2909_v30 = vpop.f32.mrf.mxu3  ;;  %v3502_v26 = vmax.f32 %v3454_v44, 0.0  ;;  %v2587_v50 = vadd.f32 %v2501_v8, %v2363_v29  ;;  %v3616_v36 = vpop.xlane.xlu1 %3615 }
 0x362   : > { %v2280_v2 = vpop.f32.mrf.mxu1  ;;  %v3736_v48 = vadd.f32 %v5796_v6, %v3616_v36 }
 0x363   : > { %v2995_v19 = vadd.f32 %v2909_v30, %v2587_v50  ;;  %v3554_v43 = vmul.f32 %v5909_v52, %v3502_v26  ;;  %v2364_v42 = vadd.f32 %v2280_v2, %v5396_v56 }
 0x364   : > { %3785 = vst.msk [vmem:[%s5805_s26 + $0x68] sm:$0xff] %vm3771_vm8, %v3736_v48  ;;  %4168 = vmatmul.msk.f32.gmra.mxu1 %vm413_vm2, %v2071_v39  ;;  %v3320_v23 = vpop.f32.mrf.mxu0 }
 0x365   : > { %v3403_v11 = vadd.f32 %v3317_v49, %v2995_v19  ;;  %4218 = vmatmul.msk.f32.gmra.mxu2 %vm413_vm2, %v2387_v25  ;;  %v3659_v57 = vsel %vm3574_vm7, %v3554_v43, 0.0 }
 0x366   : > { %4268 = vmatmul.msk.f32.gmra.mxu3 %vm413_vm2, %v2703_v14  ;;  %3660 = vadd.xlane.f32.xlu1 %v3659_v57 }
 0x367   : > { %v3455_v35 = vadd.f32 %v5899_v54, %v3403_v11  ;;  %4318 = vmatmul.msk.f32.gmra.mxu0 %vm413_vm2, %v3111_v21 }
 0x368   : > { %v2504_v39 = vpop.f32.mrf.mxu2 }
 0x369   : > { %v2912_v9 = vpop.f32.mrf.mxu3  ;;  %v3503_v40 = vmax.f32 %v3455_v35, 0.0  ;;  %v2588_v0 = vadd.f32 %v2504_v39, %v2364_v42  ;;  %v3619_v41 = vpop.xlane.xlu2 %3618 }
 0x36a   : > { %v2283_v28 = vpop.f32.mrf.mxu1  ;;  %v3737_v58 = vadd.f32 %v5796_v6, %v3619_v41 }
 0x36b   : > { %v2996_v12 = vadd.f32 %v2912_v9, %v2588_v0  ;;  %v3555_v56 = vmul.f32 %v5909_v52, %v3503_v40  ;;  %v2365_v16 = vadd.f32 %v2283_v28, %v5411_v53 }
 0x36c   : > { %3786 = vst.msk [vmem:[%s5805_s26 + $0x70] sm:$0xff] %vm3771_vm8, %v3737_v58  ;;  %4169 = vmatmul.msk.f32.gmra.mxu1 %vm413_vm2, %v2073_v32  ;;  %v3323_v45 = vpop.f32.mrf.mxu0 }
 0x36d   : > { %v3404_v24 = vadd.f32 %v3320_v23, %v2996_v12  ;;  %4219 = vmatmul.msk.f32.gmra.mxu2 %vm413_vm2, %v2389_v15  ;;  %v3662_v7 = vsel %vm3574_vm7, %v3555_v56, 0.0 }
 0x36e   : > { %4269 = vmatmul.msk.f32.gmra.mxu3 %vm413_vm2, %v2705_v47  ;;  %3663 = vadd.xlane.f32.xlu2 %v3662_v7 }
 0x36f   : > { %v3456_v55 = vadd.f32 %v5899_v54, %v3404_v24  ;;  %4319 = vmatmul.msk.f32.gmra.mxu0 %vm413_vm2, %v3113_v59 }
 0x370   : > { %v2507_v17 = vpop.f32.mrf.mxu2 }
 0x371   : > { %v2915_v32 = vpop.f32.mrf.mxu3  ;;  %v3504_v34 = vmax.f32 %v3456_v55, 0.0  ;;  %v2589_v22 = vadd.f32 %v2507_v17, %v2365_v16  ;;  %v3622_v61 = vpop.xlane.xlu0 %3621 }
 0x372   : > { %v2286_v49 = vpop.f32.mrf.mxu1  ;;  %v3738_v46 = vadd.f32 %v5796_v6, %v3622_v61 }
 0x373   : > { %v2997_v3 = vadd.f32 %v2915_v32, %v2589_v22  ;;  %v3556_v31 = vmul.f32 %v5909_v52, %v3504_v34  ;;  %v2366_v29 = vadd.f32 %v2286_v49, %v5423_v51 }
 0x374   : > { %3787 = vst.msk [vmem:[%s5805_s26 + $0x78] sm:$0xff] %vm3771_vm8, %v3738_v46  ;;  %v3326_v10 = vpop.f32.mrf.mxu0 }
 0x375   : > { %v3405_v53 = vadd.f32 %v3323_v45, %v2997_v3  ;;  %v3665_v1 = vsel %vm3574_vm7, %v3556_v31, 0.0 }
 0x376   : > { %3666 = vadd.xlane.f32.xlu0 %v3665_v1 }
 0x377   : > { %v3457_v44 = vadd.f32 %v5899_v54, %v3405_v53 }
 0x378   : > { %v2510_v8 = vpop.f32.mrf.mxu2 }
 0x379   : > { %v2918_v30 = vpop.f32.mrf.mxu3  ;;  %v3505_v4 = vmax.f32 %v3457_v44, 0.0  ;;  %v2590_v26 = vadd.f32 %v2510_v8, %v2366_v29  ;;  %v3625_v50 = vpop.xlane.xlu1 %3624 }
 0x37a   : > { %v2289_v36 = vpop.f32.mrf.mxu1  ;;  %v3739_v2 = vadd.f32 %v5796_v6, %v3625_v50 }
 0x37b   : > { %v2998_v48 = vadd.f32 %v2918_v30, %v2590_v26  ;;  %v3557_v25 = vmul.f32 %v5909_v52, %v3505_v4  ;;  %v2367_v43 = vadd.f32 %v2289_v36, %v5434_v27 }
 0x37c   : > { %3788 = vst.msk [vmem:[%s5805_s26 + $0x80] sm:$0xff] %vm3771_vm8, %v3739_v2  ;;  %v3329_v14 = vpop.f32.mrf.mxu0 }
 0x37d   : > { %v3406_v19 = vadd.f32 %v3326_v10, %v2998_v48  ;;  %v3668_v51 = vsel %vm3574_vm7, %v3557_v25, 0.0 }
 0x37e   : > { %3669 = vadd.xlane.f32.xlu1 %v3668_v51 }
 0x37f   : > { %v3458_v60 = vadd.f32 %v5899_v54, %v3406_v19 }
 0x380   : > { %v2513_v23 = vpop.f32.mrf.mxu2 }
 0x381   : > { %v2921_v21 = vpop.f32.mrf.mxu3  ;;  %v3506_v11 = vmax.f32 %v3458_v60, 0.0  ;;  %v2591_v57 = vadd.f32 %v2513_v23, %v2367_v43  ;;  %v3628_v62 = vpop.xlane.xlu2 %3627 }
 0x382   : > { %v2292_v37 = vpop.f32.mrf.mxu1  ;;  %v3740_v42 = vadd.f32 %v5796_v6, %v3628_v62 }
 0x383   : > { %v2999_v35 = vadd.f32 %v2921_v21, %v2591_v57  ;;  %v3558_v39 = vmul.f32 %v5909_v52, %v3506_v11  ;;  %v2368_v40 = vadd.f32 %v2292_v37, %v5445_v5 }
 0x384   : > { %3789 = vst.msk [vmem:[%s5805_s26 + $0x88] sm:$0xff] %vm3771_vm8, %v3740_v42  ;;  %v3332_v9 = vpop.f32.mrf.mxu0 }
 0x385   : > { %v3407_v63 = vadd.f32 %v3329_v14, %v2999_v35  ;;  %v3671_v27 = vsel %vm3574_vm7, %v3558_v39, 0.0 }
 0x386   : > { %3672 = vadd.xlane.f32.xlu2 %v3671_v27 }
 0x387   : > { %v3459_v0 = vadd.f32 %v5899_v54, %v3407_v63 }
 0x388   : > { %v2516_v41 = vpop.f32.mrf.mxu2 }
 0x389   : > { %v2924_v28 = vpop.f32.mrf.mxu3  ;;  %v3507_v58 = vmax.f32 %v3459_v0, 0.0  ;;  %v2592_v15 = vadd.f32 %v2516_v41, %v2368_v40  ;;  %v3631_v47 = vpop.xlane.xlu0 %3630 }
 0x38a   : > { %v2295_v12 = vpop.f32.mrf.mxu1  ;;  %v3741_v56 = vadd.f32 %v5796_v6, %v3631_v47 }
 0x38b   : > { %v3000_v45 = vadd.f32 %v2924_v28, %v2592_v15  ;;  %v3559_v59 = vmul.f32 %v5909_v52, %v3507_v58  ;;  %v2369_v16 = vadd.f32 %v2295_v12, %v5456_v33  ;;  %v6091_v58 = vld [vmem:[#allocation2] ss:$0 sm:$0xff] }
 0x38c   : > { %3790 = vst.msk [vmem:[%s5805_s26 + $0x90] sm:$0xff] %vm3771_vm8, %v3741_v56  ;;  %v3335_v24 = vpop.f32.mrf.mxu0 }
 0x38d   : > { %v3408_v7 = vadd.f32 %v3332_v9, %v3000_v45  ;;  %v3674_v5 = vsel %vm3574_vm7, %v3559_v59, 0.0 }
 0x38e   : > { %3675 = vadd.xlane.f32.xlu0 %v3674_v5 }
 0x38f   : > { %v3460_v55 = vadd.f32 %v5899_v54, %v3408_v7 }
 0x390   : > { %v2519_v17 = vpop.f32.mrf.mxu2 }
 0x391   : > { %v2927_v32 = vpop.f32.mrf.mxu3  ;;  %v3508_v34 = vmax.f32 %v3460_v55, 0.0  ;;  %v2593_v22 = vadd.f32 %v2519_v17, %v2369_v16  ;;  %v3634_v61 = vpop.xlane.xlu1 %3633 }
 0x392   : > { %v2298_v49 = vpop.f32.mrf.mxu1  ;;  %v3742_v46 = vadd.f32 %v5796_v6, %v3634_v61 }
 0x393   : > { %v3001_v3 = vadd.f32 %v2927_v32, %v2593_v22  ;;  %v3560_v31 = vmul.f32 %v5909_v52, %v3508_v34  ;;  %v2370_v1 = vadd.f32 %v2298_v49, %v5467_v13 }
 0x394   : > { %3791 = vst.msk [vmem:[%s5805_s26 + $0x98] sm:$0xff] %vm3771_vm8, %v3742_v46  ;;  %v3338_v10 = vpop.f32.mrf.mxu0 }
 0x395   : > { %v3409_v53 = vadd.f32 %v3335_v24, %v3001_v3  ;;  %v3677_v33 = vsel %vm3574_vm7, %v3560_v31, 0.0  ;;  %v6273_v3 = vld [vmem:[#allocation5_spill] sm:$0xff] }
 0x396   : > { %3678 = vadd.xlane.f32.xlu1 %v3677_v33 }
 0x397   : > { %v3461_v29 = vadd.f32 %v5899_v54, %v3409_v53 }
 0x398   : > { %v2522_v44 = vpop.f32.mrf.mxu2 }
 0x399   : > { %v2930_v8 = vpop.f32.mrf.mxu3  ;;  %v3509_v30 = vmax.f32 %v3461_v29, 0.0  ;;  %v2594_v4 = vadd.f32 %v2522_v44, %v2370_v1  ;;  %v3637_v26 = vpop.xlane.xlu2 %3636 }
 0x39a   : > { %v2301_v50 = vpop.f32.mrf.mxu1  ;;  %v3743_v36 = vadd.f32 %v5796_v6, %v3637_v26 }
 0x39b   : > { %v3002_v2 = vadd.f32 %v2930_v8, %v2594_v4  ;;  %v3561_v48 = vmul.f32 %v5909_v52, %v3509_v30  ;;  %v2371_v19 = vadd.f32 %v2301_v50, %v5478_v38 }
 0x39c   : > { %3792 = vst.msk [vmem:[%s5805_s26 + $0xa0] sm:$0xff] %vm3771_vm8, %v3743_v36  ;;  %v3341_v25 = vpop.f32.mrf.mxu0 }
 0x39d   : > { %v3410_v14 = vadd.f32 %v3338_v10, %v3002_v2  ;;  %v3680_v13 = vsel %vm3574_vm7, %v3561_v48, 0.0  ;;  %v6274_v48 = vld [vmem:[#allocation7_spill] sm:$0xff] }
 0x39e   : > { %3681 = vadd.xlane.f32.xlu2 %v3680_v13 }
 0x39f   : > { %v3462_v51 = vadd.f32 %v5899_v54, %v3410_v14 }
 0x3a0   : > { %v2525_v43 = vpop.f32.mrf.mxu2 }
 0x3a1   : > { %v2933_v60 = vpop.f32.mrf.mxu3  ;;  %v3510_v23 = vmax.f32 %v3462_v51, 0.0  ;;  %v2595_v21 = vadd.f32 %v2525_v43, %v2371_v19  ;;  %v3640_v11 = vpop.xlane.xlu0 %3639 }
 0x3a2   : > { %v2304_v57 = vpop.f32.mrf.mxu1  ;;  %v3744_v62 = vadd.f32 %v5796_v6, %v3640_v11 }
 0x3a3   : > { %v3003_v37 = vadd.f32 %v2933_v60, %v2595_v21  ;;  %v3562_v42 = vmul.f32 %v5909_v52, %v3510_v23  ;;  %v2372_v9 = vadd.f32 %v2304_v57, %v5489_v18 }
 0x3a4   : > { %3793 = vst.msk [vmem:[%s5805_s26 + $0xa8] sm:$0xff] %vm3771_vm8, %v3744_v62  ;;  %v3344_v35 = vpop.f32.mrf.mxu0 }
 0x3a5   : > { %v3411_v39 = vadd.f32 %v3341_v25, %v3003_v37  ;;  %v3683_v38 = vsel %vm3574_vm7, %v3562_v42, 0.0 }
 0x3a6   : > { %3684 = vadd.xlane.f32.xlu0 %v3683_v38 }
 0x3a7   : > { %v3463_v63 = vadd.f32 %v5899_v54, %v3411_v39 }
 0x3a8   : > { %v2528_v27 = vpop.f32.mrf.mxu2 }
 0x3a9   : > { %v2936_v40 = vpop.f32.mrf.mxu3  ;;  %v3511_v0 = vmax.f32 %v3463_v63, 0.0  ;;  %v2596_v41 = vadd.f32 %v2528_v27, %v2372_v9  ;;  %v3643_v6 = vpop.xlane.xlu1 %3642 }
 0x3aa   : > { %v2307_v28 = vpop.f32.mrf.mxu1  ;;  %v3745_v15 = vadd.f32 %v6091_v58, %v3643_v6 }
 0x3ab   : > { %v3004_v47 = vadd.f32 %v2936_v40, %v2596_v41  ;;  %v3563_v12 = vmul.f32 %v5909_v52, %v3511_v0  ;;  %v2373_v59 = vadd.f32 %v2307_v28, %v5500_v20 }
 0x3ac   : > { %3794 = vst.msk [vmem:[%s5805_s26 + $0xb0] sm:$0xff] %vm3771_vm8, %v3745_v15  ;;  %v3347_v56 = vpop.f32.mrf.mxu0 }
 0x3ad   : > { %v3412_v18 = vadd.f32 %v3344_v35, %v3004_v47  ;;  %v3686_v45 = vsel %vm3574_vm7, %v3563_v12, 0.0  ;;  %v6275_v35 = vld [vmem:[#allocation9_spill] sm:$0xff] }
 0x3ae   : > { %3687 = vadd.xlane.f32.xlu1 %v3686_v45 }
 0x3af   : > { %v3464_v24 = vadd.f32 %v5899_v54, %v3412_v18  ;;  %v6276_v18 = vld [vmem:[#allocation11_spill] sm:$0xff] }
 0x3b0   : > { %v2531_v7 = vpop.f32.mrf.mxu2 }
 0x3b1   : > { %v2939_v5 = vpop.f32.mrf.mxu3  ;;  %v3512_v16 = vmax.f32 %v3464_v24, 0.0  ;;  %v2597_v55 = vadd.f32 %v2531_v7, %v2373_v59  ;;  %v3646_v17 = vpop.xlane.xlu2 %3645 }
 0x3b2   : > { %v2310_v32 = vpop.f32.mrf.mxu1  ;;  %v3746_v34 = vadd.f32 %v6091_v58, %v3646_v17 }
 0x3b3   : > { %v3005_v22 = vadd.f32 %v2939_v5, %v2597_v55  ;;  %v3564_v61 = vmul.f32 %v5909_v52, %v3512_v16  ;;  %v2374_v31 = vadd.f32 %v2310_v32, %v6273_v3 }
 0x3b4   : > { %3795 = vst.msk [vmem:[%s5805_s26 + $0xb8] sm:$0xff] %vm3771_vm8, %v3746_v34  ;;  %v3350_v49 = vpop.f32.mrf.mxu0 }
 0x3b5   : > { %v3413_v46 = vadd.f32 %v3347_v56, %v3005_v22  ;;  %v3689_v20 = vsel %vm3574_vm7, %v3564_v61, 0.0 }
 0x3b6   : > { %3690 = vadd.xlane.f32.xlu2 %v3689_v20  ;;  %v6277_v20 = vld [vmem:[#allocation13_spill] sm:$0xff] }
 0x3b7   : > { %v3465_v10 = vadd.f32 %v5899_v54, %v3413_v46 }
 0x3b8   : > { %v2534_v53 = vpop.f32.mrf.mxu2 }
 0x3b9   : > { %v2942_v33 = vpop.f32.mrf.mxu3  ;;  %v3513_v1 = vmax.f32 %v3465_v10, 0.0  ;;  %v2598_v29 = vadd.f32 %v2534_v53, %v2374_v31  ;;  %v3649_v44 = vpop.xlane.xlu0 %3648 }
 0x3ba   : > { %v2313_v8 = vpop.f32.mrf.mxu1  ;;  %v3747_v30 = vadd.f32 %v6091_v58, %v3649_v44 }
 0x3bb   : > { %v3006_v4 = vadd.f32 %v2942_v33, %v2598_v29  ;;  %v3565_v26 = vmul.f32 %v5909_v52, %v3513_v1  ;;  %v2375_v25 = vadd.f32 %v2313_v8, %v6274_v48 }
 0x3bc   : > { %3796 = vst.msk [vmem:[%s5805_s26 + $0xc0] sm:$0xff] %vm3771_vm8, %v3747_v30  ;;  %v3353_v50 = vpop.f32.mrf.mxu0 }
 0x3bd   : > { %v3414_v36 = vadd.f32 %v3350_v49, %v3006_v4  ;;  %v3692_v2 = vsel %vm3574_vm7, %v3565_v26, 0.0 }
 0x3be   : > { %3693 = vadd.xlane.f32.xlu0 %v3692_v2  ;;  %v6278_v2 = vld [vmem:[#allocation15_spill] sm:$0xff] }
 0x3bf   : > { %v3466_v14 = vadd.f32 %v5899_v54, %v3414_v36 }
 0x3c0   : > { %v2537_v13 = vpop.f32.mrf.mxu2 }
 0x3c1   : > { %v2945_v19 = vpop.f32.mrf.mxu3  ;;  %v3514_v51 = vmax.f32 %v3466_v14, 0.0  ;;  %v2599_v43 = vadd.f32 %v2537_v13, %v2375_v25  ;;  %v3652_v60 = vpop.xlane.xlu1 %3651 }
 0x3c2   : > { %v2316_v23 = vpop.f32.mrf.mxu1  ;;  %v3748_v21 = vadd.f32 %v6091_v58, %v3652_v60 }
 0x3c3   : > { %v3007_v11 = vadd.f32 %v2945_v19, %v2599_v43  ;;  %v3566_v57 = vmul.f32 %v5909_v52, %v3514_v51  ;;  %v2376_v39 = vadd.f32 %v2316_v23, %v6275_v35 }
 0x3c4   : > { %3797 = vst.msk [vmem:[%s5805_s26 + $0xc8] sm:$0xff] %vm3771_vm8, %v3748_v21  ;;  %v3356_v62 = vpop.f32.mrf.mxu0 }
 0x3c5   : > { %v3415_v37 = vadd.f32 %v3353_v50, %v3007_v11  ;;  %v3695_v42 = vsel %vm3574_vm7, %v3566_v57, 0.0 }
 0x3c6   : > { %3696 = vadd.xlane.f32.xlu1 %v3695_v42 }
 0x3c7   : > { %v3467_v38 = vadd.f32 %v5899_v54, %v3415_v37  ;;  %v6279_v37 = vld [vmem:[#allocation17_spill] sm:$0xff] }
 0x3c8   : > { %v2540_v9 = vpop.f32.mrf.mxu2 }
 0x3c9   : > { %v2948_v63 = vpop.f32.mrf.mxu3  ;;  %v3515_v27 = vmax.f32 %v3467_v38, 0.0  ;;  %v2600_v40 = vadd.f32 %v2540_v9, %v2376_v39  ;;  %v3655_v0 = vpop.xlane.xlu2 %3654 }
 0x3ca   : > { %v2319_v41 = vpop.f32.mrf.mxu1  ;;  %v3749_v6 = vadd.f32 %v6091_v58, %v3655_v0 }
 0x3cb   : > { %v3008_v28 = vadd.f32 %v2948_v63, %v2600_v40  ;;  %v3567_v15 = vmul.f32 %v5909_v52, %v3515_v27  ;;  %v2377_v45 = vadd.f32 %v2319_v41, %v6276_v18 }
 0x3cc   : > { %3798 = vst.msk [vmem:[%s5805_s26 + $0xd0] sm:$0xff] %vm3771_vm8, %v3749_v6  ;;  %v3359_v47 = vpop.f32.mrf.mxu0 }
 0x3cd   : > { %v3416_v12 = vadd.f32 %v3356_v62, %v3008_v28  ;;  %v3698_v56 = vsel %vm3574_vm7, %v3567_v15, 0.0 }
 0x3ce   : > { %3699 = vadd.xlane.f32.xlu2 %v3698_v56 }
 0x3cf   : > { %v3468_v59 = vadd.f32 %v5899_v54, %v3416_v12  ;;  %v6280_v12 = vld [vmem:[#allocation19_spill] sm:$0xff] }
 0x3d0   : > { %v2543_v24 = vpop.f32.mrf.mxu2 }
 0x3d1   : > { %v2951_v7 = vpop.f32.mrf.mxu3  ;;  %v3516_v5 = vmax.f32 %v3468_v59, 0.0  ;;  %v2601_v16 = vadd.f32 %v2543_v24, %v2377_v45  ;;  %v3658_v55 = vpop.xlane.xlu0 %3657 }
 0x3d2   : > { %v2322_v17 = vpop.f32.mrf.mxu1  ;;  %v3750_v32 = vadd.f32 %v6091_v58, %v3658_v55 }
 0x3d3   : > { %v3009_v34 = vadd.f32 %v2951_v7, %v2601_v16  ;;  %v3568_v22 = vmul.f32 %v5909_v52, %v3516_v5  ;;  %v2378_v3 = vadd.f32 %v2322_v17, %v6277_v20 }
 0x3d4   : > { %3799 = vst.msk [vmem:[%s5805_s26 + $0xd8] sm:$0xff] %vm3771_vm8, %v3750_v32  ;;  %v3362_v61 = vpop.f32.mrf.mxu0 }
 0x3d5   : > { %v3417_v49 = vadd.f32 %v3359_v47, %v3009_v34  ;;  %v3701_v46 = vsel %vm3574_vm7, %v3568_v22, 0.0 }
 0x3d6   : > { %3702 = vadd.xlane.f32.xlu0 %v3701_v46 }
 0x3d7   : > { %v3469_v31 = vadd.f32 %v5899_v54, %v3417_v49 }
 0x3d8   : > { %v2546_v10 = vpop.f32.mrf.mxu2 }
 0x3d9   : > { %v2954_v53 = vpop.f32.mrf.mxu3  ;;  %v3517_v33 = vmax.f32 %v3469_v31, 0.0  ;;  %v2602_v1 = vadd.f32 %v2546_v10, %v2378_v3  ;;  %v3661_v29 = vpop.xlane.xlu1 %3660 }
 0x3da   : > { %v2325_v44 = vpop.f32.mrf.mxu1  ;;  %v3751_v8 = vadd.f32 %v6091_v58, %v3661_v29 }
 0x3db   : > { %v3010_v30 = vadd.f32 %v2954_v53, %v2602_v1  ;;  %v3569_v4 = vmul.f32 %v5909_v52, %v3517_v33  ;;  %v2379_v48 = vadd.f32 %v2325_v44, %v6278_v2 }
 0x3dc   : > { %3800 = vst.msk [vmem:[%s5805_s26 + $0xe0] sm:$0xff] %vm3771_vm8, %v3751_v8  ;;  %v3365_v36 = vpop.f32.mrf.mxu0 }
 0x3dd   : > { %v3418_v26 = vadd.f32 %v3362_v61, %v3010_v30  ;;  %v3704_v50 = vsel %vm3574_vm7, %v3569_v4, 0.0 }
 0x3de   : > { %3705 = vadd.xlane.f32.xlu1 %v3704_v50 }
 0x3df   : > { %v3470_v25 = vadd.f32 %v5899_v54, %v3418_v26 }
 0x3e0   : > { %v2549_v14 = vpop.f32.mrf.mxu2 }
 0x3e1   : > { %v2957_v13 = vpop.f32.mrf.mxu3  ;;  %v3518_v19 = vmax.f32 %v3470_v25, 0.0  ;;  %v2603_v51 = vadd.f32 %v2549_v14, %v2379_v48  ;;  %v3664_v43 = vpop.xlane.xlu2 %3663 }
 0x3e2   : > { %v3752_v60 = vadd.f32 %v6091_v58, %v3664_v43  ;;  %v2328_v23 = vpop.f32.mrf.mxu1 }
 0x3e3   : > { %v3011_v21 = vadd.f32 %v2957_v13, %v2603_v51  ;;  %v3570_v11 = vmul.f32 %v5909_v52, %v3518_v19  ;;  %v2380_v42 = vadd.f32 %v2328_v23, %v6279_v37 }
 0x3e4   : > { %3801 = vst.msk [vmem:[%s5805_s26 + $0xe8] sm:$0xff] %vm3771_vm8, %v3752_v60  ;;  %v3368_v39 = vpop.f32.mrf.mxu0 }
 0x3e5   : > { %v3419_v57 = vadd.f32 %v3365_v36, %v3011_v21  ;;  %v3707_v62 = vsel %vm3574_vm7, %v3570_v11, 0.0 }
 0x3e6   : > { %3708 = vadd.xlane.f32.xlu2 %v3707_v62 }
 0x3e7   : > { %v3471_v35 = vadd.f32 %v5899_v54, %v3419_v57 }
 0x3e8   : > { %v2552_v38 = vpop.f32.mrf.mxu2 }
 0x3e9   : > { %v2960_v9 = vpop.f32.mrf.mxu3  ;;  %v3519_v63 = vmax.f32 %v3471_v35, 0.0  ;;  %v2604_v27 = vadd.f32 %v2552_v38, %v2380_v42  ;;  %v3667_v40 = vpop.xlane.xlu0 %3666 }
 0x3ea   : > { %v3753_v0 = vadd.f32 %v6091_v58, %v3667_v40  ;;  %v2331_v28 = vpop.f32.mrf.mxu1 }
 0x3eb   : > { %v3012_v41 = vadd.f32 %v2960_v9, %v2604_v27  ;;  %v3571_v6 = vmul.f32 %v5909_v52, %v3519_v63  ;;  %v2381_v56 = vadd.f32 %v2331_v28, %v6280_v12 }
 0x3ec   : > { %3802 = vst.msk [vmem:[%s5805_s26 + $0xf0] sm:$0xff] %vm3771_vm8, %v3753_v0  ;;  %v3371_v55 = vpop.f32.mrf.mxu0 }
 0x3ed   : > { %v3420_v15 = vadd.f32 %v3368_v39, %v3012_v41  ;;  %v3710_v47 = vsel %vm3574_vm7, %v3571_v6, 0.0 }
 0x3ee   : > { %3711 = vadd.xlane.f32.xlu0 %v3710_v47 }
 0x3ef   : > { %v3472_v18 = vadd.f32 %v5899_v54, %v3420_v15 }
 0x3f0   : > { %v2555_v45 = vpop.f32.mrf.mxu2 }
 0x3f1   : > { %v2963_v59 = vpop.f32.mrf.mxu3  ;;  %v3520_v24 = vmax.f32 %v3472_v18, 0.0  ;;  %v2605_v7 = vadd.f32 %v2555_v45, %v2381_v56  ;;  %v3670_v5 = vpop.xlane.xlu1 %3669 }
 0x3f2   : > { %v3754_v16 = vadd.f32 %v6091_v58, %v3670_v5 }
 0x3f3   : > { %v3013_v17 = vadd.f32 %v2963_v59, %v2605_v7  ;;  %v3572_v32 = vmul.f32 %v5909_v52, %v3520_v24 }
 0x3f4   : > { %3803 = vst.msk [vmem:[%s5805_s26 + $0xf8] sm:$0xff] %vm3771_vm8, %v3754_v16 }
 0x3f5   : > { %v3421_v34 = vadd.f32 %v3371_v55, %v3013_v17  ;;  %v3713_v22 = vsel %vm3574_vm7, %v3572_v32, 0.0 }
 0x3f6   : > { %3714 = vadd.xlane.f32.xlu1 %v3713_v22 }
 0x3f7   : > { %v3473_v61 = vadd.f32 %v5899_v54, %v3421_v34 }
 0x3f9   : > { %v3521_v49 = vmax.f32 %v3473_v61, 0.0  ;;  %v3673_v46 = vpop.xlane.xlu2 %3672 }
 0x3fa   : > { %v3755_v20 = vadd.f32 %v6091_v58, %v3673_v46 }
 0x3fb   : > { %v3573_v3 = vmul.f32 %v5909_v52, %v3521_v49 }
 0x3fc   : > { %3804 = vst.msk [vmem:[%s5805_s26 + $0x100] sm:$0xff] %vm3771_vm8, %v3755_v20 }
 0x3fd   : > { %v3716_v31 = vsel %vm3574_vm7, %v3573_v3, 0.0 }
 0x3fe   : > { %3717 = vadd.xlane.f32.xlu2 %v3716_v31 }
 0x401   : > { %v3676_v10 = vpop.xlane.xlu0 %3675 }
 0x402   : > { %v3756_v53 = vadd.f32 %v6091_v58, %v3676_v10 }
 0x404   : > { %3805 = vst.msk [vmem:[%s5805_s26 + $0x108] sm:$0xff] %vm3771_vm8, %v3756_v53 }
 0x409   : > { %v3679_v54 = vpop.xlane.xlu1 %3678 }
 0x40a   : > { %v3757_v33 = vadd.f32 %v6091_v58, %v3679_v54 }
 0x40c   : > { %3806 = vst.msk [vmem:[%s5805_s26 + $0x110] sm:$0xff] %vm3771_vm8, %v3757_v33 }
 0x411   : > { %v3682_v1 = vpop.xlane.xlu2 %3681 }
 0x412   : > { %v3758_v52 = vadd.f32 %v6091_v58, %v3682_v1 }
 0x414   : > { %3807 = vst.msk [vmem:[%s5805_s26 + $0x118] sm:$0xff] %vm3771_vm8, %v3758_v52 }
 0x419   : > { %v3685_v29 = vpop.xlane.xlu0 %3684 }
 0x41a   : > { %v3759_v44 = vadd.f32 %v6091_v58, %v3685_v29 }
 0x41c   : > { %3808 = vst.msk [vmem:[%s5805_s26 + $0x120] sm:$0xff] %vm3771_vm8, %v3759_v44 }
 0x421   : > { %v3688_v8 = vpop.xlane.xlu1 %3687 }
 0x422   : > { %v3760_v30 = vadd.f32 %v6091_v58, %v3688_v8 }
 0x424   : > { %3809 = vst.msk [vmem:[%s5805_s26 + $0x128] sm:$0xff] %vm3771_vm8, %v3760_v30 }
 0x429   : > { %v3691_v4 = vpop.xlane.xlu2 %3690 }
 0x42a   : > { %v3761_v26 = vadd.f32 %v6091_v58, %v3691_v4 }
 0x42c   : > { %3810 = vst.msk [vmem:[%s5805_s26 + $0x130] sm:$0xff] %vm3771_vm8, %v3761_v26 }
 0x431   : > { %v3694_v50 = vpop.xlane.xlu0 %3693 }
 0x432   : > { %v3762_v36 = vadd.f32 %v6091_v58, %v3694_v50 }
 0x434   : > { %3811 = vst.msk [vmem:[%s5805_s26 + $0x138] sm:$0xff] %vm3771_vm8, %v3762_v36 }
 0x439   : > { %v3697_v2 = vpop.xlane.xlu1 %3696 }
 0x43a   : > { %v3763_v48 = vadd.f32 %v6091_v58, %v3697_v2 }
 0x43c   : > { %3812 = vst.msk [vmem:[%s5805_s26 + $0x140] sm:$0xff] %vm3771_vm8, %v3763_v48 }
 0x441   : > { %v3700_v25 = vpop.xlane.xlu2 %3699 }
 0x442   : > { %v3764_v14 = vadd.f32 %v6091_v58, %v3700_v25 }
 0x444   : > { %3813 = vst.msk [vmem:[%s5805_s26 + $0x148] sm:$0xff] %vm3771_vm8, %v3764_v14 }
 0x449   : > { %v3703_v13 = vpop.xlane.xlu0 %3702 }
 0x44a   : > { %v3765_v19 = vadd.f32 %v6091_v58, %v3703_v13 }
 0x44c   : > { %3814 = vst.msk [vmem:[%s5805_s26 + $0x150] sm:$0xff] %vm3771_vm8, %v3765_v19 }
 0x451   : > { %v3706_v51 = vpop.xlane.xlu1 %3705 }
 0x452   : > { %v3766_v43 = vadd.f32 %v6091_v58, %v3706_v51 }
 0x454   : > { %3815 = vst.msk [vmem:[%s5805_s26 + $0x158] sm:$0xff] %vm3771_vm8, %v3766_v43 }
 0x459   : > { %v3709_v60 = vpop.xlane.xlu2 %3708 }
 0x45a   : > { %v3767_v23 = vadd.f32 %v6091_v58, %v3709_v60 }
 0x45c   : > { %3816 = vst.msk [vmem:[%s5805_s26 + $0x160] sm:$0xff] %vm3771_vm8, %v3767_v23 }
 0x461   : > { %v3712_v21 = vpop.xlane.xlu0 %3711 }
 0x462   : > { %v3768_v11 = vadd.f32 %v6091_v58, %v3712_v21 }
 0x464   : > { %3817 = vst.msk [vmem:[%s5805_s26 + $0x168] sm:$0xff] %vm3771_vm8, %v3768_v11 }
 0x469   : > { %v3715_v57 = vpop.xlane.xlu1 %3714 }
 0x46a   : > { %v3769_v62 = vadd.f32 %v6091_v58, %v3715_v57 }
 0x46c   : > { %3818 = vst.msk [vmem:[%s5805_s26 + $0x170] sm:$0xff] %vm3771_vm8, %v3769_v62 }
 0x471   : > { %v3718_v37 = vpop.xlane.xlu2 %3717 }
 0x472   : > { %v3770_v42 = vadd.f32 %v6091_v58, %v3718_v37 }
 0x474   : > { %3819 = vst.msk [vmem:[%s5805_s26 + $0x178] sm:$0xff] %vm3771_vm8, %v3770_v42 }
 0x475 PF: > { %s17_s20 = sadd.s32 1, %s4419_s20  }
 0x476   : > { %p14_p4 = scmp.ge.s32.totalorder %s17_s20, 4  }
 0x478   :  { %16 = sbr.rel (!%p14_p4) target bundleno = 3 (0x3), region = 76 }

</bundles_post_ra>
